<compile_context>
chip_gen: v5e
topology: v5e:2x2
jax: 0.10.0
libtpu: 0.0.40
codegen_flags: <defaults>
</compile_context>

<pallas_src>
import functools

import jax
import jax.numpy as jnp
from jax.experimental import pallas as pl
from jax.experimental.pallas import tpu as pltpu

LANE = 128
NEG_PAD = -1e30  # bias for padded (fake) classes -> effectively -inf logits


def _round_up(x, m):
    return (x + m - 1) // m * m


# ---------------- Pallas kernels ----------------

def _forward_tile(slab_ref, ew_ref, eb_ref, dw_ref, db_ref, *, T, Wp, Cp):
    """Encoder 3x3 conv (9 shifted-slab matmuls) + ReLU, decoder 1x1 matmul.

    Returns z = logits - rowmax (so max(z) == 0.0 exactly), shape (T, Kp) f32.
    """
    Hp = ew_ref.shape[1]
    feat = jnp.zeros((T, Hp), jnp.float32)
    for t in range(9):                                   # static unroll over the 3x3 taps
        dh, dw = t // 3, t % 3
        off = dh * Wp + dw                               # static sublane offset of this tap
        feat = feat + jnp.dot(slab_ref[pl.ds(off, T), :],
                              ew_ref[pl.ds(t * Cp, Cp), :],
                              preferred_element_type=jnp.float32)
    feat = jnp.maximum(feat + eb_ref[...], 0.0)          # bias + ReLU (f32)
    logits = jnp.dot(feat.astype(jnp.bfloat16), dw_ref[...],
                     preferred_element_type=jnp.float32) + db_ref[...]  # padded classes -> -1e30
    return logits - jnp.max(logits, axis=-1, keepdims=True)


def _infer_kernel(slab_ref, ew_ref, eb_ref, dw_ref, db_ref, prob_ref, *, T, Wp, Cp):
    z = _forward_tile(slab_ref, ew_ref, eb_ref, dw_ref, db_ref, T=T, Wp=Wp, Cp=Cp)
    p = jnp.exp(z)                                                   # single exp; pad classes -> 0
    inv = pl.reciprocal(jnp.sum(p, axis=-1, keepdims=True), approx=True)
    prob_ref[...] = (p * inv).astype(prob_ref.dtype)                 # lane-dense (T, Kp) bf16


def _train_kernel(slab_ref, lbl_ref, ew_ref, eb_ref, dw_ref, db_ref, part_ref, *, T, Wp, Cp):
    z = _forward_tile(slab_ref, ew_ref, eb_ref, dw_ref, db_ref, T=T, Wp=Wp, Cp=Cp)
    Kp = z.shape[1]
    lse = jnp.log(jnp.sum(jnp.exp(z), axis=-1, keepdims=True))       # log_softmax = z - lse

    label = lbl_ref[...]                                             # (T, 1) int32, -1 == ignore
    valid = (label >= 0).astype(jnp.float32)                         # (T, 1)
    class_ids = jax.lax.broadcasted_iota(jnp.int32, (T, Kp), 1)

    # z[n, label[n]] without materializing an f32 one-hot.
    z_at_label = jnp.sum(jnp.where(class_ids == label, z, 0.0), axis=-1, keepdims=True)
    nll = jnp.sum((lse - z_at_label) * valid)                        # sum of -log_softmax[label]

    # argmax with first-max tie break (matches torch.max): max(z) == 0.0 exactly, so reuse it.
    preds = jnp.min(jnp.where(z >= 0.0, class_ids, Kp), axis=-1, keepdims=True)
    correct = jnp.sum((preds == label).astype(jnp.float32) * valid)
    n_valid = jnp.sum(valid)

    # Per-tile partials as three broadcast (8, 128) planes -> clean (24, 128) store, reduced in JAX.
    part_ref[...] = jnp.concatenate(
        [jnp.broadcast_to(nll, (8, LANE)),
         jnp.broadcast_to(correct, (8, LANE)),
         jnp.broadcast_to(n_valid, (8, LANE))], axis=0).astype(jnp.float32)


# ---------------- wrappers / glue ----------------

def _prep_params(params, C):
    """PyTorch conv weights -> lane-padded matmul weights (resident in VMEM)."""
    enc_w, enc_b, dec_w, dec_b = params
    hidden = enc_w.shape[0]
    K = dec_w.shape[0]
    Hp = _round_up(hidden, LANE)
    Kp = _round_up(K, LANE)
    Cp = _round_up(C, 8)

    # (cout, cin, kh, kw) -> (kh, kw, cin_pad, cout_pad) -> (9*Cp, Hp); row t*Cp+c is tap t=kh*3+kw.
    ew = jnp.transpose(enc_w, (2, 3, 1, 0))
    ew = jnp.pad(ew, ((0, 0), (0, 0), (0, Cp - C), (0, Hp - hidden)))
    ew = ew.reshape(9 * Cp, Hp).astype(jnp.float32)
    eb = jnp.pad(enc_b, (0, Hp - hidden)).reshape(1, Hp).astype(jnp.float32)

    dwm = jnp.transpose(dec_w.reshape(K, hidden))                     # (hidden, K)
    dwm = jnp.pad(dwm, ((0, Hp - hidden), (0, Kp - K))).astype(jnp.bfloat16)
    db = jnp.pad(dec_b, (0, Kp - K), constant_values=NEG_PAD).reshape(1, Kp).astype(jnp.float32)
    return ew, eb, dwm, db, Hp, Kp, K, Cp


def _build_slabs_and_labels(img, seg_label, Cp, tile_rows):
    """Flatten the zero-padded image pixel-major and materialize per-tile halo slabs."""
    B, C, H, W = img.shape
    Wp, Hpi = W + 2, H + 2
    halo = Wp + 1                                       # max |flat offset| of a 3x3 tap
    Np = B * Hpi * Wp                                   # pixels of the zero-padded grid

    T = _round_up(max(tile_rows, 2 * halo), 8)          # slab construction requires T >= 2*halo
    NT = pl.cdiv(Np, T)
    Np_pad = NT * T
    S = T + 2 * halo
    S_pad = _round_up(S, 8)

    x = jnp.transpose(img, (0, 2, 3, 1))                              # NCHW -> NHWC
    x = jnp.pad(x, ((0, 0), (1, 1), (1, 1), (0, Cp - C)))             # spatial + channel pad
    flat = x.reshape(Np, Cp).astype(jnp.float32)
    L = Np_pad + T                                                    # guard rows front + back
    flat_g = jnp.pad(flat, ((halo, L - Np - halo), (0, 0)))
    main = flat_g[:Np_pad].reshape(NT, T, Cp)
    tail = flat_g[T:T + Np_pad].reshape(NT, T, Cp)[:, :2 * halo]
    slabs = jnp.concatenate([main, tail], axis=1)                     # (NT, T + 2*halo, Cp)
    slabs = jnp.pad(slabs, ((0, 0), (0, S_pad - S), (0, 0))).reshape(NT * S_pad, Cp)

    labels = None
    if seg_label is not None:
        # Labels on the padded grid: pad/tail positions get -1 (ignore_index).
        lbl = jnp.full((B, Hpi, Wp), -1, jnp.int32)
        lbl = lbl.at[:, 1:H + 1, 1:W + 1].set(seg_label.astype(jnp.int32))
        labels = jnp.pad(lbl.reshape(Np), (0, Np_pad - Np), constant_values=-1)
        labels = labels.reshape(Np_pad, 1)                            # lane-width 1: tiny stream
    return slabs, labels, T, NT, Np, Np_pad, S_pad, Wp, Hpi


def segmentation_module_forward(feed_dict, params, *, segSize=None,
                                deep_sup_scale=None, tile_rows=2048):
    img = feed_dict["img_data"]                                       # NCHW like PyTorch
    B, C, H, W = img.shape
    ew, eb, dwm, db, Hp, Kp, K, Cp = _prep_params(params, C)

    seg_label = None if segSize is not None else feed_dict["seg_label"]
    slabs, labels, T, NT, Np, Np_pad, S_pad, Wp, Hpi = _build_slabs_and_labels(
        img, seg_label, Cp, tile_rows)

    slab_spec = pl.BlockSpec((S_pad, Cp), lambda i: (i, 0))
    ew_spec = pl.BlockSpec((9 * Cp, Hp), lambda i: (0, 0))            # resident weights
    eb_spec = pl.BlockSpec((1, Hp), lambda i: (0, 0))
    dw_spec = pl.BlockSpec((Hp, Kp), lambda i: (0, 0))
    db_spec = pl.BlockSpec((1, Kp), lambda i: (0, 0))

    def cparams(out_block_bytes):
        stream = 2 * (S_pad * Cp * 4 + T * 4 + out_block_bytes)       # double-buffered DMA blocks
        weights = 2 * (9 * Cp * Hp * 4 + Hp * 4 + Hp * Kp * 2 + Kp * 4)
        temps = 10 * T * max(Hp, Kp) * 4                              # f32 intermediates + slack
        # v7x has only 64 MiB physical VMEM (vs 128 MiB on v5e/v6e): cap the budget with headroom.
        vmem = min(max(stream + weights + temps, 32 * 1024 * 1024), 48 * 1024 * 1024)
        return pltpu.CompilerParams(dimension_semantics=("parallel",),
                                    vmem_limit_bytes=int(vmem))

    if segSize is not None:
        # ---- inference: bf16 softmax probabilities, lane-dense (Np_pad, Kp) output ----
        kern = functools.partial(_infer_kernel, T=T, Wp=Wp, Cp=Cp)
        probs = pl.pallas_call(
            kern,
            out_shape=jax.ShapeDtypeStruct((Np_pad, Kp), jnp.bfloat16),
            grid_spec=pltpu.PrefetchScalarGridSpec(
                num_scalar_prefetch=0, grid=(NT,),
                in_specs=[slab_spec, ew_spec, eb_spec, dw_spec, db_spec],
                out_specs=pl.BlockSpec((T, Kp), lambda i: (i, 0))),
            compiler_params=cparams(T * Kp * 2),
        )(slabs, ew, eb, dwm, db)
        probs = probs[:Np].reshape(B, Hpi, Wp, Kp)[:, 1:H + 1, 1:W + 1, :K]
        pred = jnp.transpose(probs, (0, 3, 1, 2)).astype(jnp.float32)  # (B, K, H, W)
        if tuple(segSize) != (H, W):
            # TODO(synk): bilinear upsample to segSize done in plain JAX, not in-kernel.
            pred = jax.image.resize(pred, (B, K, segSize[0], segSize[1]), method="bilinear")
        return pred

    # ---- training: per-tile partial (nll, correct, valid) sums; reduce + divide in JAX ----
    kern = functools.partial(_train_kernel, T=T, Wp=Wp, Cp=Cp)
    parts = pl.pallas_call(
        kern,
        out_shape=jax.ShapeDtypeStruct((NT * 24, LANE), jnp.float32),
        grid_spec=pltpu.PrefetchScalarGridSpec(
            num_scalar_prefetch=0, grid=(NT,),
            in_specs=[slab_spec,
                      pl.BlockSpec((T, 1), lambda i: (i, 0)),          # labels (tiny stream)
                      ew_spec, eb_spec, dw_spec, db_spec],
            out_specs=pl.BlockSpec((24, LANE), lambda i: (i, 0))),
        compiler_params=cparams(24 * LANE * 4),
    )(slabs, labels, ew, eb, dwm, db)

    parts = parts.reshape(NT, 24, LANE)
    nll_sum = jnp.sum(parts[:, 0, 0])
    cor_sum = jnp.sum(parts[:, 8, 0])
    val_sum = jnp.sum(parts[:, 16, 0])
    # NOTE: torch.nn.NLLLoss yields NaN when every pixel is ignore_index; we guard with max(.,1).
    loss = nll_sum / jnp.maximum(val_sum, 1.0)
    acc = cor_sum / (val_sum + 1e-10)                                  # matches pixel_acc exactly
    # TODO(synk): deep-supervision branch not implemented (net_dec is a synthetic stand-in).
    return loss, acc


if __name__ == "__main__":
    key = jax.random.PRNGKey(0)
    B, C_in, Hs, Ws = 2, 4, 16, 16
    hidden, num_classes = 32, 8

    k_img, k_lbl, k_ew, k_eb, k_dw, k_db = jax.random.split(key, 6)
    img_data = jax.random.normal(k_img, (B, C_in, Hs, Ws), jnp.float32)
    seg_label = jax.random.randint(k_lbl, (B, Hs, Ws), -1, num_classes, jnp.int32)

    enc_w = 0.1 * jax.random.normal(k_ew, (hidden, C_in, 3, 3), jnp.float32)
    enc_b = 0.1 * jax.random.normal(k_eb, (hidden,), jnp.float32)
    dec_w = 0.1 * jax.random.normal(k_dw, (num_classes, hidden, 1, 1), jnp.float32)
    dec_b = 0.1 * jax.random.normal(k_db, (num_classes,), jnp.float32)

    feed_dict = {"img_data": img_data, "seg_label": seg_label}
    params = (enc_w, enc_b, dec_w, dec_b)

    # training path (tile_rows=256 -> 3 grid steps over the 2*18*18 = 648-pixel padded grid)
    loss, acc = segmentation_module_forward(feed_dict, params, tile_rows=256)
    jax.block_until_ready((loss, acc))

    # inference path at native resolution
    pred = segmentation_module_forward(feed_dict, params, segSize=(Hs, Ws), tile_rows=256)
    jax.block_until_ready(pred)

    print("KERNEL_OK")
</pallas_src>

<mosaic_0001>
module attributes {stable_mosaic.version = 11 : i64} {
  func.func @_train_kernel(%arg0: i32, %arg1: memref<296x8xf32, #tpu.memory_space<vmem>>, %arg2: memref<256x1xi32, #tpu.memory_space<vmem>>, %arg3: memref<72x128xf32, #tpu.memory_space<vmem>>, %arg4: memref<1x128xf32, #tpu.memory_space<vmem>>, %arg5: memref<128x128xbf16, #tpu.memory_space<vmem>>, %arg6: memref<1x128xf32, #tpu.memory_space<vmem>>, %arg7: memref<24x128xf32, #tpu.memory_space<vmem>>) attributes {dimension_semantics = [#tpu.dimension_semantics<parallel>], iteration_bounds = array<i64: 3>, scalar_prefetch = 0 : i64, scratch_operands = 0 : i64, tpu.core_type = #tpu.core_type<tc>, window_params = [{transform_indices = @transform_0, window_bounds = array<i64: 296, 8>}, {transform_indices = @transform_1, window_bounds = array<i64: 256, 1>}, {pipeline_mode = #tpu.pipeline_mode<synchronous>, transform_indices = @transform_2, window_bounds = array<i64: 72, 128>}, {pipeline_mode = #tpu.pipeline_mode<synchronous>, transform_indices = @transform_3, window_bounds = array<i64: 1, 128>}, {pipeline_mode = #tpu.pipeline_mode<synchronous>, transform_indices = @transform_4, window_bounds = array<i64: 128, 128>}, {pipeline_mode = #tpu.pipeline_mode<synchronous>, transform_indices = @transform_5, window_bounds = array<i64: 1, 128>}, {transform_indices = @transform_6, window_bounds = array<i64: 24, 128>}]} {
    %cst = arith.constant 0.000000e+00 : f32
    %0 = vector.broadcast %cst : f32 to vector<256x128xf32>
    %c0 = arith.constant 0 : index
    %c0_0 = arith.constant 0 : index
    %1 = vector.load %arg1[%c0, %c0_0] : memref<296x8xf32, #tpu.memory_space<vmem>>, vector<256x8xf32>
    %c0_1 = arith.constant 0 : index
    %c0_2 = arith.constant 0 : index
    %2 = vector.load %arg3[%c0_1, %c0_2] : memref<72x128xf32, #tpu.memory_space<vmem>>, vector<8x128xf32>
    %cst_3 = arith.constant dense<0.000000e+00> : vector<256x128xf32>
    %3 = tpu.matmul %1, %2, %cst_3 {dimension_numbers = #tpu.dot_dimension_numbers<[1], [0], [0], [1], [0, 0, 1, 1], [], []>} : vector<256x8xf32>, vector<8x128xf32>, vector<256x128xf32> -> vector<256x128xf32>
    %4 = arith.addf %0, %3 : vector<256x128xf32>
    %c1 = arith.constant 1 : index
    %c0_4 = arith.constant 0 : index
    %5 = vector.load %arg1[%c1, %c0_4] : memref<296x8xf32, #tpu.memory_space<vmem>>, vector<256x8xf32>
    %c8 = arith.constant 8 : index
    %c0_5 = arith.constant 0 : index
    %6 = vector.load %arg3[%c8, %c0_5] : memref<72x128xf32, #tpu.memory_space<vmem>>, vector<8x128xf32>
    %cst_6 = arith.constant dense<0.000000e+00> : vector<256x128xf32>
    %7 = tpu.matmul %5, %6, %cst_6 {dimension_numbers = #tpu.dot_dimension_numbers<[1], [0], [0], [1], [0, 0, 1, 1], [], []>} : vector<256x8xf32>, vector<8x128xf32>, vector<256x128xf32> -> vector<256x128xf32>
    %8 = arith.addf %4, %7 : vector<256x128xf32>
    %c2 = arith.constant 2 : index
    %c0_7 = arith.constant 0 : index
    %9 = vector.load %arg1[%c2, %c0_7] : memref<296x8xf32, #tpu.memory_space<vmem>>, vector<256x8xf32>
    %c16 = arith.constant 16 : index
    %c0_8 = arith.constant 0 : index
    %10 = vector.load %arg3[%c16, %c0_8] : memref<72x128xf32, #tpu.memory_space<vmem>>, vector<8x128xf32>
    %cst_9 = arith.constant dense<0.000000e+00> : vector<256x128xf32>
    %11 = tpu.matmul %9, %10, %cst_9 {dimension_numbers = #tpu.dot_dimension_numbers<[1], [0], [0], [1], [0, 0, 1, 1], [], []>} : vector<256x8xf32>, vector<8x128xf32>, vector<256x128xf32> -> vector<256x128xf32>
    %12 = arith.addf %8, %11 : vector<256x128xf32>
    %c18 = arith.constant 18 : index
    %c0_10 = arith.constant 0 : index
    %13 = vector.load %arg1[%c18, %c0_10] : memref<296x8xf32, #tpu.memory_space<vmem>>, vector<256x8xf32>
    %c24 = arith.constant 24 : index
    %c0_11 = arith.constant 0 : index
    %14 = vector.load %arg3[%c24, %c0_11] : memref<72x128xf32, #tpu.memory_space<vmem>>, vector<8x128xf32>
    %cst_12 = arith.constant dense<0.000000e+00> : vector<256x128xf32>
    %15 = tpu.matmul %13, %14, %cst_12 {dimension_numbers = #tpu.dot_dimension_numbers<[1], [0], [0], [1], [0, 0, 1, 1], [], []>} : vector<256x8xf32>, vector<8x128xf32>, vector<256x128xf32> -> vector<256x128xf32>
    %16 = arith.addf %12, %15 : vector<256x128xf32>
    %c19 = arith.constant 19 : index
    %c0_13 = arith.constant 0 : index
    %17 = vector.load %arg1[%c19, %c0_13] : memref<296x8xf32, #tpu.memory_space<vmem>>, vector<256x8xf32>
    %c32 = arith.constant 32 : index
    %c0_14 = arith.constant 0 : index
    %18 = vector.load %arg3[%c32, %c0_14] : memref<72x128xf32, #tpu.memory_space<vmem>>, vector<8x128xf32>
    %cst_15 = arith.constant dense<0.000000e+00> : vector<256x128xf32>
    %19 = tpu.matmul %17, %18, %cst_15 {dimension_numbers = #tpu.dot_dimension_numbers<[1], [0], [0], [1], [0, 0, 1, 1], [], []>} : vector<256x8xf32>, vector<8x128xf32>, vector<256x128xf32> -> vector<256x128xf32>
    %20 = arith.addf %16, %19 : vector<256x128xf32>
    %c20 = arith.constant 20 : index
    %c0_16 = arith.constant 0 : index
    %21 = vector.load %arg1[%c20, %c0_16] : memref<296x8xf32, #tpu.memory_space<vmem>>, vector<256x8xf32>
    %c40 = arith.constant 40 : index
    %c0_17 = arith.constant 0 : index
    %22 = vector.load %arg3[%c40, %c0_17] : memref<72x128xf32, #tpu.memory_space<vmem>>, vector<8x128xf32>
    %cst_18 = arith.constant dense<0.000000e+00> : vector<256x128xf32>
    %23 = tpu.matmul %21, %22, %cst_18 {dimension_numbers = #tpu.dot_dimension_numbers<[1], [0], [0], [1], [0, 0, 1, 1], [], []>} : vector<256x8xf32>, vector<8x128xf32>, vector<256x128xf32> -> vector<256x128xf32>
    %24 = arith.addf %20, %23 : vector<256x128xf32>
    %c36 = arith.constant 36 : index
    %c0_19 = arith.constant 0 : index
    %25 = vector.load %arg1[%c36, %c0_19] : memref<296x8xf32, #tpu.memory_space<vmem>>, vector<256x8xf32>
    %c48 = arith.constant 48 : index
    %c0_20 = arith.constant 0 : index
    %26 = vector.load %arg3[%c48, %c0_20] : memref<72x128xf32, #tpu.memory_space<vmem>>, vector<8x128xf32>
    %cst_21 = arith.constant dense<0.000000e+00> : vector<256x128xf32>
    %27 = tpu.matmul %25, %26, %cst_21 {dimension_numbers = #tpu.dot_dimension_numbers<[1], [0], [0], [1], [0, 0, 1, 1], [], []>} : vector<256x8xf32>, vector<8x128xf32>, vector<256x128xf32> -> vector<256x128xf32>
    %28 = arith.addf %24, %27 : vector<256x128xf32>
    %c37 = arith.constant 37 : index
    %c0_22 = arith.constant 0 : index
    %29 = vector.load %arg1[%c37, %c0_22] : memref<296x8xf32, #tpu.memory_space<vmem>>, vector<256x8xf32>
    %c56 = arith.constant 56 : index
    %c0_23 = arith.constant 0 : index
    %30 = vector.load %arg3[%c56, %c0_23] : memref<72x128xf32, #tpu.memory_space<vmem>>, vector<8x128xf32>
    %cst_24 = arith.constant dense<0.000000e+00> : vector<256x128xf32>
    %31 = tpu.matmul %29, %30, %cst_24 {dimension_numbers = #tpu.dot_dimension_numbers<[1], [0], [0], [1], [0, 0, 1, 1], [], []>} : vector<256x8xf32>, vector<8x128xf32>, vector<256x128xf32> -> vector<256x128xf32>
    %32 = arith.addf %28, %31 : vector<256x128xf32>
    %c38 = arith.constant 38 : index
    %c0_25 = arith.constant 0 : index
    %33 = vector.load %arg1[%c38, %c0_25] : memref<296x8xf32, #tpu.memory_space<vmem>>, vector<256x8xf32>
    %c64 = arith.constant 64 : index
    %c0_26 = arith.constant 0 : index
    %34 = vector.load %arg3[%c64, %c0_26] : memref<72x128xf32, #tpu.memory_space<vmem>>, vector<8x128xf32>
    %cst_27 = arith.constant dense<0.000000e+00> : vector<256x128xf32>
    %35 = tpu.matmul %33, %34, %cst_27 {dimension_numbers = #tpu.dot_dimension_numbers<[1], [0], [0], [1], [0, 0, 1, 1], [], []>} : vector<256x8xf32>, vector<8x128xf32>, vector<256x128xf32> -> vector<256x128xf32>
    %36 = arith.addf %32, %35 : vector<256x128xf32>
    %c0_28 = arith.constant 0 : index
    %c0_29 = arith.constant 0 : index
    %37 = vector.load %arg4[%c0_28, %c0_29] : memref<1x128xf32, #tpu.memory_space<vmem>>, vector<1x128xf32>
    %38 = vector.broadcast %37 : vector<1x128xf32> to vector<256x128xf32>
    %39 = arith.addf %36, %38 : vector<256x128xf32>
    %cst_30 = arith.constant 0.000000e+00 : f32
    %40 = vector.broadcast %cst_30 : f32 to vector<256x128xf32>
    %41 = arith.maximumf %39, %40 : vector<256x128xf32>
    %42 = arith.truncf %41 : vector<256x128xf32> to vector<256x128xbf16>
    %c0_31 = arith.constant 0 : index
    %c0_32 = arith.constant 0 : index
    %43 = vector.load %arg5[%c0_31, %c0_32] : memref<128x128xbf16, #tpu.memory_space<vmem>>, vector<128x128xbf16>
    %cst_33 = arith.constant dense<0.000000e+00> : vector<256x128xf32>
    %44 = tpu.matmul %42, %43, %cst_33 {dimension_numbers = #tpu.dot_dimension_numbers<[1], [0], [0], [1], [0, 0, 1, 1], [], []>} : vector<256x128xbf16>, vector<128x128xbf16>, vector<256x128xf32> -> vector<256x128xf32>
    %c0_34 = arith.constant 0 : index
    %c0_35 = arith.constant 0 : index
    %45 = vector.load %arg6[%c0_34, %c0_35] : memref<1x128xf32, #tpu.memory_space<vmem>>, vector<1x128xf32>
    %46 = vector.broadcast %45 : vector<1x128xf32> to vector<256x128xf32>
    %47 = arith.addf %44, %46 : vector<256x128xf32>
    %cst_36 = arith.constant dense<0xFF800000> : vector<256xf32>
    %48 = vector.multi_reduction <maximumf>, %47, %cst_36 [1] : vector<256x128xf32> to vector<256xf32>
    %49 = vector.shape_cast %48 : vector<256xf32> to vector<256x1xf32>
    %50 = vector.broadcast %49 : vector<256x1xf32> to vector<256x128xf32>
    %51 = arith.subf %47, %50 : vector<256x128xf32>
    %52 = math.exp %51 : vector<256x128xf32>
    %cst_37 = arith.constant dense<0.000000e+00> : vector<256xf32>
    %53 = vector.multi_reduction <add>, %52, %cst_37 [1] : vector<256x128xf32> to vector<256xf32>
    %54 = vector.shape_cast %53 : vector<256xf32> to vector<256x1xf32>
    %55 = math.log %54 : vector<256x1xf32>
    %c0_38 = arith.constant 0 : index
    %c0_39 = arith.constant 0 : index
    %56 = vector.load %arg2[%c0_38, %c0_39] : memref<256x1xi32, #tpu.memory_space<vmem>>, vector<256x1xi32>
    %c0_i32 = arith.constant 0 : i32
    %57 = vector.broadcast %c0_i32 : i32 to vector<256x1xi32>
    %58 = arith.cmpi sge, %56, %57 : vector<256x1xi32>
    %59 = arith.extui %58 : vector<256x1xi1> to vector<256x1xi32>
    %60 = arith.sitofp %59 : vector<256x1xi32> to vector<256x1xf32>
    %61 = tpu.iota {dimensions = array<i32: 1>} : vector<256x128xi32>
    %62 = vector.broadcast %56 : vector<256x1xi32> to vector<256x128xi32>
    %63 = arith.cmpi eq, %61, %62 : vector<256x128xi32>
    %cst_40 = arith.constant 0.000000e+00 : f32
    %64 = vector.broadcast %cst_40 : f32 to vector<256x128xf32>
    %65 = arith.select %63, %51, %64 : vector<256x128xi1>, vector<256x128xf32>
    %cst_41 = arith.constant dense<0.000000e+00> : vector<256xf32>
    %66 = vector.multi_reduction <add>, %65, %cst_41 [1] : vector<256x128xf32> to vector<256xf32>
    %67 = vector.shape_cast %66 : vector<256xf32> to vector<256x1xf32>
    %68 = arith.subf %55, %67 : vector<256x1xf32>
    %69 = arith.mulf %68, %60 : vector<256x1xf32>
    %70 = vector.shape_cast %69 : vector<256x1xf32> to vector<1x256x1xf32>
    %cst_42 = arith.constant dense<0.000000e+00> : vector<1xf32>
    %71 = vector.multi_reduction <add>, %70, %cst_42 [1, 2] : vector<1x256x1xf32> to vector<1xf32>
    %72 = vector.shape_cast %71 : vector<1xf32> to vector<1x1x1xf32>
    %73 = vector.extract %72[0, 0, 0] : f32 from vector<1x1x1xf32>
    %cst_43 = arith.constant 0.000000e+00 : f32
    %74 = vector.broadcast %cst_43 : f32 to vector<256x128xf32>
    %75 = arith.cmpf oge, %51, %74 : vector<256x128xf32>
    %c128_i32 = arith.constant 128 : i32
    %76 = vector.broadcast %c128_i32 : i32 to vector<256x128xi32>
    %77 = arith.select %75, %61, %76 : vector<256x128xi1>, vector<256x128xi32>
    %cst_44 = arith.constant dense<2147483647> : vector<256xi32>
    %78 = vector.multi_reduction <minsi>, %77, %cst_44 [1] : vector<256x128xi32> to vector<256xi32>
    %79 = vector.shape_cast %78 : vector<256xi32> to vector<256x1xi32>
    %80 = arith.cmpi eq, %79, %56 : vector<256x1xi32>
    %81 = arith.extui %80 : vector<256x1xi1> to vector<256x1xi32>
    %82 = arith.sitofp %81 : vector<256x1xi32> to vector<256x1xf32>
    %83 = arith.mulf %82, %60 : vector<256x1xf32>
    %84 = vector.shape_cast %83 : vector<256x1xf32> to vector<1x256x1xf32>
    %cst_45 = arith.constant dense<0.000000e+00> : vector<1xf32>
    %85 = vector.multi_reduction <add>, %84, %cst_45 [1, 2] : vector<1x256x1xf32> to vector<1xf32>
    %86 = vector.shape_cast %85 : vector<1xf32> to vector<1x1x1xf32>
    %87 = vector.extract %86[0, 0, 0] : f32 from vector<1x1x1xf32>
    %88 = vector.shape_cast %60 : vector<256x1xf32> to vector<1x256x1xf32>
    %cst_46 = arith.constant dense<0.000000e+00> : vector<1xf32>
    %89 = vector.multi_reduction <add>, %88, %cst_46 [1, 2] : vector<1x256x1xf32> to vector<1xf32>
    %90 = vector.shape_cast %89 : vector<1xf32> to vector<1x1x1xf32>
    %91 = vector.extract %90[0, 0, 0] : f32 from vector<1x1x1xf32>
    %92 = vector.broadcast %73 : f32 to vector<8x128xf32>
    %93 = vector.broadcast %87 : f32 to vector<8x128xf32>
    %94 = vector.broadcast %91 : f32 to vector<8x128xf32>
    %95 = tpu.concatenate %92, %93, %94 in 0 : vector<8x128xf32>, vector<8x128xf32>, vector<8x128xf32> -> vector<24x128xf32>
    %c0_47 = arith.constant 0 : index
    %c0_48 = arith.constant 0 : index
    %96 = vector.load %arg7[%c0_47, %c0_48] : memref<24x128xf32, #tpu.memory_space<vmem>>, vector<24x128xf32>
    tpu.vector_store %arg7[%c0_47, %c0_48], %95 {strides = array<i32>} : memref<24x128xf32, #tpu.memory_space<vmem>>, vector<24x128xf32>,
    return
  }
  func.func @transform_0(%arg0: i32) -> (i32, i32) {
    %c0_i32 = arith.constant 0 : i32
    %c0_i32_0 = arith.constant 0 : i32
    return %arg0, %c0_i32 : i32, i32
  }
  func.func @transform_1(%arg0: i32) -> (i32, i32) {
    %c0_i32 = arith.constant 0 : i32
    %c0_i32_0 = arith.constant 0 : i32
    return %arg0, %c0_i32 : i32, i32
  }
  func.func @transform_2(%arg0: i32) -> (i32, i32) {
    %c0_i32 = arith.constant 0 : i32
    %c0_i32_0 = arith.constant 0 : i32
    %c0_i32_1 = arith.constant 0 : i32
    return %c0_i32, %c0_i32_0 : i32, i32
  }
  func.func @transform_3(%arg0: i32) -> (i32, i32) {
    %c0_i32 = arith.constant 0 : i32
    %c0_i32_0 = arith.constant 0 : i32
    %c0_i32_1 = arith.constant 0 : i32
    return %c0_i32, %c0_i32_0 : i32, i32
  }
  func.func @transform_4(%arg0: i32) -> (i32, i32) {
    %c0_i32 = arith.constant 0 : i32
    %c0_i32_0 = arith.constant 0 : i32
    %c0_i32_1 = arith.constant 0 : i32
    return %c0_i32, %c0_i32_0 : i32, i32
  }
  func.func @transform_5(%arg0: i32) -> (i32, i32) {
    %c0_i32 = arith.constant 0 : i32
    %c0_i32_0 = arith.constant 0 : i32
    %c0_i32_1 = arith.constant 0 : i32
    return %c0_i32, %c0_i32_0 : i32, i32
  }
  func.func @transform_6(%arg0: i32) -> (i32, i32) {
    %c0_i32 = arith.constant 0 : i32
    %c0_i32_0 = arith.constant 0 : i32
    return %arg0, %c0_i32 : i32, i32
  }
}

</mosaic_0001>

<bundles_post_ra>
// kernel: tpu_custom_call.1
= control target key start
LH: loop header
LB: loop body
LE: loop exit
PB: predicated region body
PF: predicated region fallthrough
CT: control target
= control target key end

     0   :  { %11 = vsyncpa [#allocation3], 0  ;;  %s7671_s0 = inlined_call_operand.vmem [shape: f32[888,8], index: 0, kind: input, shape index: {}]   ;;  %s7672_s1 = inlined_call_operand.vmem [shape: s32[768,1], index: 1, kind: input, shape index: {}]   ;;  %s7673_s2 = inlined_call_operand.vmem [shape: f32[72,128], index: 2, kind: input, shape index: {}]   ;;  %s7674_s3 = inlined_call_operand.vmem [shape: f32[1,128], index: 3, kind: input, shape index: {}]   ;;  %s7675_s4 = inlined_call_operand.vmem [shape: bf16[128,128], index: 4, kind: input, shape index: {}]   ;;  %s7676_s5 = inlined_call_operand.vmem [shape: f32[1,128], index: 5, kind: input, shape index: {}]   ;;  %s7677_s6 = inlined_call_operand.hbm [shape: f32[72,128], index: 6, kind: output, shape index: {}]  }
   0x1   :  { %13 = vsyncpa [#allocation3 + $0x1], 0  ;;  %s5307_s21 = smov 0   ;;  %s5309_s22 = smov 0  }
   0x2   :  { %s5311_s23 = smov 0   ;;  %s5313_s24 = smov 0  }
   0x3 LB: > { %s5328_s25 = sadd.s32 4294967295, %s5266_s24   ;;  %s4578_s26 = sadd.s32 4294967294, %s5266_s24   ;;  %s5266_s24 = sphi %s5313_s24, %s7980_s24   ;;  %s5262_s23 = sphi %s5311_s23, %s7979_s23   ;;  %s5258_s22 = sphi %s5309_s22, %s7978_s22   ;;  %s5254_s21 = sphi %s5307_s21, %s7977_s21  }
   0x4   : > { %s5332_s27 = sadd.s32 1, %s5266_s24   ;;  %s162_s28 = sadd.s32 1, %s5262_s23 }
   0x5   : > { %s159_s29 = ssub.s32 %s5266_s24, %s5332_s27  ;;  %p172_p0 = scmp.ne.s32.totalorder %s5262_s23, %s5258_s22 }
   0x6   : > { %p160_p1 = scmp.eq.s32.totalorder %s159_s29, 0  ;;  %p173_p2 = scmp.eq.s32.totalorder %s5328_s25, 2 }
   0x7   : > { %p178_p3 = scmp.ne.s32.totalorder %s5258_s22, %s5254_s21  ;;  %p179_p4 = scmp.eq.s32.totalorder %s4578_s26, 2 }
   0x8   : > { %s5343_s30 = scalar_select %p160_p1, %s5262_s23, %s162_s28  }
   0x9   : > { %p5345_p5 = por %p173_p2, %p172_p0  ;;  %p5349_p6 = por %p179_p4, %p178_p3 }
   0xa   : > { %p4581_p7 = scmp.ge.s32.totalorder %s5266_s24, 1  ;;  %p227_p8 = scmp.lt.s32.totalorder %s5266_s24, 4 }
   0xc   : > { %p228_p9 = pnand %p4581_p7, %p227_p8 }
   0xe   : > { %231 = sbr.rel (%p228_p9) target bundleno = 1575 (0x627), region = 44 }
  0x13   : > { %v340_v0 = vld [vmem:[%s7673_s2 + $0x8] sm:$0xff]  ;;  %v307_v1 = vld [vmem:[%s7673_s2] sm:$0xff]  ;;  %s262_s13 = smul.u32 37, %s5328_s25  ;;  %v792_v2 = vld [vmem:[%s7673_s2 + $0x10] sm:$0xff]  ;;  %vm341_vm0 = vcmask 64512   ;;  %s4583_s15 = sshll.u32 %s5328_s25, 5 }
  0x14   : > { %4981 = vmatpush.msra.mxu2 %v340_v0  ;;  %4982 = vmatpush.msra.mxu3 %v307_v1  ;;  %v1066_v3 = vld [vmem:[%s7673_s2 + $0x18] sm:$0xff]  ;;  %v1340_v4 = vld [vmem:[%s7673_s2 + $0x20] sm:$0xff]  ;;  %v1888_v57 = vld [vmem:[%s7673_s2 + $0x30] sm:$0xff]  ;;  %p269_p11 = scmp.lt.s32.totalorder %s4583_s15, 95  ;;  %s4980_s17 = smul.u32 24, %s5328_s25 }
  0x15   : > { %p263_p10 = scmp.lt.s32.totalorder %s262_s13, 110  ;;  %453 = vmatpush.msra.mxu0 %v340_v0  ;;  %662 = vmatpush.msra.mxu1 %v307_v1  ;;  %v2162_v58 = vld [vmem:[%s7673_s2 + $0x38] sm:$0xff]  ;;  %v2436_v63 = vld [vmem:[%s7673_s2 + $0x40] sm:$0xff]  ;;  %v1614_v0 = vld [vmem:[%s7673_s2 + $0x28] sm:$0xff] }
  0x16   : > { %904 = vmatpush.msrb.mxu2 %v792_v2  ;;  %1178 = vmatpush.msrb.mxu3 %v1066_v3  ;;  %s7984_s15 = smov (!%p269_p11, %s4583_s15), 95 }
  0x17   : > { %s7982_s13 = smov (!%p263_p10, %s262_s13), 110  ;;  %1452 = vmatpush.msrb.mxu0 %v1340_v4  ;;  %1726 = vmatpush.msrb.mxu1 %v1614_v0  ;;  %s4584_s18 = sshll.u32 %s7984_s15, 3 }
  0x18   : > { %s4582_s20 = sshll.u32 %s7982_s13, 3  ;;  %s6060_s26 = scalar_lea.vmem %s7672_s1, %s4584_s18 }
  0x19   : > { %s5374_s29 = scalar_lea.vmem %s7671_s0, %s4582_s20  ;;  %s259_s15 = sand.u32 1, %s5258_s22  }
  0x1a   : > { %v324_v5 = vld [vmem:[%s5374_s29 + $0x81] sm:$0xff]  ;;  %v325_v9 = vld [vmem:[%s5374_s29 + $0x89] sm:$0xff]  ;;  %v326_v13 = vld [vmem:[%s5374_s29 + $0x91] sm:$0xff]  ;;  %s4983_s16 = smul.u32 24, %s259_s15  ;;  %s4500_s20 = scalar_lea.hbm %s7677_s6, %s4980_s17 }
  0x1b   : > { %v291_v6 = vld [vmem:[%s5374_s29 + $0x80] sm:$0xff]  ;;  %4601 = vmatmul.msk.f32.vlgmr.msra.gmra.mxu2 %vm341_vm0, %v324_v5  ;;  %v292_v10 = vld [vmem:[%s5374_s29 + $0x88] sm:$0xff]  ;;  %v293_v14 = vld [vmem:[%s5374_s29 + $0x90] sm:$0xff]  ;;  %s4503_s9 = sshll.u32 %s4500_s20, 4  ;;  %s4489_s25 = scalar_lea.sflag [#allocation3], %s259_s15  ;;  %s4504_s9 = int_to_ptr.hbm [resolvable:$true] %s4503_s9 }
  0x1c   : > { %4633 = vmatmul.msk.f32.vlgmr.msra.gmra.mxu3 %vm341_vm0, %v291_v6  ;;  %v308_v7 = vld [vmem:[%s5374_s29 + $0x1] sm:$0xff]  ;;  %v309_v11 = vld [vmem:[%s5374_s29 + $0x9] sm:$0xff]  ;;  %v310_v15 = vld [vmem:[%s5374_s29 + $0x11] sm:$0xff]  ;;  %2000 = vmatpush.msra.mxu2 %v1888_v57  ;;  %s5218_s12 = sshra.s32 %s4504_s9, 4  ;;  %s5224_s17 = scalar_lea.hbm %s7677_s6, 72  ;;  %s5219_s12 = int_to_ptr.hbm [resolvable:$true] %s5218_s12 }
  0x1d   : > { %v275_v8 = vld [vmem:[%s5374_s29] sm:$0xff]  ;;  %4585 = vmatmul.msk.f32.vlgmr.msra.gmra.mxu0 %vm341_vm0, %v308_v7  ;;  %v276_v12 = vld [vmem:[%s5374_s29 + $0x8] sm:$0xff]  ;;  %v277_v16 = vld [vmem:[%s5374_s29 + $0x10] sm:$0xff]  ;;  %2274 = vmatpush.msra.mxu3 %v2162_v58  ;;  %s5220_s13 = scalar_lea.hbm %s5219_s12, 24  ;;  %p5225_p1 = scmp.lt.s32.totalorder %s5219_s12, %s7677_s6 }
  0x1e   : > { %4617 = vmatmul.msk.f32.vlgmr.msra.gmra.mxu1 %vm341_vm0, %v275_v8  ;;  %v327_v17 = vld [vmem:[%s5374_s29 + $0x99] sm:$0xff]  ;;  %v328_v21 = vld [vmem:[%s5374_s29 + $0xa1] sm:$0xff]  ;;  %v329_v25 = vld [vmem:[%s5374_s29 + $0xa9] sm:$0xff]  ;;  %2548 = vmatpush.msra.mxu0 %v2436_v63  ;;  %p5221_p12 = scmp.ne.s32.totalorder %s5219_s12, %s5220_s13  ;;  %p5226_p2 = scmp.lt.s32.totalorder %s5224_s17, %s5220_s13 }
  0x1f   : > { %v294_v18 = vld [vmem:[%s5374_s29 + $0x98] sm:$0xff]  ;;  %v295_v22 = vld [vmem:[%s5374_s29 + $0xa0] sm:$0xff]  ;;  %v296_v26 = vld [vmem:[%s5374_s29 + $0xa8] sm:$0xff] }
  0x20   : > { %v311_v19 = vld [vmem:[%s5374_s29 + $0x19] sm:$0xff]  ;;  %v312_v23 = vld [vmem:[%s5374_s29 + $0x21] sm:$0xff]  ;;  %v313_v27 = vld [vmem:[%s5374_s29 + $0x29] sm:$0xff]  ;;  %p5222_p13 = pnand %p5221_p12, %p5345_p5  ;;  %p5227_p3 = por %p5226_p2, %p5225_p1 }
  0x21   : > { %v278_v20 = vld [vmem:[%s5374_s29 + $0x18] sm:$0xff]  ;;  %v279_v24 = vld [vmem:[%s5374_s29 + $0x20] sm:$0xff]  ;;  %v280_v28 = vld [vmem:[%s5374_s29 + $0x28] sm:$0xff] }
  0x22   : > { %v330_v29 = vld [vmem:[%s5374_s29 + $0xb1] sm:$0xff]  ;;  %v331_v33 = vld [vmem:[%s5374_s29 + $0xb9] sm:$0xff]  ;;  %v332_v37 = vld [vmem:[%s5374_s29 + $0xc1] sm:$0xff]  ;;  %p5223_p0 = pneg %p5222_p13 }
  0x23   : > { %4602 = vmatmul.msk.f32.gmra.mxu2 %vm341_vm0, %v325_v9  ;;  %v297_v30 = vld [vmem:[%s5374_s29 + $0xb0] sm:$0xff]  ;;  %v298_v34 = vld [vmem:[%s5374_s29 + $0xb8] sm:$0xff]  ;;  %v299_v38 = vld [vmem:[%s5374_s29 + $0xc0] sm:$0xff] }
  0x24   : > { %4634 = vmatmul.msk.f32.gmra.mxu3 %vm341_vm0, %v292_v10  ;;  %v314_v31 = vld [vmem:[%s5374_s29 + $0x31] sm:$0xff]  ;;  %v315_v35 = vld [vmem:[%s5374_s29 + $0x39] sm:$0xff]  ;;  %v316_v39 = vld [vmem:[%s5374_s29 + $0x41] sm:$0xff]  ;;  %p5228_p4 = pnand %p5227_p3, %p5223_p0 }
  0x25   : > { %4586 = vmatmul.msk.f32.gmra.mxu0 %vm341_vm0, %v309_v11  ;;  %v281_v32 = vld [vmem:[%s5374_s29 + $0x30] sm:$0xff]  ;;  %v282_v36 = vld [vmem:[%s5374_s29 + $0x38] sm:$0xff]  ;;  %v283_v40 = vld [vmem:[%s5374_s29 + $0x40] sm:$0xff] }
  0x26   : > { %4618 = vmatmul.msk.f32.gmra.mxu1 %vm341_vm0, %v276_v12  ;;  %v333_v41 = vld [vmem:[%s5374_s29 + $0xc9] sm:$0xff]  ;;  %v334_v45 = vld [vmem:[%s5374_s29 + $0xd1] sm:$0xff]  ;;  %v335_v49 = vld [vmem:[%s5374_s29 + $0xd9] sm:$0xff] }
  0x27   : > { %v300_v42 = vld [vmem:[%s5374_s29 + $0xc8] sm:$0xff]  ;;  %v301_v46 = vld [vmem:[%s5374_s29 + $0xd0] sm:$0xff]  ;;  %v302_v50 = vld [vmem:[%s5374_s29 + $0xd8] sm:$0xff] }
  0x28   : > { %v317_v43 = vld [vmem:[%s5374_s29 + $0x49] sm:$0xff]  ;;  %v318_v47 = vld [vmem:[%s5374_s29 + $0x51] sm:$0xff]  ;;  %v319_v51 = vld [vmem:[%s5374_s29 + $0x59] sm:$0xff] }
  0x29   : > { %v284_v44 = vld [vmem:[%s5374_s29 + $0x48] sm:$0xff]  ;;  %v285_v48 = vld [vmem:[%s5374_s29 + $0x50] sm:$0xff]  ;;  %v286_v52 = vld [vmem:[%s5374_s29 + $0x58] sm:$0xff] }
  0x2a   : > { %v336_v53 = vld [vmem:[%s5374_s29 + $0xe1] sm:$0xff]  ;;  %v337_v59 = vld [vmem:[%s5374_s29 + $0xe9] sm:$0xff]  ;;  %v338_v1 = vld [vmem:[%s5374_s29 + $0xf1] sm:$0xff] }
  0x2b   : > { %4603 = vmatmul.msk.f32.gmra.mxu2 %vm341_vm0, %v326_v13  ;;  %v303_v54 = vld [vmem:[%s5374_s29 + $0xe0] sm:$0xff]  ;;  %v304_v60 = vld [vmem:[%s5374_s29 + $0xe8] sm:$0xff]  ;;  %v305_v2 = vld [vmem:[%s5374_s29 + $0xf0] sm:$0xff] }
  0x2c   : > { %4635 = vmatmul.msk.f32.gmra.mxu3 %vm341_vm0, %v293_v14  ;;  %v320_v55 = vld [vmem:[%s5374_s29 + $0x61] sm:$0xff]  ;;  %v321_v61 = vld [vmem:[%s5374_s29 + $0x69] sm:$0xff]  ;;  %v322_v3 = vld [vmem:[%s5374_s29 + $0x71] sm:$0xff] }
  0x2d   : > { %4587 = vmatmul.msk.f32.gmra.mxu0 %vm341_vm0, %v310_v15  ;;  %v287_v56 = vld [vmem:[%s5374_s29 + $0x60] sm:$0xff]  ;;  %v288_v62 = vld [vmem:[%s5374_s29 + $0x68] sm:$0xff]  ;;  %v289_v4 = vld [vmem:[%s5374_s29 + $0x70] sm:$0xff] }
  0x2e   : > { %4619 = vmatmul.msk.f32.gmra.mxu1 %vm341_vm0, %v277_v16  ;;  %v339_v5 = vld [vmem:[%s5374_s29 + $0xf9] sm:$0xff]  ;;  %v760_v9 = vld [vmem:[%s5374_s29 + $0x2] sm:$0xff] }
  0x2f   : > { %v306_v6 = vld [vmem:[%s5374_s29 + $0xf8] sm:$0xff]  ;;  %v5615_v63 = vld [vmem:[%s5374_s29 + $0x44] sm:$0xff] }
  0x30   : > { %v323_v7 = vld [vmem:[%s5374_s29 + $0x79] sm:$0xff] }
  0x31   : > { %v290_v8 = vld [vmem:[%s5374_s29 + $0x78] sm:$0xff] }
  0x32   : > { %v1034_v10 = vld [vmem:[%s5374_s29 + $0x12] sm:$0xff] }
  0x33   : > { %4604 = vmatmul.msk.f32.gmra.mxu2 %vm341_vm0, %v327_v17  ;;  %v1308_v13 = vld [vmem:[%s5374_s29 + $0x13] sm:$0xff] }
  0x34   : > { %4636 = vmatmul.msk.f32.gmra.mxu3 %vm341_vm0, %v294_v18  ;;  %v1582_v14 = vld [vmem:[%s5374_s29 + $0x14] sm:$0xff]  ;;  %v761_v18 = vld [vmem:[%s5374_s29 + $0xa] sm:$0xff] }
  0x35   : > { %4588 = vmatmul.msk.f32.gmra.mxu0 %vm341_vm0, %v311_v19  ;;  %v1035_v19 = vld [vmem:[%s5374_s29 + $0x1a] sm:$0xff] }
  0x36   : > { %4620 = vmatmul.msk.f32.gmra.mxu1 %vm341_vm0, %v278_v20 }
  0x3b   : > { %4605 = vmatmul.msk.f32.gmra.mxu2 %vm341_vm0, %v328_v21 }
  0x3c   : > { %4637 = vmatmul.msk.f32.gmra.mxu3 %vm341_vm0, %v295_v22  ;;  %v1309_v22 = vld [vmem:[%s5374_s29 + $0x1b] sm:$0xff] }
  0x3d   : > { %4589 = vmatmul.msk.f32.gmra.mxu0 %vm341_vm0, %v312_v23  ;;  %v1583_v23 = vld [vmem:[%s5374_s29 + $0x1c] sm:$0xff] }
  0x3e   : > { %4621 = vmatmul.msk.f32.gmra.mxu1 %vm341_vm0, %v279_v24 }
  0x43   : > { %4606 = vmatmul.msk.f32.gmra.mxu2 %vm341_vm0, %v329_v25 }
  0x44   : > { %4638 = vmatmul.msk.f32.gmra.mxu3 %vm341_vm0, %v296_v26 }
  0x45   : > { %4590 = vmatmul.msk.f32.gmra.mxu0 %vm341_vm0, %v313_v27  ;;  %v1036_v27 = vld [vmem:[%s5374_s29 + $0x22] sm:$0xff] }
  0x46   : > { %4622 = vmatmul.msk.f32.gmra.mxu1 %vm341_vm0, %v280_v28 }
  0x4b   : > { %4607 = vmatmul.msk.f32.gmra.mxu2 %vm341_vm0, %v330_v29 }
  0x4c   : > { %4639 = vmatmul.msk.f32.gmra.mxu3 %vm341_vm0, %v297_v30  ;;  %v1310_v30 = vld [vmem:[%s5374_s29 + $0x23] sm:$0xff] }
  0x4d   : > { %4591 = vmatmul.msk.f32.gmra.mxu0 %vm341_vm0, %v314_v31  ;;  %v5551_v31 = vld [vmem:[%s5374_s29 + $0x24] sm:$0xff] }
  0x4e   : > { %4623 = vmatmul.msk.f32.gmra.mxu1 %vm341_vm0, %v281_v32 }
  0x53   : > { %4608 = vmatmul.msk.f32.gmra.mxu2 %vm341_vm0, %v331_v33 }
  0x54   : > { %4640 = vmatmul.msk.f32.gmra.mxu3 %vm341_vm0, %v298_v34 }
  0x55   : > { %4592 = vmatmul.msk.f32.gmra.mxu0 %vm341_vm0, %v315_v35  ;;  %v1037_v35 = vld [vmem:[%s5374_s29 + $0x2a] sm:$0xff] }
  0x56   : > { %4624 = vmatmul.msk.f32.gmra.mxu1 %vm341_vm0, %v282_v36 }
  0x5b   : > { %4609 = vmatmul.msk.f32.gmra.mxu2 %vm341_vm0, %v332_v37 }
  0x5c   : > { %4641 = vmatmul.msk.f32.gmra.mxu3 %vm341_vm0, %v299_v38  ;;  %v1311_v38 = vld [vmem:[%s5374_s29 + $0x2b] sm:$0xff] }
  0x5d   : > { %4593 = vmatmul.msk.f32.gmra.mxu0 %vm341_vm0, %v316_v39  ;;  %v5567_v39 = vld [vmem:[%s5374_s29 + $0x2c] sm:$0xff] }
  0x5e   : > { %4625 = vmatmul.msk.f32.gmra.mxu1 %vm341_vm0, %v283_v40 }
  0x63   : > { %4610 = vmatmul.msk.f32.gmra.mxu2 %vm341_vm0, %v333_v41 }
  0x64   : > { %4642 = vmatmul.msk.f32.gmra.mxu3 %vm341_vm0, %v300_v42 }
  0x65   : > { %4594 = vmatmul.msk.f32.gmra.mxu0 %vm341_vm0, %v317_v43  ;;  %v1038_v43 = vld [vmem:[%s5374_s29 + $0x32] sm:$0xff] }
  0x66   : > { %4626 = vmatmul.msk.f32.gmra.mxu1 %vm341_vm0, %v284_v44 }
  0x6b   : > { %4611 = vmatmul.msk.f32.gmra.mxu2 %vm341_vm0, %v334_v45 }
  0x6c   : > { %4643 = vmatmul.msk.f32.gmra.mxu3 %vm341_vm0, %v301_v46  ;;  %v1312_v46 = vld [vmem:[%s5374_s29 + $0x33] sm:$0xff] }
  0x6d   : > { %4595 = vmatmul.msk.f32.gmra.mxu0 %vm341_vm0, %v318_v47  ;;  %v5583_v47 = vld [vmem:[%s5374_s29 + $0x34] sm:$0xff] }
  0x6e   : > { %4627 = vmatmul.msk.f32.gmra.mxu1 %vm341_vm0, %v285_v48 }
  0x73   : > { %4612 = vmatmul.msk.f32.gmra.mxu2 %vm341_vm0, %v335_v49 }
  0x74   : > { %4644 = vmatmul.msk.f32.gmra.mxu3 %vm341_vm0, %v302_v50 }
  0x75   : > { %4596 = vmatmul.msk.f32.gmra.mxu0 %vm341_vm0, %v319_v51  ;;  %v1039_v51 = vld [vmem:[%s5374_s29 + $0x3a] sm:$0xff] }
  0x76   : > { %4628 = vmatmul.msk.f32.gmra.mxu1 %vm341_vm0, %v286_v52 }
  0x7b   : > { %4613 = vmatmul.msk.f32.gmra.mxu2 %vm341_vm0, %v336_v53 }
  0x7c   : > { %4645 = vmatmul.msk.f32.gmra.mxu3 %vm341_vm0, %v303_v54  ;;  %v1313_v54 = vld [vmem:[%s5374_s29 + $0x3b] sm:$0xff] }
  0x7d   : > { %4597 = vmatmul.msk.f32.gmra.mxu0 %vm341_vm0, %v320_v55  ;;  %v5599_v55 = vld [vmem:[%s5374_s29 + $0x3c] sm:$0xff] }
  0x7e   : > { %4629 = vmatmul.msk.f32.gmra.mxu1 %vm341_vm0, %v287_v56 }
  0x83   : > { %4614 = vmatmul.msk.f32.gmra.mxu2 %vm341_vm0, %v337_v59  ;;  %v1040_v59 = vld [vmem:[%s5374_s29 + $0x42] sm:$0xff] }
  0x84   : > { %4646 = vmatmul.msk.f32.gmra.mxu3 %vm341_vm0, %v304_v60 }
  0x85   : > { %4598 = vmatmul.msk.f32.gmra.mxu0 %vm341_vm0, %v321_v61 }
  0x86   : > { %4630 = vmatmul.msk.f32.gmra.mxu1 %vm341_vm0, %v288_v62  ;;  %v1314_v62 = vld [vmem:[%s5374_s29 + $0x43] sm:$0xff] }
  0x8b   : > { %4615 = vmatmul.msk.f32.gmra.mxu2 %vm341_vm0, %v338_v1 }
  0x8c   : > { %4647 = vmatmul.msk.f32.gmra.mxu3 %vm341_vm0, %v305_v2 }
  0x8d   : > { %4599 = vmatmul.msk.f32.gmra.mxu0 %vm341_vm0, %v322_v3  ;;  %v1041_v3 = vld [vmem:[%s5374_s29 + $0x4a] sm:$0xff] }
  0x8e   : > { %4631 = vmatmul.msk.f32.gmra.mxu1 %vm341_vm0, %v289_v4 }
  0x93   : > { %4616 = vmatmul.msk.f32.gmra.mxu2 %vm341_vm0, %v339_v5 }
  0x94   : > { %4648 = vmatmul.msk.f32.gmra.mxu3 %vm341_vm0, %v306_v6  ;;  %v1315_v6 = vld [vmem:[%s5374_s29 + $0x4b] sm:$0xff] }
  0x95   : > { %4600 = vmatmul.msk.f32.gmra.mxu0 %vm341_vm0, %v323_v7  ;;  %v5631_v7 = vld [vmem:[%s5374_s29 + $0x4c] sm:$0xff] }
  0x96   : > { %4632 = vmatmul.msk.f32.gmra.mxu1 %vm341_vm0, %v290_v8 }
  0x9a   : > { %v5518_v11 = vpop.f32.mrf.mxu0 }
  0x9b   : > { %v5520_v12 = vpop.f32.mrf.mxu1  ;;  %4649 = vmatmul.msk.f32.vlgmr.msrb.gmra.mxu2 %vm341_vm0, %v760_v9 }
  0x9c   : > { %4681 = vmatmul.msk.f32.vlgmr.msrb.gmra.mxu3 %vm341_vm0, %v1034_v10 }
  0x9d   : > { %4713 = vmatmul.msk.f32.vlgmr.msrb.gmra.mxu0 %vm341_vm0, %v1308_v13  ;;  %v1042_v13 = vld [vmem:[%s5374_s29 + $0x52] sm:$0xff] }
  0x9e   : > { %4745 = vmatmul.msk.f32.vlgmr.msrb.gmra.mxu1 %vm341_vm0, %v1582_v14  ;;  %v503_v15 = vpop.f32.mrf.mxu2 }
  0x9f   : > { %v712_v16 = vpop.f32.mrf.mxu3 }
  0xa0   : > { %v5528_v17 = vadd.f32 %v712_v16, %v503_v15  ;;  %v1316_v16 = vld [vmem:[%s5374_s29 + $0x53] sm:$0xff] }
  0xa2   : > { %v5532_v20 = vpop.f32.mrf.mxu0 }
  0xa3   : > { %v5534_v21 = vpop.f32.mrf.mxu1  ;;  %4650 = vmatmul.msk.f32.gmra.mxu2 %vm341_vm0, %v761_v18  ;;  %v5647_v18 = vld [vmem:[%s5374_s29 + $0x54] sm:$0xff] }
  0xa4   : > { %4682 = vmatmul.msk.f32.gmra.mxu3 %vm341_vm0, %v1035_v19 }
  0xa5   : > { %4714 = vmatmul.msk.f32.gmra.mxu0 %vm341_vm0, %v1309_v22 }
  0xa6   : > { %4746 = vmatmul.msk.f32.gmra.mxu1 %vm341_vm0, %v1583_v23  ;;  %v506_v24 = vpop.f32.mrf.mxu2 }
  0xa7   : > { %v715_v25 = vpop.f32.mrf.mxu3 }
  0xa8   : > { %v5542_v26 = vadd.f32 %v715_v25, %v506_v24  ;;  %v1043_v24 = vld [vmem:[%s5374_s29 + $0x5a] sm:$0xff] }
  0xaa   : > { %v5545_v28 = vpop.f32.mrf.mxu0 }
  0xab   : > { %v5547_v29 = vpop.f32.mrf.mxu1  ;;  %4651 = vmatmul.msk.f32.gmra.mxu2 %vm341_vm0, %v1034_v10 }
  0xac   : > { %4683 = vmatmul.msk.f32.gmra.mxu3 %vm341_vm0, %v1036_v27 }
  0xad   : > { %4715 = vmatmul.msk.f32.gmra.mxu0 %vm341_vm0, %v1310_v30  ;;  %v1317_v30 = vld [vmem:[%s5374_s29 + $0x5b] sm:$0xff] }
  0xae   : > { %4747 = vmatmul.msk.f32.gmra.mxu1 %vm341_vm0, %v5551_v31  ;;  %v509_v32 = vpop.f32.mrf.mxu2 }
  0xaf   : > { %v718_v33 = vpop.f32.mrf.mxu3 }
  0xb0   : > { %v5558_v34 = vadd.f32 %v718_v33, %v509_v32  ;;  %v5663_v32 = vld [vmem:[%s5374_s29 + $0x5c] sm:$0xff] }
  0xb2   : > { %v5561_v36 = vpop.f32.mrf.mxu0 }
  0xb3   : > { %v5563_v37 = vpop.f32.mrf.mxu1  ;;  %4652 = vmatmul.msk.f32.gmra.mxu2 %vm341_vm0, %v1035_v19 }
  0xb4   : > { %4684 = vmatmul.msk.f32.gmra.mxu3 %vm341_vm0, %v1037_v35 }
  0xb5   : > { %4716 = vmatmul.msk.f32.gmra.mxu0 %vm341_vm0, %v1311_v38 }
  0xb6   : > { %4748 = vmatmul.msk.f32.gmra.mxu1 %vm341_vm0, %v5567_v39  ;;  %v512_v40 = vpop.f32.mrf.mxu2 }
  0xb7   : > { %v721_v41 = vpop.f32.mrf.mxu3 }
  0xb8   : > { %v5574_v42 = vadd.f32 %v721_v41, %v512_v40  ;;  %v1044_v40 = vld [vmem:[%s5374_s29 + $0x62] sm:$0xff] }
  0xba   : > { %v5577_v44 = vpop.f32.mrf.mxu0 }
  0xbb   : > { %v5579_v45 = vpop.f32.mrf.mxu1  ;;  %4653 = vmatmul.msk.f32.gmra.mxu2 %vm341_vm0, %v1036_v27 }
  0xbc   : > { %4685 = vmatmul.msk.f32.gmra.mxu3 %vm341_vm0, %v1038_v43 }
  0xbd   : > { %4717 = vmatmul.msk.f32.gmra.mxu0 %vm341_vm0, %v1312_v46  ;;  %v1318_v46 = vld [vmem:[%s5374_s29 + $0x63] sm:$0xff] }
  0xbe   : > { %4749 = vmatmul.msk.f32.gmra.mxu1 %vm341_vm0, %v5583_v47  ;;  %v515_v48 = vpop.f32.mrf.mxu2 }
  0xbf   : > { %v724_v49 = vpop.f32.mrf.mxu3 }
  0xc0   : > { %v5590_v50 = vadd.f32 %v724_v49, %v515_v48  ;;  %v5679_v48 = vld [vmem:[%s5374_s29 + $0x64] sm:$0xff] }
  0xc1   : > { %7781 = vst [vmem:[#allocation8_spill] sm:$0xff] %v5679_v48 }
  0xc2   : > { %v5593_v52 = vpop.f32.mrf.mxu0 }
  0xc3   : > { %v5595_v53 = vpop.f32.mrf.mxu1  ;;  %4654 = vmatmul.msk.f32.gmra.mxu2 %vm341_vm0, %v1037_v35 }
  0xc4   : > { %4686 = vmatmul.msk.f32.gmra.mxu3 %vm341_vm0, %v1039_v51 }
  0xc5   : > { %4718 = vmatmul.msk.f32.gmra.mxu0 %vm341_vm0, %v1313_v54 }
  0xc6   : > { %4750 = vmatmul.msk.f32.gmra.mxu1 %vm341_vm0, %v5599_v55  ;;  %v518_v56 = vpop.f32.mrf.mxu2 }
  0xc7   : > { %v727_v57 = vpop.f32.mrf.mxu3 }
  0xc8   : > { %v5606_v58 = vadd.f32 %v727_v57, %v518_v56  ;;  %v1045_v56 = vld [vmem:[%s5374_s29 + $0x6a] sm:$0xff] }
  0xca   : > { %v5609_v60 = vpop.f32.mrf.mxu0 }
  0xcb   : > { %v5611_v61 = vpop.f32.mrf.mxu1  ;;  %4655 = vmatmul.msk.f32.gmra.mxu2 %vm341_vm0, %v1038_v43 }
  0xcc   : > { %4687 = vmatmul.msk.f32.gmra.mxu3 %vm341_vm0, %v1040_v59 }
  0xcd   : > { %4719 = vmatmul.msk.f32.gmra.mxu0 %vm341_vm0, %v1314_v62  ;;  %v1319_v62 = vld [vmem:[%s5374_s29 + $0x6b] sm:$0xff] }
  0xce   : > { %4751 = vmatmul.msk.f32.gmra.mxu1 %vm341_vm0, %v5615_v63  ;;  %v521_v0 = vpop.f32.mrf.mxu2 }
  0xcf   : > { %v730_v1 = vpop.f32.mrf.mxu3 }
  0xd0   : > { %v5622_v2 = vadd.f32 %v730_v1, %v521_v0  ;;  %v5695_v0 = vld [vmem:[%s5374_s29 + $0x6c] sm:$0xff] }
  0xd1   : > { %7783 = vst [vmem:[#allocation10_spill] sm:$0xff] %v5695_v0 }
  0xd2   : > { %v5625_v4 = vpop.f32.mrf.mxu0 }
  0xd3   : > { %v5627_v5 = vpop.f32.mrf.mxu1  ;;  %4656 = vmatmul.msk.f32.gmra.mxu2 %vm341_vm0, %v1039_v51 }
  0xd4   : > { %4688 = vmatmul.msk.f32.gmra.mxu3 %vm341_vm0, %v1041_v3 }
  0xd5   : > { %4720 = vmatmul.msk.f32.gmra.mxu0 %vm341_vm0, %v1315_v6 }
  0xd6   : > { %4752 = vmatmul.msk.f32.gmra.mxu1 %vm341_vm0, %v5631_v7  ;;  %v524_v8 = vpop.f32.mrf.mxu2 }
  0xd7   : > { %v733_v9 = vpop.f32.mrf.mxu3 }
  0xd8   : > { %v5638_v10 = vadd.f32 %v733_v9, %v524_v8  ;;  %v1046_v8 = vld [vmem:[%s5374_s29 + $0x72] sm:$0xff] }
  0xda   : > { %7778 = vst [vmem:[#allocation5_spill] sm:$0xff] %v5638_v10  ;;  %v5641_v14 = vpop.f32.mrf.mxu0  ;;  %v1600_v10 = vld [vmem:[%s5374_s29 + $0xa4] sm:$0xff] }
  0xdb   : > { %v5643_v15 = vpop.f32.mrf.mxu1  ;;  %4657 = vmatmul.msk.f32.gmra.mxu2 %vm341_vm0, %v1040_v59 }
  0xdc   : > { %4689 = vmatmul.msk.f32.gmra.mxu3 %vm341_vm0, %v1042_v13 }
  0xdd   : > { %4721 = vmatmul.msk.f32.gmra.mxu0 %vm341_vm0, %v1316_v16  ;;  %v1320_v16 = vld [vmem:[%s5374_s29 + $0x73] sm:$0xff] }
  0xde   : > { %4753 = vmatmul.msk.f32.gmra.mxu1 %vm341_vm0, %v5647_v18  ;;  %v527_v19 = vpop.f32.mrf.mxu2 }
  0xdf   : > { %v736_v22 = vpop.f32.mrf.mxu3 }
  0xe0   : > { %v5654_v23 = vadd.f32 %v736_v22, %v527_v19  ;;  %v5711_v19 = vld [vmem:[%s5374_s29 + $0x74] sm:$0xff] }
  0xe1   : > { %7785 = vst [vmem:[#allocation12_spill] sm:$0xff] %v5711_v19 }
  0xe2   : > { %7779 = vst [vmem:[#allocation6_spill] sm:$0xff] %v5654_v23  ;;  %v5657_v25 = vpop.f32.mrf.mxu0 }
  0xe3   : > { %v5659_v27 = vpop.f32.mrf.mxu1  ;;  %4658 = vmatmul.msk.f32.gmra.mxu2 %vm341_vm0, %v1041_v3 }
  0xe4   : > { %4690 = vmatmul.msk.f32.gmra.mxu3 %vm341_vm0, %v1043_v24 }
  0xe5   : > { %4722 = vmatmul.msk.f32.gmra.mxu0 %vm341_vm0, %v1317_v30 }
  0xe6   : > { %4754 = vmatmul.msk.f32.gmra.mxu1 %vm341_vm0, %v5663_v32  ;;  %v530_v33 = vpop.f32.mrf.mxu2 }
  0xe7   : > { %v739_v35 = vpop.f32.mrf.mxu3 }
  0xe8   : > { %v5670_v38 = vadd.f32 %v739_v35, %v530_v33  ;;  %v1047_v33 = vld [vmem:[%s5374_s29 + $0x7a] sm:$0xff] }
  0xea   : > { %7780 = vst [vmem:[#allocation7_spill] sm:$0xff] %v5670_v38  ;;  %v5673_v41 = vpop.f32.mrf.mxu0  ;;  %v5774_v38 = vld [vmem:[%s5374_s29 + $0x94] sm:$0xff] }
  0xeb   : > { %v5675_v43 = vpop.f32.mrf.mxu1  ;;  %4659 = vmatmul.msk.f32.gmra.mxu2 %vm341_vm0, %v1042_v13  ;;  %7793 = vst [vmem:[#allocation20_spill] sm:$0xff] %v5774_v38 }
  0xec   : > { %4691 = vmatmul.msk.f32.gmra.mxu3 %vm341_vm0, %v1044_v40 }
  0xed   : > { %4723 = vmatmul.msk.f32.gmra.mxu0 %vm341_vm0, %v1318_v46 }
  0xee   : > { %4755 = vmatmul.msk.f32.gmra.mxu1 %vm341_vm0, %v5679_v48  ;;  %v533_v49 = vpop.f32.mrf.mxu2  ;;  %v1325_v48 = vld [vmem:[%s5374_s29 + $0x9b] sm:$0xff] }
  0xef   : > { %v742_v51 = vpop.f32.mrf.mxu3 }
  0xf0   : > { %v5686_v54 = vadd.f32 %v742_v51, %v533_v49  ;;  %v5727_v49 = vld [vmem:[%s5374_s29 + $0x7c] sm:$0xff] }
  0xf1   : > { %7787 = vst [vmem:[#allocation14_spill] sm:$0xff] %v5727_v49 }
  0xf2   : > { %7782 = vst [vmem:[#allocation9_spill] sm:$0xff] %v5686_v54  ;;  %v5689_v57 = vpop.f32.mrf.mxu0 }
  0xf3   : > { %v5691_v59 = vpop.f32.mrf.mxu1  ;;  %4660 = vmatmul.msk.f32.gmra.mxu2 %vm341_vm0, %v1043_v24 }
  0xf4   : > { %4692 = vmatmul.msk.f32.gmra.mxu3 %vm341_vm0, %v1045_v56 }
  0xf5   : > { %4724 = vmatmul.msk.f32.gmra.mxu0 %vm341_vm0, %v1319_v62 }
  0xf6   : > { %4756 = vmatmul.msk.f32.gmra.mxu1 %vm341_vm0, %v5695_v0  ;;  %v536_v1 = vpop.f32.mrf.mxu2 }
  0xf7   : > { %v745_v3 = vpop.f32.mrf.mxu3 }
  0xf8   : > { %v5702_v6 = vadd.f32 %v745_v3, %v536_v1  ;;  %v1048_v3 = vld [vmem:[%s5374_s29 + $0x82] sm:$0xff] }
  0xfa   : > { %7784 = vst [vmem:[#allocation11_spill] sm:$0xff] %v5702_v6  ;;  %v5705_v9 = vpop.f32.mrf.mxu0 }
  0xfb   : > { %v5707_v13 = vpop.f32.mrf.mxu1  ;;  %4661 = vmatmul.msk.f32.gmra.mxu2 %vm341_vm0, %v1044_v40  ;;  %v1321_v40 = vld [vmem:[%s5374_s29 + $0x7b] sm:$0xff] }
  0xfc   : > { %4693 = vmatmul.msk.f32.gmra.mxu3 %vm341_vm0, %v1046_v8 }
  0xfd   : > { %4725 = vmatmul.msk.f32.gmra.mxu0 %vm341_vm0, %v1320_v16 }
  0xfe   : > { %4757 = vmatmul.msk.f32.gmra.mxu1 %vm341_vm0, %v5711_v19  ;;  %v539_v22 = vpop.f32.mrf.mxu2  ;;  %v1324_v19 = vld [vmem:[%s5374_s29 + $0x93] sm:$0xff] }
  0xff   : > { %v748_v24 = vpop.f32.mrf.mxu3 }
 0x100   : > { %v5718_v30 = vadd.f32 %v748_v24, %v539_v22  ;;  %v5743_v24 = vld [vmem:[%s5374_s29 + $0x84] sm:$0xff] }
 0x101   : > { %7789 = vst [vmem:[#allocation16_spill] sm:$0xff] %v5743_v24 }
 0x102   : > { %7786 = vst [vmem:[#allocation13_spill] sm:$0xff] %v5718_v30  ;;  %v5721_v35 = vpop.f32.mrf.mxu0 }
 0x103   : > { %v5723_v46 = vpop.f32.mrf.mxu1  ;;  %4662 = vmatmul.msk.f32.gmra.mxu2 %vm341_vm0, %v1045_v56  ;;  %v1322_v56 = vld [vmem:[%s5374_s29 + $0x83] sm:$0xff] }
 0x104   : > { %4694 = vmatmul.msk.f32.gmra.mxu3 %vm341_vm0, %v1047_v33 }
 0x105   : > { %4726 = vmatmul.msk.f32.gmra.mxu0 %vm341_vm0, %v1321_v40 }
 0x106   : > { %4758 = vmatmul.msk.f32.gmra.mxu1 %vm341_vm0, %v5727_v49  ;;  %v542_v51 = vpop.f32.mrf.mxu2  ;;  %v5759_v49 = vld [vmem:[%s5374_s29 + $0x8c] sm:$0xff] }
 0x107   : > { %v751_v62 = vpop.f32.mrf.mxu3  ;;  %7791 = vst [vmem:[#allocation18_spill] sm:$0xff] %v5759_v49 }
 0x108   : > { %v5734_v1 = vadd.f32 %v751_v62, %v542_v51 }
 0x10a   : > { %7788 = vst [vmem:[#allocation15_spill] sm:$0xff] %v5734_v1  ;;  %v5737_v16 = vpop.f32.mrf.mxu0  ;;  %v1049_v1 = vld [vmem:[%s5374_s29 + $0x8a] sm:$0xff] }
 0x10b   : > { %v5739_v22 = vpop.f32.mrf.mxu1  ;;  %4663 = vmatmul.msk.f32.gmra.mxu2 %vm341_vm0, %v1046_v8  ;;  %v1323_v8 = vld [vmem:[%s5374_s29 + $0x8b] sm:$0xff] }
 0x10c   : > { %4695 = vmatmul.msk.f32.gmra.mxu3 %vm341_vm0, %v1048_v3 }
 0x10d   : > { %4727 = vmatmul.msk.f32.gmra.mxu0 %vm341_vm0, %v1322_v56  ;;  %v4979_v56 = vld [vmem:[%s7675_s4 + $0x38] sm:$0xff] }
 0x10e   : > { %4759 = vmatmul.msk.f32.gmra.mxu1 %vm341_vm0, %v5743_v24  ;;  %v545_v40 = vpop.f32.mrf.mxu2  ;;  %v1050_v24 = vld [vmem:[%s5374_s29 + $0x92] sm:$0xff] }
 0x10f   : > { %v754_v51 = vpop.f32.mrf.mxu3  ;;  %2830 = vmatpush.bf16.msra.mxu1 %v4979_v56 }
 0x110   : > { %v5750_v62 = vadd.f32 %v754_v51, %v545_v40 }
 0x112   : > { %7790 = vst [vmem:[#allocation17_spill] sm:$0xff] %v5750_v62  ;;  %v5753_v30 = vpop.f32.mrf.mxu0 }
 0x113   : > { %v5755_v6 = vpop.f32.mrf.mxu1  ;;  %4664 = vmatmul.msk.f32.gmra.mxu2 %vm341_vm0, %v1047_v33 }
 0x114   : > { %4696 = vmatmul.msk.f32.gmra.mxu3 %vm341_vm0, %v1049_v1 }
 0x115   : > { %4728 = vmatmul.msk.f32.gmra.mxu0 %vm341_vm0, %v1323_v8  ;;  %v665_v8 = vadd.f32 %v5520_v12, %v5518_v11  ;;  %v668_v11 = vadd.f32 %v5534_v21, %v5532_v20  ;;  %v671_v20 = vadd.f32 %v5547_v29, %v5545_v28  ;;  %v4978_v28 = vld [vmem:[%s7675_s4 + $0x30] sm:$0xff]  ;;  %v674_v29 = vadd.f32 %v5563_v37, %v5561_v36 }
 0x116   : > { %4760 = vmatmul.msk.f32.gmra.mxu1 %vm341_vm0, %v5759_v49  ;;  %v548_v40 = vpop.f32.mrf.mxu2  ;;  %v677_v36 = vadd.f32 %v5579_v45, %v5577_v44  ;;  %v680_v44 = vadd.f32 %v5595_v53, %v5593_v52  ;;  %v683_v52 = vadd.f32 %v5611_v61, %v5609_v60  ;;  %v4977_v60 = vld [vmem:[%s7675_s4 + $0x28] sm:$0xff]  ;;  %v686_v61 = vadd.f32 %v5627_v5, %v5625_v4 }
 0x117   : > { %v757_v51 = vpop.f32.mrf.mxu3  ;;  %2831 = vmatpush.bf16.msra.mxu1 %v4978_v28  ;;  %v689_v4 = vadd.f32 %v5643_v15, %v5641_v14  ;;  %v692_v14 = vadd.f32 %v5659_v27, %v5657_v25  ;;  %v695_v25 = vadd.f32 %v5675_v43, %v5673_v41  ;;  %v4976_v41 = vld [vmem:[%s7675_s4 + $0x20] sm:$0xff]  ;;  %v698_v43 = vadd.f32 %v5691_v59, %v5689_v57 }
 0x118   : > { %v5769_v62 = vadd.f32 %v757_v51, %v548_v40  ;;  %v701_v57 = vadd.f32 %v5707_v13, %v5705_v9  ;;  %v704_v9 = vadd.f32 %v5723_v46, %v5721_v35  ;;  %v707_v35 = vadd.f32 %v5739_v22, %v5737_v16  ;;  %v4975_v16 = vld [vmem:[%s7675_s4 + $0x18] sm:$0xff] }
 0x119   : > { %v710_v22 = vadd.f32 %v5755_v6, %v5753_v30 }
 0x11a   : > { %7792 = vst [vmem:[#allocation19_spill] sm:$0xff] %v5769_v62  ;;  %v1454_v54 = vpop.f32.mrf.mxu0  ;;  %v1051_v62 = vld [vmem:[%s5374_s29 + $0x9a] sm:$0xff] }
 0x11b   : > { %v1728_v33 = vpop.f32.mrf.mxu1  ;;  %4665 = vmatmul.msk.f32.gmra.mxu2 %vm341_vm0, %v1048_v3  ;;  %v5786_v3 = vld [vmem:[%s5374_s29 + $0x9c] sm:$0xff]  ;;  %2832 = vmatpush.bf16.msra.mxu1 %v4977_v60 }
 0x11c   : > { %4697 = vmatmul.msk.f32.gmra.mxu3 %vm341_vm0, %v1050_v24 }
 0x11d   : > { %4729 = vmatmul.msk.f32.gmra.mxu0 %vm341_vm0, %v1324_v19 }
 0x11e   : > { %4761 = vmatmul.msk.f32.gmra.mxu1 %vm341_vm0, %v5774_v38  ;;  %v906_v56 = vpop.f32.mrf.mxu2  ;;  %v1326_v38 = vld [vmem:[%s5374_s29 + $0xa3] sm:$0xff] }
 0x11f   : > { %v1180_v40 = vpop.f32.mrf.mxu3  ;;  %v1002_v51 = vadd.f32 %v906_v56, %v665_v8  ;;  %2833 = vmatpush.bf16.msra.mxu1 %v4976_v41 }
 0x121   : > { %v1276_v49 = vadd.f32 %v1180_v40, %v1002_v51  ;;  %v1052_v51 = vld [vmem:[%s5374_s29 + $0xa2] sm:$0xff] }
 0x122   : > { %v1457_v0 = vpop.f32.mrf.mxu0 }
 0x123   : > { %v1731_v23 = vpop.f32.mrf.mxu1  ;;  %v1550_v19 = vadd.f32 %v1454_v54, %v1276_v49  ;;  %4666 = vmatmul.msk.f32.gmra.mxu2 %vm341_vm0, %v1049_v1  ;;  %2834 = vmatpush.bf16.msra.mxu1 %v4975_v16 }
 0x124   : > { %4698 = vmatmul.msk.f32.gmra.mxu3 %vm341_vm0, %v1051_v62 }
 0x125   : > { %4730 = vmatmul.msk.f32.gmra.mxu0 %vm341_vm0, %v1325_v48  ;;  %v5795_v12 = vadd.f32 %v1728_v33, %v1550_v19 }
 0x126   : > { %4762 = vmatmul.msk.f32.gmra.mxu1 %vm341_vm0, %v5786_v3  ;;  %v909_v8 = vpop.f32.mrf.mxu2 }
 0x127   : > { %7794 = vst [vmem:[#allocation21_spill] sm:$0xff] %v5795_v12  ;;  %v1183_v56 = vpop.f32.mrf.mxu3  ;;  %v1003_v40 = vadd.f32 %v909_v8, %v668_v11  ;;  %v1053_v8 = vld [vmem:[%s5374_s29 + $0xaa] sm:$0xff] }
 0x129   : > { %v1277_v54 = vadd.f32 %v1183_v56, %v1003_v40 }
 0x12a   : > { %v1460_v49 = vpop.f32.mrf.mxu0 }
 0x12b   : > { %v1734_v1 = vpop.f32.mrf.mxu1  ;;  %v1551_v48 = vadd.f32 %v1457_v0, %v1277_v54  ;;  %4667 = vmatmul.msk.f32.gmra.mxu2 %vm341_vm0, %v1050_v24  ;;  %v1327_v24 = vld [vmem:[%s5374_s29 + $0xab] sm:$0xff] }
 0x12c   : > { %4699 = vmatmul.msk.f32.gmra.mxu3 %vm341_vm0, %v1052_v51  ;;  %v1601_v54 = vld [vmem:[%s5374_s29 + $0xac] sm:$0xff] }
 0x12d   : > { %4731 = vmatmul.msk.f32.gmra.mxu0 %vm341_vm0, %v1326_v38  ;;  %v5806_v21 = vadd.f32 %v1731_v23, %v1551_v48 }
 0x12e   : > { %4763 = vmatmul.msk.f32.gmra.mxu1 %vm341_vm0, %v1600_v10  ;;  %v912_v33 = vpop.f32.mrf.mxu2 }
 0x12f   : > { %v1186_v19 = vpop.f32.mrf.mxu3  ;;  %v1004_v11 = vadd.f32 %v912_v33, %v671_v20 }
 0x131   : > { %v1278_v56 = vadd.f32 %v1186_v19, %v1004_v11  ;;  %v1328_v19 = vld [vmem:[%s5374_s29 + $0xb3] sm:$0xff] }
 0x132   : > { %v1463_v40 = vpop.f32.mrf.mxu0  ;;  %v1602_v11 = vld [vmem:[%s5374_s29 + $0xb4] sm:$0xff] }
 0x133   : > { %v1737_v0 = vpop.f32.mrf.mxu1  ;;  %v1552_v12 = vadd.f32 %v1460_v49, %v1278_v56  ;;  %4668 = vmatmul.msk.f32.gmra.mxu2 %vm341_vm0, %v1051_v62  ;;  %v1054_v49 = vld [vmem:[%s5374_s29 + $0xb2] sm:$0xff] }
 0x134   : > { %4700 = vmatmul.msk.f32.gmra.mxu3 %vm341_vm0, %v1053_v8 }
 0x135   : > { %4732 = vmatmul.msk.f32.gmra.mxu0 %vm341_vm0, %v1327_v24  ;;  %v5820_v10 = vadd.f32 %v1734_v1, %v1552_v12 }
 0x136   : > { %4764 = vmatmul.msk.f32.gmra.mxu1 %vm341_vm0, %v1601_v54  ;;  %v915_v23 = vpop.f32.mrf.mxu2  ;;  %v1055_v54 = vld [vmem:[%s5374_s29 + $0xba] sm:$0xff] }
 0x137   : > { %v1189_v38 = vpop.f32.mrf.mxu3  ;;  %v1005_v62 = vadd.f32 %v915_v23, %v674_v29  ;;  %v1603_v23 = vld [vmem:[%s5374_s29 + $0xbc] sm:$0xff] }
 0x139   : > { %v1279_v48 = vadd.f32 %v1189_v38, %v1005_v62 }
 0x13a   : > { %v1466_v20 = vpop.f32.mrf.mxu0 }
 0x13b   : > { %v1740_v33 = vpop.f32.mrf.mxu1  ;;  %v1553_v56 = vadd.f32 %v1463_v40, %v1279_v48  ;;  %4669 = vmatmul.msk.f32.gmra.mxu2 %vm341_vm0, %v1052_v51  ;;  %v1329_v51 = vld [vmem:[%s5374_s29 + $0xbb] sm:$0xff] }
 0x13c   : > { %4701 = vmatmul.msk.f32.gmra.mxu3 %vm341_vm0, %v1054_v49 }
 0x13d   : > { %4733 = vmatmul.msk.f32.gmra.mxu0 %vm341_vm0, %v1328_v19  ;;  %v5831_v37 = vadd.f32 %v1737_v0, %v1553_v56  ;;  %v1056_v19 = vld [vmem:[%s5374_s29 + $0xc2] sm:$0xff] }
 0x13e   : > { %4765 = vmatmul.msk.f32.gmra.mxu1 %vm341_vm0, %v1602_v11  ;;  %v918_v12 = vpop.f32.mrf.mxu2 }
 0x13f   : > { %v1192_v1 = vpop.f32.mrf.mxu3  ;;  %v1006_v24 = vadd.f32 %v918_v12, %v677_v36  ;;  %v1604_v36 = vld [vmem:[%s5374_s29 + $0xc4] sm:$0xff] }
 0x141   : > { %v1280_v28 = vadd.f32 %v1192_v1, %v1006_v24 }
 0x142   : > { %v1469_v40 = vpop.f32.mrf.mxu0 }
 0x143   : > { %v1743_v29 = vpop.f32.mrf.mxu1  ;;  %v1554_v38 = vadd.f32 %v1466_v20, %v1280_v28  ;;  %4670 = vmatmul.msk.f32.gmra.mxu2 %vm341_vm0, %v1053_v8  ;;  %v1330_v8 = vld [vmem:[%s5374_s29 + $0xc3] sm:$0xff] }
 0x144   : > { %4702 = vmatmul.msk.f32.gmra.mxu3 %vm341_vm0, %v1055_v54  ;;  %v1057_v28 = vld [vmem:[%s5374_s29 + $0xca] sm:$0xff] }
 0x145   : > { %4734 = vmatmul.msk.f32.gmra.mxu0 %vm341_vm0, %v1329_v51  ;;  %v5842_v45 = vadd.f32 %v1740_v33, %v1554_v38  ;;  %v1605_v38 = vld [vmem:[%s5374_s29 + $0xcc] sm:$0xff] }
 0x146   : > { %4766 = vmatmul.msk.f32.gmra.mxu1 %vm341_vm0, %v1603_v23  ;;  %v921_v0 = vpop.f32.mrf.mxu2 }
 0x147   : > { %v1195_v62 = vpop.f32.mrf.mxu3  ;;  %v1007_v48 = vadd.f32 %v921_v0, %v680_v44 }
 0x149   : > { %v1281_v11 = vadd.f32 %v1195_v62, %v1007_v48  ;;  %v1058_v48 = vld [vmem:[%s5374_s29 + $0xd2] sm:$0xff] }
 0x14a   : > { %v1472_v20 = vpop.f32.mrf.mxu0 }
 0x14b   : > { %v1746_v56 = vpop.f32.mrf.mxu1  ;;  %v1555_v12 = vadd.f32 %v1469_v40, %v1281_v11  ;;  %4671 = vmatmul.msk.f32.gmra.mxu2 %vm341_vm0, %v1054_v49  ;;  %v1331_v49 = vld [vmem:[%s5374_s29 + $0xcb] sm:$0xff] }
 0x14c   : > { %4703 = vmatmul.msk.f32.gmra.mxu3 %vm341_vm0, %v1056_v19 }
 0x14d   : > { %4735 = vmatmul.msk.f32.gmra.mxu0 %vm341_vm0, %v1330_v8  ;;  %v5853_v53 = vadd.f32 %v1743_v29, %v1555_v12  ;;  %v1606_v12 = vld [vmem:[%s5374_s29 + $0xd4] sm:$0xff] }
 0x14e   : > { %4767 = vmatmul.msk.f32.gmra.mxu1 %vm341_vm0, %v1604_v36  ;;  %v924_v33 = vpop.f32.mrf.mxu2  ;;  %v1332_v36 = vld [vmem:[%s5374_s29 + $0xd3] sm:$0xff] }
 0x14f   : > { %v1198_v1 = vpop.f32.mrf.mxu3  ;;  %v1008_v24 = vadd.f32 %v924_v33, %v683_v52 }
 0x151   : > { %v1282_v51 = vadd.f32 %v1198_v1, %v1008_v24  ;;  %v1059_v24 = vld [vmem:[%s5374_s29 + $0xda] sm:$0xff] }
 0x152   : > { %v1475_v23 = vpop.f32.mrf.mxu0 }
 0x153   : > { %v1749_v40 = vpop.f32.mrf.mxu1  ;;  %v1556_v44 = vadd.f32 %v1472_v20, %v1282_v51  ;;  %4672 = vmatmul.msk.f32.gmra.mxu2 %vm341_vm0, %v1055_v54 }
 0x154   : > { %4704 = vmatmul.msk.f32.gmra.mxu3 %vm341_vm0, %v1057_v28 }
 0x155   : > { %4736 = vmatmul.msk.f32.gmra.mxu0 %vm341_vm0, %v1331_v49  ;;  %v5867_v29 = vadd.f32 %v1746_v56, %v1556_v44 }
 0x156   : > { %4768 = vmatmul.msk.f32.gmra.mxu1 %vm341_vm0, %v1605_v38  ;;  %v927_v0 = vpop.f32.mrf.mxu2  ;;  %v1607_v38 = vld [vmem:[%s5374_s29 + $0xdc] sm:$0xff] }
 0x157   : > { %v1201_v62 = vpop.f32.mrf.mxu3  ;;  %v1009_v54 = vadd.f32 %v927_v0, %v686_v61  ;;  %v1060_v0 = vld [vmem:[%s5374_s29 + $0xe2] sm:$0xff] }
 0x159   : > { %v1283_v11 = vadd.f32 %v1201_v62, %v1009_v54 }
 0x15a   : > { %v1478_v20 = vpop.f32.mrf.mxu0 }
 0x15b   : > { %v1752_v8 = vpop.f32.mrf.mxu1  ;;  %v1557_v52 = vadd.f32 %v1475_v23, %v1283_v11  ;;  %4673 = vmatmul.msk.f32.gmra.mxu2 %vm341_vm0, %v1056_v19  ;;  %v1333_v19 = vld [vmem:[%s5374_s29 + $0xdb] sm:$0xff] }
 0x15c   : > { %4705 = vmatmul.msk.f32.gmra.mxu3 %vm341_vm0, %v1058_v48 }
 0x15d   : > { %4737 = vmatmul.msk.f32.gmra.mxu0 %vm341_vm0, %v1332_v36  ;;  %v5878_v5 = vadd.f32 %v1749_v40, %v1557_v52  ;;  %v1061_v52 = vld [vmem:[%s5374_s29 + $0xea] sm:$0xff] }
 0x15e   : > { %4769 = vmatmul.msk.f32.gmra.mxu1 %vm341_vm0, %v1606_v12  ;;  %v930_v56 = vpop.f32.mrf.mxu2 }
 0x15f   : > { %v1204_v33 = vpop.f32.mrf.mxu3  ;;  %v1010_v1 = vadd.f32 %v930_v56, %v689_v4 }
 0x161   : > { %v1284_v51 = vadd.f32 %v1204_v33, %v1010_v1  ;;  %v1335_v1 = vld [vmem:[%s5374_s29 + $0xeb] sm:$0xff] }
 0x162   : > { %v1481_v23 = vpop.f32.mrf.mxu0 }
 0x163   : > { %v5881_v49 = vpop.f32.mrf.mxu1  ;;  %v1558_v44 = vadd.f32 %v1478_v20, %v1284_v51  ;;  %4674 = vmatmul.msk.f32.gmra.mxu2 %vm341_vm0, %v1057_v28  ;;  %v1334_v28 = vld [vmem:[%s5374_s29 + $0xe3] sm:$0xff] }
 0x164   : > { %4706 = vmatmul.msk.f32.gmra.mxu3 %vm341_vm0, %v1059_v24  ;;  %v1608_v20 = vld [vmem:[%s5374_s29 + $0xe4] sm:$0xff] }
 0x165   : > { %4738 = vmatmul.msk.f32.gmra.mxu0 %vm341_vm0, %v1333_v19  ;;  %v5891_v15 = vadd.f32 %v1752_v8, %v1558_v44  ;;  %v1062_v44 = vld [vmem:[%s5374_s29 + $0xf2] sm:$0xff] }
 0x166   : > { %4770 = vmatmul.msk.f32.gmra.mxu1 %vm341_vm0, %v1607_v38  ;;  %v933_v40 = vpop.f32.mrf.mxu2 }
 0x167   : > { %v1207_v60 = vpop.f32.mrf.mxu3  ;;  %v1011_v61 = vadd.f32 %v933_v40, %v692_v14 }
 0x169   : > { %v1285_v62 = vadd.f32 %v1207_v60, %v1011_v61  ;;  %v1336_v61 = vld [vmem:[%s5374_s29 + $0xf3] sm:$0xff] }
 0x16a   : > { %v1484_v54 = vpop.f32.mrf.mxu0 }
 0x16b   : > { %v1758_v11 = vpop.f32.mrf.mxu1  ;;  %v5896_v36 = vadd.f32 %v1481_v23, %v1285_v62  ;;  %4675 = vmatmul.msk.f32.gmra.mxu2 %vm341_vm0, %v1058_v48  ;;  %v1609_v48 = vld [vmem:[%s5374_s29 + $0xec] sm:$0xff]  ;;  %v1610_v62 = vld [vmem:[%s5374_s29 + $0xf4] sm:$0xff] }
 0x16c   : > { %4707 = vmatmul.msk.f32.gmra.mxu3 %vm341_vm0, %v1060_v0 }
 0x16d   : > { %4739 = vmatmul.msk.f32.gmra.mxu0 %vm341_vm0, %v1334_v28 }
 0x16e   : > { %4771 = vmatmul.msk.f32.gmra.mxu1 %vm341_vm0, %v1608_v20  ;;  %v936_v27 = vpop.f32.mrf.mxu2  ;;  %v1063_v20 = vld [vmem:[%s5374_s29 + $0xfa] sm:$0xff] }
 0x16f   : > { %v1210_v8 = vpop.f32.mrf.mxu3  ;;  %v1012_v12 = vadd.f32 %v936_v27, %v695_v25 }
 0x171   : > { %v1286_v4 = vadd.f32 %v1210_v8, %v1012_v12  ;;  %v1337_v12 = vld [vmem:[%s5374_s29 + $0xfb] sm:$0xff] }
 0x172   : > { %v1487_v56 = vpop.f32.mrf.mxu0 }
 0x173   : > { %v5905_v33 = vpop.f32.mrf.mxu1  ;;  %v1560_v51 = vadd.f32 %v1484_v54, %v1286_v4  ;;  %4676 = vmatmul.msk.f32.gmra.mxu2 %vm341_vm0, %v1059_v24 }
 0x174   : > { %4708 = vmatmul.msk.f32.gmra.mxu3 %vm341_vm0, %v1061_v52 }
 0x175   : > { %4740 = vmatmul.msk.f32.gmra.mxu0 %vm341_vm0, %v1335_v1  ;;  %v5918_v23 = vadd.f32 %v1758_v11, %v1560_v51  ;;  %v1064_v51 = vld [vmem:[%s5374_s29 + $0x102] sm:$0xff] }
 0x176   : > { %4772 = vmatmul.msk.f32.gmra.mxu1 %vm341_vm0, %v1609_v48  ;;  %v939_v19 = vpop.f32.mrf.mxu2 }
 0x177   : > { %v1213_v38 = vpop.f32.mrf.mxu3  ;;  %v1013_v24 = vadd.f32 %v939_v19, %v698_v43 }
 0x179   : > { %v1287_v14 = vadd.f32 %v1213_v38, %v1013_v24  ;;  %v1612_v38 = vld [vmem:[%s5374_s29 + $0x104] sm:$0xff] }
 0x17a   : > { %v1490_v40 = vpop.f32.mrf.mxu0 }
 0x17b   : > { %v1764_v60 = vpop.f32.mrf.mxu1  ;;  %v5923_v54 = vadd.f32 %v1487_v56, %v1287_v14  ;;  %4677 = vmatmul.msk.f32.gmra.mxu2 %vm341_vm0, %v1060_v0  ;;  %v1611_v0 = vld [vmem:[%s5374_s29 + $0xfc] sm:$0xff] }
 0x17c   : > { %4709 = vmatmul.msk.f32.gmra.mxu3 %vm341_vm0, %v1062_v44 }
 0x17d   : > { %4741 = vmatmul.msk.f32.gmra.mxu0 %vm341_vm0, %v1336_v61 }
 0x17e   : > { %4773 = vmatmul.msk.f32.gmra.mxu1 %vm341_vm0, %v1610_v62  ;;  %v942_v59 = vpop.f32.mrf.mxu2 }
 0x17f   : > { %v1216_v11 = vpop.f32.mrf.mxu3  ;;  %v1014_v28 = vadd.f32 %v942_v59, %v701_v57  ;;  %v1339_v59 = vld [vmem:[%s5374_s29 + $0x10b] sm:$0xff] }
 0x181   : > { %v1288_v25 = vadd.f32 %v1216_v11, %v1014_v28 }
 0x182   : > { %v1493_v27 = vpop.f32.mrf.mxu0 }
 0x183   : > { %v5932_v8 = vpop.f32.mrf.mxu1  ;;  %v1562_v4 = vadd.f32 %v1490_v40, %v1288_v25  ;;  %4678 = vmatmul.msk.f32.gmra.mxu2 %vm341_vm0, %v1061_v52  ;;  %v1338_v52 = vld [vmem:[%s5374_s29 + $0x103] sm:$0xff] }
 0x184   : > { %4710 = vmatmul.msk.f32.gmra.mxu3 %vm341_vm0, %v1063_v20 }
 0x185   : > { %4742 = vmatmul.msk.f32.gmra.mxu0 %vm341_vm0, %v1337_v12  ;;  %v5942_v13 = vadd.f32 %v1764_v60, %v1562_v4  ;;  %v1065_v60 = vld [vmem:[%s5374_s29 + $0x10a] sm:$0xff] }
 0x186   : > { %4774 = vmatmul.msk.f32.gmra.mxu1 %vm341_vm0, %v1611_v0  ;;  %v945_v56 = vpop.f32.mrf.mxu2  ;;  %v2130_v12 = vld [vmem:[%s5374_s29 + $0x25] sm:$0xff] }
 0x187   : > { %v1219_v1 = vpop.f32.mrf.mxu3  ;;  %v1015_v48 = vadd.f32 %v945_v56, %v704_v9  ;;  %v2404_v56 = vld [vmem:[%s5374_s29 + $0x26] sm:$0xff] }
 0x189   : > { %v1289_v41 = vadd.f32 %v1219_v1, %v1015_v48 }
 0x18a   : > { %v1496_v43 = vpop.f32.mrf.mxu0 }
 0x18b   : > { %v1770_v19 = vpop.f32.mrf.mxu1  ;;  %v5947_v24 = vadd.f32 %v1493_v27, %v1289_v41  ;;  %4679 = vmatmul.msk.f32.gmra.mxu2 %vm341_vm0, %v1062_v44  ;;  %v1613_v44 = vld [vmem:[%s5374_s29 + $0x10c] sm:$0xff] }
 0x18c   : > { %4711 = vmatmul.msk.f32.gmra.mxu3 %vm341_vm0, %v1064_v51  ;;  %v2131_v51 = vld [vmem:[%s5374_s29 + $0x2d] sm:$0xff] }
 0x18d   : > { %4743 = vmatmul.msk.f32.gmra.mxu0 %vm341_vm0, %v1338_v52  ;;  %v2405_v52 = vld [vmem:[%s5374_s29 + $0x2e] sm:$0xff] }
 0x18e   : > { %4775 = vmatmul.msk.f32.gmra.mxu1 %vm341_vm0, %v1612_v38  ;;  %v948_v46 = vpop.f32.mrf.mxu2 }
 0x18f   : > { %v1222_v14 = vpop.f32.mrf.mxu3  ;;  %v1016_v40 = vadd.f32 %v948_v46, %v707_v35 }
 0x191   : > { %v1290_v61 = vadd.f32 %v1222_v14, %v1016_v40  ;;  %v2132_v14 = vld [vmem:[%s5374_s29 + $0x35] sm:$0xff] }
 0x192   : > { %v1499_v62 = vpop.f32.mrf.mxu0 }
 0x193   : > { %v5956_v57 = vpop.f32.mrf.mxu1  ;;  %v1564_v11 = vadd.f32 %v1496_v43, %v1290_v61  ;;  %4680 = vmatmul.msk.f32.gmra.mxu2 %vm341_vm0, %v1063_v20 }
 0x194   : > { %4712 = vmatmul.msk.f32.gmra.mxu3 %vm341_vm0, %v1065_v60 }
 0x195   : > { %4744 = vmatmul.msk.f32.gmra.mxu0 %vm341_vm0, %v1339_v59  ;;  %v5969_v28 = vadd.f32 %v1770_v19, %v1564_v11 }
 0x196   : > { %4776 = vmatmul.msk.f32.gmra.mxu1 %vm341_vm0, %v1613_v44  ;;  %v951_v25 = vpop.f32.mrf.mxu2 }
 0x197   : > { %v1225_v27 = vpop.f32.mrf.mxu3  ;;  %v1017_v20 = vadd.f32 %v951_v25, %v710_v22 }
 0x199   : > { %v1291_v0 = vadd.f32 %v1225_v27, %v1017_v20  ;;  %v2407_v27 = vld [vmem:[%s5374_s29 + $0x3e] sm:$0xff] }
 0x19a   : > { %v1502_v4 = vpop.f32.mrf.mxu0 }
 0x19b   : > { %v1776_v9 = vpop.f32.mrf.mxu1  ;;  %v5973_v1 = vadd.f32 %v1499_v62, %v1291_v0  ;;  %4777 = vmatmul.msk.f32.vlgmr.msra.gmra.mxu2 %vm341_vm0, %v5551_v31  ;;  %v2406_v62 = vld [vmem:[%s5374_s29 + $0x36] sm:$0xff] }
 0x19c   : > { %4809 = vmatmul.msk.f32.vlgmr.msra.gmra.mxu3 %vm341_vm0, %v2130_v12 }
 0x19d   : > { %4841 = vmatmul.msk.f32.vlgmr.msra.gmra.mxu0 %vm341_vm0, %v2404_v56 }
 0x19e   : > { %v954_v6 = vpop.f32.mrf.mxu2 }
 0x19f   : > { %v1228_v30 = vpop.f32.mrf.mxu3  ;;  %v1018_v48 = vadd.f32 %v954_v6, %v5528_v17 }
 0x1a1   : > { %v1292_v41 = vadd.f32 %v1228_v30, %v1018_v48  ;;  %v2408_v30 = vld [vmem:[%s5374_s29 + $0x46] sm:$0xff] }
 0x1a2   : > { %v1505_v43 = vpop.f32.mrf.mxu0 }
 0x1a3   : > { %v5981_v19 = vpop.f32.mrf.mxu1  ;;  %v1566_v38 = vadd.f32 %v1502_v4, %v1292_v41  ;;  %4778 = vmatmul.msk.f32.gmra.mxu2 %vm341_vm0, %v5567_v39 }
 0x1a4   : > { %4810 = vmatmul.msk.f32.gmra.mxu3 %vm341_vm0, %v2131_v51 }
 0x1a5   : > { %4842 = vmatmul.msk.f32.gmra.mxu0 %vm341_vm0, %v2405_v52  ;;  %v5988_v31 = vadd.f32 %v1776_v9, %v1566_v38  ;;  %v2134_v9 = vld [vmem:[%s5374_s29 + $0x45] sm:$0xff] }
 0x1a6   : > { %v957_v35 = vpop.f32.mrf.mxu2 }
 0x1a7   : > { %v1231_v17 = vpop.f32.mrf.mxu3  ;;  %v1019_v46 = vadd.f32 %v957_v35, %v5542_v26  ;;  %v2133_v26 = vld [vmem:[%s5374_s29 + $0x3d] sm:$0xff] }
 0x1a9   : > { %v1293_v40 = vadd.f32 %v1231_v17, %v1019_v46  ;;  %v2409_v17 = vld [vmem:[%s5374_s29 + $0x4e] sm:$0xff] }
 0x1aa   : > { %v1508_v60 = vpop.f32.mrf.mxu0 }
 0x1ab   : > { %v1782_v61 = vpop.f32.mrf.mxu1  ;;  %v5993_v59 = vadd.f32 %v1505_v43, %v1293_v40  ;;  %4779 = vmatmul.msk.f32.gmra.mxu2 %vm341_vm0, %v5583_v47  ;;  %v4974_v47 = vld [vmem:[%s7675_s4 + $0x10] sm:$0xff] }
 0x1ac   : > { %4811 = vmatmul.msk.f32.gmra.mxu3 %vm341_vm0, %v2132_v14  ;;  %2835 = vmatpush.bf16.msra.mxu1 %v4974_v47  ;;  %v2135_v43 = vld [vmem:[%s5374_s29 + $0x4d] sm:$0xff]  ;;  %v2411_v47 = vld [vmem:[%s5374_s29 + $0x5e] sm:$0xff] }
 0x1ad   : > { %4843 = vmatmul.msk.f32.gmra.mxu0 %vm341_vm0, %v2406_v62 }
 0x1ae   : > { %v960_v39 = vpop.f32.mrf.mxu2 }
 0x1af   : > { %v1234_v44 = vpop.f32.mrf.mxu3  ;;  %v1020_v11 = vadd.f32 %v960_v39, %v5558_v34 }
 0x1b1   : > { %v1294_v16 = vadd.f32 %v1234_v44, %v1020_v11  ;;  %v2410_v44 = vld [vmem:[%s5374_s29 + $0x56] sm:$0xff] }
 0x1b2   : > { %v1511_v22 = vpop.f32.mrf.mxu0 }
 0x1b3   : > { %v6001_v25 = vpop.f32.mrf.mxu1  ;;  %v1568_v20 = vadd.f32 %v1508_v60, %v1294_v16  ;;  %4780 = vmatmul.msk.f32.gmra.mxu2 %vm341_vm0, %v5599_v55  ;;  %v2136_v60 = vld [vmem:[%s5374_s29 + $0x55] sm:$0xff]  ;;  %v2137_v16 = vld [vmem:[%s5374_s29 + $0x5d] sm:$0xff] }
 0x1b4   : > { %4812 = vmatmul.msk.f32.gmra.mxu3 %vm341_vm0, %v2133_v26 }
 0x1b5   : > { %4844 = vmatmul.msk.f32.gmra.mxu0 %vm341_vm0, %v2407_v27  ;;  %v6011_v34 = vadd.f32 %v1782_v61, %v1568_v20 }
 0x1b6   : > { %v963_v12 = vpop.f32.mrf.mxu2 }
 0x1b7   : > { %v1237_v0 = vpop.f32.mrf.mxu3  ;;  %v1021_v4 = vadd.f32 %v963_v12, %v5574_v42 }
 0x1b9   : > { %v1295_v56 = vadd.f32 %v1237_v0, %v1021_v4 }
 0x1ba   : > { %v1514_v55 = vpop.f32.mrf.mxu0 }
 0x1bb   : > { %v1788_v6 = vpop.f32.mrf.mxu1  ;;  %v6016_v48 = vadd.f32 %v1511_v22, %v1295_v56  ;;  %4781 = vmatmul.msk.f32.gmra.mxu2 %vm341_vm0, %v5615_v63  ;;  %v2138_v56 = vld [vmem:[%s5374_s29 + $0x65] sm:$0xff] }
 0x1bc   : > { %4813 = vmatmul.msk.f32.gmra.mxu3 %vm341_vm0, %v2134_v9 }
 0x1bd   : > { %4845 = vmatmul.msk.f32.gmra.mxu0 %vm341_vm0, %v2408_v30 }
 0x1be   : > { %v966_v51 = vpop.f32.mrf.mxu2 }
 0x1bf   : > { %v1240_v41 = vpop.f32.mrf.mxu3  ;;  %v1022_v42 = vadd.f32 %v966_v51, %v5590_v50  ;;  %v2412_v51 = vld [vmem:[%s5374_s29 + $0x66] sm:$0xff] }
 0x1c1   : > { %v1296_v52 = vadd.f32 %v1240_v41, %v1022_v42  ;;  %v5268_v41 = vmov 0   ;;  %v3207_v42 = vld [vmem:[%s6060_s26] sm:$0xff] }
 0x1c2   : > { %v1517_v38 = vpop.f32.mrf.mxu0  ;;  %5033 = vset.pattern.permute.xlu1 %v5268_v41  ;;  %5034 = vset.pattern.permute.xlu2 %v5268_v41 }
 0x1c3   : > { %v6024_v35 = vpop.f32.mrf.mxu1  ;;  %v1570_v46 = vadd.f32 %v1514_v55, %v1296_v52  ;;  %4782 = vmatmul.msk.f32.gmra.mxu2 %vm341_vm0, %v5631_v7  ;;  %3338 = vperm.xlu1 %5033, %v3207_v42   ;;  %v7796_v52 = vld [vmem:[#allocation8_spill] sm:$0xff]  ;;  %v7801_v42 = vld [vmem:[#allocation9_spill] sm:$0xff] }
 0x1c4   : > { %4814 = vmatmul.msk.f32.gmra.mxu3 %vm341_vm0, %v2135_v43  ;;  %5035 = vset.pattern.permute.xlu0 %v5268_v41 }
 0x1c5   : > { %4846 = vmatmul.msk.f32.gmra.mxu0 %vm341_vm0, %v2409_v17  ;;  %v6031_v63 = vadd.f32 %v1788_v6, %v1570_v46  ;;  %v7797_v46 = vld [vmem:[#allocation6_spill] sm:$0xff] }
 0x1c6   : > { %v969_v14 = vpop.f32.mrf.mxu2 }
 0x1c7   : > { %v1243_v40 = vpop.f32.mrf.mxu3  ;;  %v1023_v50 = vadd.f32 %v969_v14, %v5606_v58 }
 0x1c9   : > { %v1297_v61 = vadd.f32 %v1243_v40, %v1023_v50  ;;  %v2139_v40 = vld [vmem:[%s5374_s29 + $0x6d] sm:$0xff] }
 0x1ca   : > { %v1520_v62 = vpop.f32.mrf.mxu0 }
 0x1cb   : > { %v1794_v39 = vpop.f32.mrf.mxu1  ;;  %v6037_v11 = vadd.f32 %v1517_v38, %v1297_v61  ;;  %4783 = vmatmul.msk.f32.gmra.mxu2 %vm341_vm0, %v5647_v18  ;;  %v4973_v18 = vld [vmem:[%s7675_s4 + $0x8] sm:$0xff] }
 0x1cc   : > { %4815 = vmatmul.msk.f32.gmra.mxu3 %vm341_vm0, %v2136_v60  ;;  %2836 = vmatpush.bf16.msra.mxu1 %v4973_v18 }
 0x1cd   : > { %4847 = vmatmul.msk.f32.gmra.mxu0 %vm341_vm0, %v2410_v44  ;;  %v3208_v44 = vld [vmem:[%s6060_s26 + $0x8] sm:$0xff] }
 0x1ce   : > { %v972_v7 = vpop.f32.mrf.mxu2  ;;  %3341 = vperm.xlu2 %5034, %v3208_v44  }
 0x1cf   : > { %v1246_v58 = vpop.f32.mrf.mxu3  ;;  %v1024_v26 = vadd.f32 %v972_v7, %v5622_v2 }
 0x1d1   : > { %v1298_v22 = vadd.f32 %v1246_v58, %v1024_v26  ;;  %v7798_v58 = vld [vmem:[#allocation10_spill] sm:$0xff] }
 0x1d2   : > { %v1523_v27 = vpop.f32.mrf.mxu0 }
 0x1d3   : > { %v6045_v20 = vpop.f32.mrf.mxu1  ;;  %v1572_v12 = vadd.f32 %v1520_v62, %v1298_v22  ;;  %4784 = vmatmul.msk.f32.gmra.mxu2 %vm341_vm0, %v5663_v32  ;;  %v7795_v32 = vld [vmem:[#allocation5_spill] sm:$0xff] }
 0x1d4   : > { %4816 = vmatmul.msk.f32.gmra.mxu3 %vm341_vm0, %v2137_v16  ;;  %v2413_v62 = vld [vmem:[%s5374_s29 + $0x6e] sm:$0xff] }
 0x1d5   : > { %4848 = vmatmul.msk.f32.gmra.mxu0 %vm341_vm0, %v2411_v47  ;;  %v6055_v2 = vadd.f32 %v1794_v39, %v1572_v12  ;;  %v3211_v39 = vld [vmem:[%s6060_s26 + $0x20] sm:$0xff]  ;;  %v2140_v12 = vld [vmem:[%s5374_s29 + $0x75] sm:$0xff] }
 0x1d6   : > { %v975_v0 = vpop.f32.mrf.mxu2  ;;  %3350 = vperm.xlu1 %5033, %v3211_v39   ;;  %v7802_v39 = vld [vmem:[#allocation14_spill] sm:$0xff] }
 0x1d7   : > { %v1249_v4 = vpop.f32.mrf.mxu3  ;;  %v1025_v9 = vadd.f32 %v975_v0, %v7795_v32  ;;  %v2414_v32 = vld [vmem:[%s5374_s29 + $0x76] sm:$0xff] }
 0x1d9   : > { %v1299_v55 = vadd.f32 %v1249_v4, %v1025_v9  ;;  %v3209_v9 = vld [vmem:[%s6060_s26 + $0x10] sm:$0xff] }
 0x1da   : > { %v1526_v6 = vpop.f32.mrf.mxu0  ;;  %3344 = vperm.xlu0 %5035, %v3209_v9   ;;  %v3219_v9 = vld [vmem:[%s6060_s26 + $0x60] sm:$0xff] }
 0x1db   : > { %v1800_v30 = vpop.f32.mrf.mxu1  ;;  %v6066_v43 = vadd.f32 %v1523_v27, %v1299_v55  ;;  %4785 = vmatmul.msk.f32.gmra.mxu2 %vm341_vm0, %v7796_v52  ;;  %v7799_v27 = vld [vmem:[#allocation7_spill] sm:$0xff]  ;;  %v3210_v55 = vld [vmem:[%s6060_s26 + $0x18] sm:$0xff] }
 0x1dc   : > { %4817 = vmatmul.msk.f32.gmra.mxu3 %vm341_vm0, %v2138_v56  ;;  %v3213_v56 = vld [vmem:[%s6060_s26 + $0x30] sm:$0xff]  ;;  %3347 = vperm.xlu2 %5034, %v3210_v55   ;;  %v3214_v55 = vld [vmem:[%s6060_s26 + $0x38] sm:$0xff] }
 0x1dd   : > { %4849 = vmatmul.msk.f32.gmra.mxu0 %vm341_vm0, %v2412_v51 }
 0x1de   : > { %v978_v38 = vpop.f32.mrf.mxu2  ;;  %3356 = vperm.xlu1 %5033, %v3213_v56   ;;  %v3218_v56 = vld [vmem:[%s6060_s26 + $0x58] sm:$0xff] }
 0x1df   : > { %v1252_v17 = vpop.f32.mrf.mxu3  ;;  %v1026_v14 = vadd.f32 %v978_v38, %v7797_v46  ;;  %v2141_v38 = vld [vmem:[%s5374_s29 + $0x7d] sm:$0xff] }
 0x1e1   : > { %v1300_v50 = vadd.f32 %v1252_v17, %v1026_v14  ;;  %v2415_v14 = vld [vmem:[%s5374_s29 + $0x7e] sm:$0xff] }
 0x1e2   : > { %v1529_v60 = vpop.f32.mrf.mxu0 }
 0x1e3   : > { %v6074_v61 = vpop.f32.mrf.mxu1  ;;  %v1574_v7 = vadd.f32 %v1526_v6, %v1300_v50  ;;  %4786 = vmatmul.msk.f32.gmra.mxu2 %vm341_vm0, %v7798_v58  ;;  %v3215_v50 = vld [vmem:[%s6060_s26 + $0x40] sm:$0xff] }
 0x1e4   : > { %4818 = vmatmul.msk.f32.gmra.mxu3 %vm341_vm0, %v2139_v40  ;;  %v3216_v40 = vld [vmem:[%s6060_s26 + $0x48] sm:$0xff] }
 0x1e5   : > { %4850 = vmatmul.msk.f32.gmra.mxu0 %vm341_vm0, %v2413_v62  ;;  %v6083_v26 = vadd.f32 %v1800_v30, %v1574_v7  ;;  %v7800_v30 = vld [vmem:[#allocation12_spill] sm:$0xff]  ;;  %3365 = vperm.xlu0 %5035, %v3216_v40   ;;  %v4972_v7 = vld [vmem:[%s7675_s4] sm:$0xff] }
 0x1e6   : > { %v981_v16 = vpop.f32.mrf.mxu2  ;;  %3362 = vperm.xlu1 %5033, %v3215_v50   ;;  %2837 = vmatpush.bf16.msra.mxu1 %v4972_v7  ;;  %v2417_v50 = vld [vmem:[%s5374_s29 + $0x8e] sm:$0xff]  ;;  %v7806_v7 = vld [vmem:[#allocation18_spill] sm:$0xff] }
 0x1e7   : > { %v1255_v22 = vpop.f32.mrf.mxu3  ;;  %v1027_v47 = vadd.f32 %v981_v16, %v7799_v27  ;;  %v7803_v27 = vld [vmem:[#allocation11_spill] sm:$0xff] }
 0x1e9   : > { %v1301_v18 = vadd.f32 %v1255_v22, %v1027_v47 }
 0x1ea   : > { %v1532_v0 = vpop.f32.mrf.mxu0 }
 0x1eb   : > { %v1806_v4 = vpop.f32.mrf.mxu1  ;;  %v6091_v6 = vadd.f32 %v1529_v60, %v1301_v18  ;;  %4787 = vmatmul.msk.f32.gmra.mxu2 %vm341_vm0, %v7800_v30  ;;  %v3212_v60 = vld [vmem:[%s6060_s26 + $0x28] sm:$0xff] }
 0x1ec   : > { %4819 = vmatmul.msk.f32.gmra.mxu3 %vm341_vm0, %v2140_v12  ;;  %3353 = vperm.xlu2 %5034, %v3212_v60   ;;  %v2142_v12 = vld [vmem:[%s5374_s29 + $0x85] sm:$0xff]  ;;  %v3221_v60 = vld [vmem:[%s6060_s26 + $0x70] sm:$0xff] }
 0x1ed   : > { %4851 = vmatmul.msk.f32.gmra.mxu0 %vm341_vm0, %v2414_v32  ;;  %v2416_v32 = vld [vmem:[%s5374_s29 + $0x86] sm:$0xff]  ;;  %3374 = vperm.xlu0 %5035, %v3219_v9  }
 0x1ee   : > { %v984_v51 = vpop.f32.mrf.mxu2  ;;  %3371 = vperm.xlu1 %5033, %v3218_v56   ;;  %v7804_v30 = vld [vmem:[#allocation16_spill] sm:$0xff]  ;;  %v2418_v56 = vld [vmem:[%s5374_s29 + $0x96] sm:$0xff] }
 0x1ef   : > { %v1258_v41 = vpop.f32.mrf.mxu3  ;;  %v1028_v52 = vadd.f32 %v984_v51, %v7801_v42 }
 0x1f1   : > { %v1302_v17 = vadd.f32 %v1258_v41, %v1028_v52  ;;  %v7805_v52 = vld [vmem:[#allocation13_spill] sm:$0xff] }
 0x1f2   : > { %v1535_v46 = vpop.f32.mrf.mxu0 }
 0x1f3   : > { %v1576_v62 = vadd.f32 %v1532_v0, %v1302_v17  ;;  %4788 = vmatmul.msk.f32.gmra.mxu2 %vm341_vm0, %v7802_v39  ;;  %v6106_v44 = vpop.f32.mrf.mxu1  ;;  %v2143_v17 = vld [vmem:[%s5374_s29 + $0x8d] sm:$0xff] }
 0x1f4   : > { %4820 = vmatmul.msk.f32.gmra.mxu3 %vm341_vm0, %v2141_v38  ;;  %3359 = vperm.xlu2 %5034, %v3214_v55   ;;  %v3225_v55 = vld [vmem:[%s6060_s26 + $0x90] sm:$0xff] }
 0x1f5   : > { %4852 = vmatmul.msk.f32.gmra.mxu0 %vm341_vm0, %v2415_v14  ;;  %v6112_v58 = vadd.f32 %v1806_v4, %v1576_v62  ;;  %v3217_v62 = vld [vmem:[%s6060_s26 + $0x50] sm:$0xff] }
 0x1f6   : > { %v987_v16 = vpop.f32.mrf.mxu2  ;;  %3380 = vperm.xlu1 %5033, %v3221_v60  }
 0x1f7   : > { %v1261_v22 = vpop.f32.mrf.mxu3  ;;  %v1029_v47 = vadd.f32 %v987_v16, %v7803_v27 }
 0x1f9   : > { %v1303_v18 = vadd.f32 %v1261_v22, %v1029_v47  ;;  %v7807_v47 = vld [vmem:[#allocation15_spill] sm:$0xff] }
 0x1fa   : > { %v1538_v0 = vpop.f32.mrf.mxu0 }
 0x1fb   : > { %v6120_v4 = vadd.f32 %v1535_v46, %v1303_v18  ;;  %4789 = vmatmul.msk.f32.gmra.mxu2 %vm341_vm0, %v7804_v30  ;;  %v1812_v51 = vpop.f32.mrf.mxu1  ;;  %v3222_v46 = vld [vmem:[%s6060_s26 + $0x78] sm:$0xff]  ;;  %v3224_v30 = vld [vmem:[%s6060_s26 + $0x88] sm:$0xff] }
 0x1fc   : > { %4821 = vmatmul.msk.f32.gmra.mxu3 %vm341_vm0, %v2142_v12  ;;  %3383 = vperm.xlu0 %5035, %v3222_v46  }
 0x1fd   : > { %4853 = vmatmul.msk.f32.gmra.mxu0 %vm341_vm0, %v2416_v32  ;;  %3368 = vperm.xlu2 %5034, %v3217_v62   ;;  %v2144_v32 = vld [vmem:[%s5374_s29 + $0x95] sm:$0xff]  ;;  %v2419_v62 = vld [vmem:[%s5374_s29 + $0x9e] sm:$0xff] }
 0x1fe   : > { %v990_v41 = vpop.f32.mrf.mxu2  ;;  %3389 = vperm.xlu1 %5033, %v3224_v30   ;;  %v2146_v30 = vld [vmem:[%s5374_s29 + $0xa5] sm:$0xff] }
 0x1ff   : > { %v1264_v42 = vpop.f32.mrf.mxu3  ;;  %v1030_v38 = vadd.f32 %v990_v41, %v7805_v52 }
 0x201   : > { %v1304_v14 = vadd.f32 %v1264_v42, %v1030_v38  ;;  %v7808_v42 = vld [vmem:[#allocation20_spill] sm:$0xff] }
 0x202   : > { %v1541_v40 = vpop.f32.mrf.mxu0 }
 0x203   : > { %v1578_v39 = vadd.f32 %v1538_v0, %v1304_v14  ;;  %4790 = vmatmul.msk.f32.gmra.mxu2 %vm341_vm0, %v7806_v7  ;;  %v6139_v18 = vpop.f32.mrf.mxu1 }
 0x204   : > { %4822 = vmatmul.msk.f32.gmra.mxu3 %vm341_vm0, %v2143_v17  ;;  %3392 = vperm.xlu0 %5035, %v3225_v55   ;;  %v7809_v17 = vld [vmem:[#allocation17_spill] sm:$0xff]  ;;  %v1872_v55 = vld [vmem:[%s5374_s29 + $0xa4] sm:$0xff] }
 0x205   : > { %4854 = vmatmul.msk.f32.gmra.mxu0 %vm341_vm0, %v2417_v50  ;;  %v6136_v16 = vadd.f32 %v1812_v51, %v1578_v39  ;;  %v3220_v51 = vld [vmem:[%s6060_s26 + $0x68] sm:$0xff]  ;;  %v2145_v50 = vld [vmem:[%s5374_s29 + $0x9d] sm:$0xff] }
 0x206   : > { %v993_v22 = vpop.f32.mrf.mxu2  ;;  %3377 = vperm.xlu2 %5034, %v3220_v51   ;;  %v3227_v39 = vld [vmem:[%s6060_s26 + $0xa0] sm:$0xff] }
 0x207   : > { %v1267_v27 = vpop.f32.mrf.mxu3  ;;  %v1031_v12 = vadd.f32 %v993_v22, %v7807_v47  ;;  %3398 = vperm.xlu1 %5033, %v3227_v39   ;;  %v3223_v22 = vld [vmem:[%s6060_s26 + $0x80] sm:$0xff]  ;;  %v2147_v39 = vld [vmem:[%s5374_s29 + $0xad] sm:$0xff] }
 0x209   : > { %v1305_v9 = vadd.f32 %v1267_v27, %v1031_v12 }
 0x20a   : > { %v1544_v0 = vpop.f32.mrf.mxu0 }
 0x20b   : > { %v6146_v41 = vadd.f32 %v1541_v40, %v1305_v9  ;;  %4791 = vmatmul.msk.f32.gmra.mxu2 %vm341_vm0, %v7808_v42  ;;  %v3228_v40 = vld [vmem:[%s6060_s26 + $0xa8] sm:$0xff]  ;;  %v1818_v7 = vpop.f32.mrf.mxu1  ;;  %v7810_v9 = vld [vmem:[#allocation19_spill] sm:$0xff] }
 0x20c   : > { %4823 = vmatmul.msk.f32.gmra.mxu3 %vm341_vm0, %v2144_v32  ;;  %3401 = vperm.xlu0 %5035, %v3228_v40   ;;  %v2420_v42 = vld [vmem:[%s5374_s29 + $0xa6] sm:$0xff] }
 0x20d   : > { %4855 = vmatmul.msk.f32.gmra.mxu0 %vm341_vm0, %v2418_v56  ;;  %v1873_v40 = vld [vmem:[%s5374_s29 + $0xac] sm:$0xff] }
 0x20e   : > { %v996_v52 = vpop.f32.mrf.mxu2  ;;  %3386 = vperm.xlu2 %5034, %v3223_v22   ;;  %v2421_v22 = vld [vmem:[%s5374_s29 + $0xae] sm:$0xff] }
 0x20f   : > { %v1270_v38 = vpop.f32.mrf.mxu3  ;;  %v1032_v14 = vadd.f32 %v996_v52, %v7809_v17  ;;  %v3230_v52 = vld [vmem:[%s6060_s26 + $0xb8] sm:$0xff] }
 0x210   : > { %3407 = vperm.xlu1 %5033, %v3230_v52  }
 0x211   : > { %v1306_v46 = vadd.f32 %v1270_v38, %v1032_v14  ;;  %v3226_v38 = vld [vmem:[%s6060_s26 + $0x98] sm:$0xff] }
 0x212   : > { %v1547_v60 = vpop.f32.mrf.mxu0 }
 0x213   : > { %v1580_v27 = vadd.f32 %v1544_v0, %v1306_v46  ;;  %4792 = vmatmul.msk.f32.gmra.mxu2 %vm341_vm0, %v5786_v3  ;;  %v3231_v3 = vld [vmem:[%s6060_s26 + $0xc0] sm:$0xff]  ;;  %v7811_v46 = vld [vmem:[#allocation21_spill] sm:$0xff] }
 0x214   : > { %4824 = vmatmul.msk.f32.gmra.mxu3 %vm341_vm0, %v2145_v50  ;;  %3410 = vperm.xlu0 %5035, %v3231_v3   ;;  %v2148_v3 = vld [vmem:[%s5374_s29 + $0xb5] sm:$0xff] }
 0x215   : > { %4856 = vmatmul.msk.f32.gmra.mxu0 %vm341_vm0, %v2419_v62  ;;  %v6162_v47 = vadd.f32 %v1818_v7, %v1580_v27  ;;  %v3234_v27 = vld [vmem:[%s6060_s26 + $0xd8] sm:$0xff] }
 0x216   : > { %v999_v12 = vpop.f32.mrf.mxu2  ;;  %3395 = vperm.xlu2 %5034, %v3226_v38  }
 0x217   : > { %v1273_v32 = vpop.f32.mrf.mxu3  ;;  %v1033_v56 = vadd.f32 %v999_v12, %v7810_v9  ;;  %v3229_v12 = vld [vmem:[%s6060_s26 + $0xb0] sm:$0xff] }
 0x219   : > { %v1307_v51 = vadd.f32 %v1273_v32, %v1033_v56 }
 0x21a   : > { %v2550_v0 = vpop.f32.mrf.mxu0 }
 0x21b   : > { %v6171_v17 = vadd.f32 %v1547_v60, %v1307_v51  ;;  %4793 = vmatmul.msk.f32.gmra.mxu2 %vm341_vm0, %v1872_v55  ;;  %v3233_v60 = vld [vmem:[%s6060_s26 + $0xd0] sm:$0xff] }
 0x21c   : > { %4825 = vmatmul.msk.f32.gmra.mxu3 %vm341_vm0, %v2146_v30  ;;  %3419 = vperm.xlu0 %5035, %v3234_v27   ;;  %v6189_v30 = vld [vmem:[%s7674_s3] ss:$0 sm:$0xff] }
 0x21d   : > { %4857 = vmatmul.msk.f32.gmra.mxu0 %vm341_vm0, %v2420_v42  ;;  %3416 = vperm.xlu1 %5033, %v3233_v60   ;;  %v1874_v42 = vld [vmem:[%s5374_s29 + $0xb4] sm:$0xff] }
 0x21e   : > { %v2002_v14 = vpop.f32.mrf.mxu2  ;;  %3404 = vperm.xlu2 %5034, %v3229_v12  }
 0x21f   : > { %v2276_v50 = vpop.f32.mrf.mxu3  ;;  %v2098_v62 = vadd.f32 %v2002_v14, %v7811_v46  ;;  %v2422_v14 = vld [vmem:[%s5374_s29 + $0xb6] sm:$0xff]  ;;  %v3236_v46 = vld [vmem:[%s6060_s26 + $0xe8] sm:$0xff] }
 0x221   : > { %v2372_v32 = vadd.f32 %v2276_v50, %v2098_v62  ;;  %v3237_v50 = vld [vmem:[%s6060_s26 + $0xf0] sm:$0xff]  ;;  %v3232_v62 = vld [vmem:[%s6060_s26 + $0xc8] sm:$0xff] }
 0x222   : > { %v2553_v7 = vpop.f32.mrf.mxu0 }
 0x223   : > { %4794 = vmatmul.msk.f32.gmra.mxu2 %vm341_vm0, %v1873_v40  ;;  %v2646_v55 = vadd.f32 %v2550_v0, %v2372_v32  ;;  %v1875_v32 = vld [vmem:[%s5374_s29 + $0xbc] sm:$0xff] }
 0x224   : > { %4826 = vmatmul.msk.f32.gmra.mxu3 %vm341_vm0, %v2147_v39  ;;  %3428 = vperm.xlu0 %5035, %v3237_v50   ;;  %v1876_v50 = vld [vmem:[%s5374_s29 + $0xc4] sm:$0xff] }
 0x225   : > { %4858 = vmatmul.msk.f32.gmra.mxu0 %vm341_vm0, %v2421_v22  ;;  %3425 = vperm.xlu1 %5033, %v3236_v46   ;;  %v2682_v0 = vadd.f32 %v6189_v30, %v2646_v55  ;;  %v2423_v55 = vld [vmem:[%s5374_s29 + $0xbe] sm:$0xff] }
 0x226   : > { %v2005_v9 = vpop.f32.mrf.mxu2  ;;  %3413 = vperm.xlu2 %5034, %v3232_v62   ;;  %v2150_v62 = vld [vmem:[%s5374_s29 + $0xc5] sm:$0xff] }
 0x227   : > { %v2279_v56 = vpop.f32.mrf.mxu3  ;;  %v2099_v51 = vadd.f32 %v2005_v9, %v5806_v21  ;;  %v2714_v27 = vmax.f32 %v2682_v0, 0.0 }
 0x229   : > { %v2373_v52 = vadd.f32 %v2279_v56, %v2099_v51  ;;  %v3235_v51 = vld [vmem:[%s6060_s26 + $0xe0] sm:$0xff] }
 0x22a   : > { %v2556_v38 = vpop.f32.mrf.mxu0 }
 0x22b   : > { %v2647_v40 = vadd.f32 %v2553_v7, %v2373_v52  ;;  %4795 = vmatmul.msk.f32.gmra.mxu2 %vm341_vm0, %v1874_v42  ;;  %v2149_v7 = vld [vmem:[%s5374_s29 + $0xbd] sm:$0xff] }
 0x22c   : > { %4827 = vmatmul.msk.f32.gmra.mxu3 %vm341_vm0, %v2148_v3 }
 0x22d   : > { %4859 = vmatmul.msk.f32.gmra.mxu0 %vm341_vm0, %v2422_v14  ;;  %v2683_v21 = vadd.f32 %v6189_v30, %v2647_v40  ;;  %v2424_v40 = vld [vmem:[%s5374_s29 + $0xc6] sm:$0xff] }
 0x22e   : > { %v2008_v39 = vpop.f32.mrf.mxu2  ;;  %3422 = vperm.xlu2 %5034, %v3235_v51   ;;  %v2425_v51 = vld [vmem:[%s5374_s29 + $0xce] sm:$0xff] }
 0x22f   : > { %v2282_v22 = vpop.f32.mrf.mxu3  ;;  %v2715_v60 = vmax.f32 %v2683_v21, 0.0  ;;  %v2100_v12 = vadd.f32 %v2008_v39, %v5820_v10  ;;  %v3238_v21 = vld [vmem:[%s6060_s26 + $0xf8] sm:$0xff] }
 0x231   : > { %v2746_v9 = vpack.c.bf16 %v2715_v60, %v2714_v27  ;;  %v2374_v42 = vadd.f32 %v2282_v22, %v2100_v12 }
 0x232   : > { %v2559_v56 = vpop.f32.mrf.mxu0 }
 0x233   : > { %4796 = vmatmul.msk.f32.gmra.mxu2 %vm341_vm0, %v1875_v32  ;;  %2838 = vmatmul.bf16.vlgmr.msra.gmra.mxu1 %v2746_v9  ;;  %v2648_v52 = vadd.f32 %v2556_v38, %v2374_v42  ;;  %v1877_v9 = vld [vmem:[%s5374_s29 + $0xcc] sm:$0xff] }
 0x234   : > { %4828 = vmatmul.msk.f32.gmra.mxu3 %vm341_vm0, %v2149_v7 }
 0x235   : > { %4860 = vmatmul.msk.f32.gmra.mxu0 %vm341_vm0, %v2423_v55  ;;  %v2684_v39 = vadd.f32 %v6189_v30, %v2648_v52 }
 0x236   : > { %v2011_v10 = vpop.f32.mrf.mxu2  ;;  %3431 = vperm.xlu2 %5034, %v3238_v21  }
 0x237   : > { %v2285_v3 = vpop.f32.mrf.mxu3  ;;  %v2101_v14 = vadd.f32 %v2011_v10, %v5831_v37  ;;  %v2716_v60 = vmax.f32 %v2684_v39, 0.0 }
 0x239   : > { %v2375_v46 = vadd.f32 %v2285_v3, %v2101_v14  ;;  %v1878_v14 = vld [vmem:[%s5374_s29 + $0xd4] sm:$0xff] }
 0x23a   : > { %v2562_v0 = vpop.f32.mrf.mxu0 }
 0x23b   : > { %v2649_v22 = vadd.f32 %v2559_v56, %v2375_v46  ;;  %4797 = vmatmul.msk.f32.gmra.mxu2 %vm341_vm0, %v1876_v50  ;;  %v2151_v56 = vld [vmem:[%s5374_s29 + $0xcd] sm:$0xff]  ;;  %v2152_v46 = vld [vmem:[%s5374_s29 + $0xd5] sm:$0xff] }
 0x23c   : > { %4829 = vmatmul.msk.f32.gmra.mxu3 %vm341_vm0, %v2150_v62 }
 0x23d   : > { %4861 = vmatmul.msk.f32.gmra.mxu0 %vm341_vm0, %v2424_v40  ;;  %v2685_v37 = vadd.f32 %v6189_v30, %v2649_v22  ;;  %v2426_v40 = vld [vmem:[%s5374_s29 + $0xd6] sm:$0xff] }
 0x23e   : > { %v2014_v38 = vpop.f32.mrf.mxu2 }
 0x23f   : > { %v2288_v27 = vpop.f32.mrf.mxu3  ;;  %v2717_v12 = vmax.f32 %v2685_v37, 0.0  ;;  %v2102_v32 = vadd.f32 %v2014_v38, %v5842_v45 }
 0x241   : > { %v2747_v7 = vpack.c.bf16 %v2717_v12, %v2716_v60  ;;  %v2376_v42 = vadd.f32 %v2288_v27, %v2102_v32  ;;  %v1879_v60 = vld [vmem:[%s5374_s29 + $0xdc] sm:$0xff] }
 0x242   : > { %v2565_v55 = vpop.f32.mrf.mxu0  ;;  %v2153_v32 = vld [vmem:[%s5374_s29 + $0xdd] sm:$0xff] }
 0x243   : > { %4798 = vmatmul.msk.f32.gmra.mxu2 %vm341_vm0, %v1877_v9  ;;  %2843 = vmatmul.bf16.gmra.mxu1 %v2747_v7  ;;  %v2650_v52 = vadd.f32 %v2562_v0, %v2376_v42  ;;  %v2427_v7 = vld [vmem:[%s5374_s29 + $0xde] sm:$0xff] }
 0x244   : > { %4830 = vmatmul.msk.f32.gmra.mxu3 %vm341_vm0, %v2151_v56 }
 0x245   : > { %4862 = vmatmul.msk.f32.gmra.mxu0 %vm341_vm0, %v2425_v51  ;;  %v2686_v21 = vadd.f32 %v6189_v30, %v2650_v52  ;;  %v2154_v52 = vld [vmem:[%s5374_s29 + $0xe5] sm:$0xff] }
 0x246   : > { %v2017_v10 = vpop.f32.mrf.mxu2 }
 0x247   : > { %v2291_v3 = vpop.f32.mrf.mxu3  ;;  %v2103_v45 = vadd.f32 %v2017_v10, %v5853_v53  ;;  %v2718_v37 = vmax.f32 %v2686_v21, 0.0  ;;  %v1880_v10 = vld [vmem:[%s5374_s29 + $0xe4] sm:$0xff] }
 0x249   : > { %v2377_v50 = vadd.f32 %v2291_v3, %v2103_v45 }
 0x24a   : > { %v2568_v62 = vpop.f32.mrf.mxu0 }
 0x24b   : > { %v2651_v39 = vadd.f32 %v2565_v55, %v2377_v50  ;;  %4799 = vmatmul.msk.f32.gmra.mxu2 %vm341_vm0, %v1878_v14  ;;  %v2428_v14 = vld [vmem:[%s5374_s29 + $0xe6] sm:$0xff] }
 0x24c   : > { %4831 = vmatmul.msk.f32.gmra.mxu3 %vm341_vm0, %v2152_v46 }
 0x24d   : > { %4863 = vmatmul.msk.f32.gmra.mxu0 %vm341_vm0, %v2426_v40  ;;  %v2687_v0 = vadd.f32 %v6189_v30, %v2651_v39 }
 0x24e   : > { %v2020_v53 = vpop.f32.mrf.mxu2 }
 0x24f   : > { %v2294_v22 = vpop.f32.mrf.mxu3  ;;  %v2719_v38 = vmax.f32 %v2687_v0, 0.0  ;;  %v2104_v27 = vadd.f32 %v2020_v53, %v5867_v29  ;;  %v1881_v53 = vld [vmem:[%s5374_s29 + $0xec] sm:$0xff] }
 0x251   : > { %v2748_v12 = vpack.c.bf16 %v2719_v38, %v2718_v37  ;;  %v2378_v56 = vadd.f32 %v2294_v22, %v2104_v27  ;;  %v2155_v37 = vld [vmem:[%s5374_s29 + $0xed] sm:$0xff] }
 0x252   : > { %v2571_v9 = vpop.f32.mrf.mxu0  ;;  %v2429_v27 = vld [vmem:[%s5374_s29 + $0xee] sm:$0xff] }
 0x253   : > { %4800 = vmatmul.msk.f32.gmra.mxu2 %vm341_vm0, %v1879_v60  ;;  %2848 = vmatmul.bf16.gmra.mxu1 %v2748_v12  ;;  %v2652_v42 = vadd.f32 %v2568_v62, %v2378_v56  ;;  %v1833_v12 = vadd.f32 %v5881_v49, %v5896_v36  ;;  %v1882_v56 = vld [vmem:[%s5374_s29 + $0xf4] sm:$0xff] }
 0x254   : > { %4832 = vmatmul.msk.f32.gmra.mxu3 %vm341_vm0, %v2153_v32 }
 0x255   : > { %4864 = vmatmul.msk.f32.gmra.mxu0 %vm341_vm0, %v2427_v7  ;;  %v2688_v50 = vadd.f32 %v6189_v30, %v2652_v42 }
 0x256   : > { %v2023_v55 = vpop.f32.mrf.mxu2 }
 0x257   : > { %v2297_v51 = vpop.f32.mrf.mxu3  ;;  %v2105_v29 = vadd.f32 %v2023_v55, %v5878_v5  ;;  %v2720_v21 = vmax.f32 %v2688_v50, 0.0 }
 0x259   : > { %v2379_v3 = vadd.f32 %v2297_v51, %v2105_v29  ;;  %v2156_v51 = vld [vmem:[%s5374_s29 + $0xf5] sm:$0xff] }
 0x25a   : > { %v2574_v45 = vpop.f32.mrf.mxu0  ;;  %v2430_v29 = vld [vmem:[%s5374_s29 + $0xf6] sm:$0xff] }
 0x25b   : > { %v2653_v46 = vadd.f32 %v2571_v9, %v2379_v3  ;;  %4801 = vmatmul.msk.f32.gmra.mxu2 %vm341_vm0, %v1880_v10 }
 0x25c   : > { %4833 = vmatmul.msk.f32.gmra.mxu3 %vm341_vm0, %v2154_v52 }
 0x25d   : > { %4865 = vmatmul.msk.f32.gmra.mxu0 %vm341_vm0, %v2428_v14  ;;  %v2689_v62 = vadd.f32 %v6189_v30, %v2653_v46  ;;  %v1883_v46 = vld [vmem:[%s5374_s29 + $0xfc] sm:$0xff] }
 0x25e   : > { %v2026_v5 = vpop.f32.mrf.mxu2 }
 0x25f   : > { %v2300_v40 = vpop.f32.mrf.mxu3  ;;  %v2721_v39 = vmax.f32 %v2689_v62, 0.0  ;;  %v2106_v0 = vadd.f32 %v2026_v5, %v5891_v15  ;;  %v2157_v5 = vld [vmem:[%s5374_s29 + $0xfd] sm:$0xff] }
 0x261   : > { %v2749_v22 = vpack.c.bf16 %v2721_v39, %v2720_v21  ;;  %v2380_v60 = vadd.f32 %v2300_v40, %v2106_v0  ;;  %v2431_v21 = vld [vmem:[%s5374_s29 + $0xfe] sm:$0xff]  ;;  %v1835_v0 = vadd.f32 %v5905_v33, %v5923_v54 }
 0x262   : > { %v2577_v38 = vpop.f32.mrf.mxu0 }
 0x263   : > { %4802 = vmatmul.msk.f32.gmra.mxu2 %vm341_vm0, %v1881_v53  ;;  %2853 = vmatmul.bf16.gmra.mxu1 %v2749_v22  ;;  %v2654_v9 = vadd.f32 %v2574_v45, %v2380_v60  ;;  %v2158_v60 = vld [vmem:[%s5374_s29 + $0x105] sm:$0xff] }
 0x264   : > { %4834 = vmatmul.msk.f32.gmra.mxu3 %vm341_vm0, %v2155_v37 }
 0x265   : > { %4866 = vmatmul.msk.f32.gmra.mxu0 %vm341_vm0, %v2429_v27  ;;  %v2690_v10 = vadd.f32 %v6189_v30, %v2654_v9 }
 0x266   : > { %v2029_v15 = vpop.f32.mrf.mxu2 }
 0x267   : > { %v2303_v32 = vpop.f32.mrf.mxu3  ;;  %v2107_v7 = vadd.f32 %v2029_v15, %v1833_v12  ;;  %v2722_v45 = vmax.f32 %v2690_v10, 0.0  ;;  %v2432_v15 = vld [vmem:[%s5374_s29 + $0x106] sm:$0xff] }
 0x268   : > { %v2159_v10 = vld [vmem:[%s5374_s29 + $0x10d] sm:$0xff] }
 0x269   : > { %v2381_v55 = vadd.f32 %v2303_v32, %v2107_v7 }
 0x26a   : > { %v2580_v42 = vpop.f32.mrf.mxu0 }
 0x26b   : > { %v2655_v3 = vadd.f32 %v2577_v38, %v2381_v55  ;;  %4803 = vmatmul.msk.f32.gmra.mxu2 %vm341_vm0, %v1882_v56  ;;  %v1884_v38 = vld [vmem:[%s5374_s29 + $0x104] sm:$0xff] }
 0x26c   : > { %4835 = vmatmul.msk.f32.gmra.mxu3 %vm341_vm0, %v2156_v51 }
 0x26d   : > { %4867 = vmatmul.msk.f32.gmra.mxu0 %vm341_vm0, %v2430_v29  ;;  %v2691_v49 = vadd.f32 %v6189_v30, %v2655_v3 }
 0x26e   : > { %v2032_v36 = vpop.f32.mrf.mxu2 }
 0x26f   : > { %v2306_v52 = vpop.f32.mrf.mxu3  ;;  %v2723_v14 = vmax.f32 %v2691_v49, 0.0  ;;  %v2108_v50 = vadd.f32 %v2032_v36, %v5918_v23  ;;  %v2433_v49 = vld [vmem:[%s5374_s29 + $0x10e] sm:$0xff] }
 0x271   : > { %v2750_v62 = vpack.c.bf16 %v2723_v14, %v2722_v45  ;;  %v2382_v39 = vadd.f32 %v2306_v52, %v2108_v50  ;;  %v1837_v52 = vadd.f32 %v5932_v8, %v5947_v24 }
 0x272   : > { %v2583_v40 = vpop.f32.mrf.mxu0 }
 0x273   : > { %4804 = vmatmul.msk.f32.gmra.mxu2 %vm341_vm0, %v1883_v46  ;;  %2858 = vmatmul.bf16.gmra.mxu1 %v2750_v62  ;;  %v2656_v22 = vadd.f32 %v2580_v42, %v2382_v39  ;;  %v1885_v42 = vld [vmem:[%s5374_s29 + $0x10c] sm:$0xff]  ;;  %v1886_v46 = vld [vmem:[%s5374_s29 + $0x114] sm:$0xff] }
 0x274   : > { %4836 = vmatmul.msk.f32.gmra.mxu3 %vm341_vm0, %v2157_v5  ;;  %v2160_v5 = vld [vmem:[%s5374_s29 + $0x115] sm:$0xff] }
 0x275   : > { %4868 = vmatmul.msk.f32.gmra.mxu0 %vm341_vm0, %v2431_v21  ;;  %v2692_v32 = vadd.f32 %v6189_v30, %v2656_v22  ;;  %v2434_v21 = vld [vmem:[%s5374_s29 + $0x116] sm:$0xff] }
 0x276   : > { %v2035_v23 = vpop.f32.mrf.mxu2 }
 0x277   : > { %v2309_v53 = vpop.f32.mrf.mxu3  ;;  %v2109_v37 = vadd.f32 %v2035_v23, %v1835_v0  ;;  %v2724_v56 = vmax.f32 %v2692_v32, 0.0 }
 0x279   : > { %v2383_v27 = vadd.f32 %v2309_v53, %v2109_v37 }
 0x27a   : > { %v2586_v12 = vpop.f32.mrf.mxu0 }
 0x27b   : > { %v2657_v9 = vadd.f32 %v2583_v40, %v2383_v27  ;;  %4805 = vmatmul.msk.f32.gmra.mxu2 %vm341_vm0, %v1884_v38  ;;  %v1887_v38 = vld [vmem:[%s5374_s29 + $0x11c] sm:$0xff] }
 0x27c   : > { %4837 = vmatmul.msk.f32.gmra.mxu3 %vm341_vm0, %v2158_v60  ;;  %v2161_v60 = vld [vmem:[%s5374_s29 + $0x11d] sm:$0xff] }
 0x27d   : > { %4869 = vmatmul.msk.f32.gmra.mxu0 %vm341_vm0, %v2432_v15  ;;  %v2693_v33 = vadd.f32 %v6189_v30, %v2657_v9  ;;  %v2435_v15 = vld [vmem:[%s5374_s29 + $0x11e] sm:$0xff]  ;;  %v1839_v9 = vadd.f32 %v5956_v57, %v5973_v1  ;;  %v1841_v1 = vadd.f32 %v5981_v19, %v5993_v59 }
 0x27e   : > { %v2038_v54 = vpop.f32.mrf.mxu2 }
 0x27f   : > { %v2312_v7 = vpop.f32.mrf.mxu3  ;;  %v2725_v55 = vmax.f32 %v2693_v33, 0.0  ;;  %v2110_v51 = vadd.f32 %v2038_v54, %v5942_v13 }
 0x281   : > { %v2751_v29 = vpack.c.bf16 %v2725_v55, %v2724_v56  ;;  %v2384_v36 = vadd.f32 %v2312_v7, %v2110_v51 }
 0x282   : > { %v2589_v3 = vpop.f32.mrf.mxu0 }
 0x283   : > { %4806 = vmatmul.msk.f32.gmra.mxu2 %vm341_vm0, %v1885_v42  ;;  %2863 = vmatmul.bf16.gmra.mxu1 %v2751_v29  ;;  %v2658_v14 = vadd.f32 %v2586_v12, %v2384_v36 }
 0x284   : > { %4838 = vmatmul.msk.f32.gmra.mxu3 %vm341_vm0, %v2159_v10 }
 0x285   : > { %4870 = vmatmul.msk.f32.gmra.mxu0 %vm341_vm0, %v2433_v49  ;;  %v2694_v39 = vadd.f32 %v6189_v30, %v2658_v14 }
 0x286   : > { %v2041_v13 = vpop.f32.mrf.mxu2 }
 0x287   : > { %v2315_v45 = vpop.f32.mrf.mxu3  ;;  %v2111_v50 = vadd.f32 %v2041_v13, %v1837_v52  ;;  %v2726_v53 = vmax.f32 %v2694_v39, 0.0 }
 0x289   : > { %v2385_v62 = vadd.f32 %v2315_v45, %v2111_v50 }
 0x28a   : > { %v2592_v40 = vpop.f32.mrf.mxu0 }
 0x28b   : > { %v2659_v0 = vadd.f32 %v2589_v3, %v2385_v62  ;;  %4807 = vmatmul.msk.f32.gmra.mxu2 %vm341_vm0, %v1886_v46 }
 0x28c   : > { %4839 = vmatmul.msk.f32.gmra.mxu3 %vm341_vm0, %v2160_v5  ;;  %v6318_v5 = vpop.f32.mrf.mxu1 }
 0x28d   : > { %4871 = vmatmul.msk.f32.gmra.mxu0 %vm341_vm0, %v2434_v21  ;;  %v2695_v8 = vadd.f32 %v6189_v30, %v2659_v0 }
 0x28e   : > { %v2044_v24 = vpop.f32.mrf.mxu2 }
 0x28f   : > { %v2318_v23 = vpop.f32.mrf.mxu3  ;;  %v2727_v22 = vmax.f32 %v2695_v8, 0.0  ;;  %v2112_v37 = vadd.f32 %v2044_v24, %v5969_v28  ;;  %v6325_v8 = vld [vmem:[%s7676_s5] ss:$0 sm:$0xff] }
 0x291   : > { %v2752_v27 = vpack.c.bf16 %v2727_v22, %v2726_v53  ;;  %v2386_v32 = vadd.f32 %v2318_v23, %v2112_v37 }
 0x292   : > { %v2595_v12 = vpop.f32.mrf.mxu0 }
 0x293   : > { %4808 = vmatmul.msk.f32.gmra.mxu2 %vm341_vm0, %v1887_v38  ;;  %2868 = vmatmul.bf16.gmra.mxu1 %v2752_v27  ;;  %v2660_v7 = vadd.f32 %v2592_v40, %v2386_v32 }
 0x294   : > { %4840 = vmatmul.msk.f32.gmra.mxu3 %vm341_vm0, %v2161_v60 }
 0x295   : > { %4872 = vmatmul.msk.f32.gmra.mxu0 %vm341_vm0, %v2435_v15  ;;  %v2696_v51 = vadd.f32 %v6189_v30, %v2660_v7 }
 0x296   : > { %v2047_v33 = vpop.f32.mrf.mxu2 }
 0x297   : > { %v2321_v54 = vpop.f32.mrf.mxu3  ;;  %v2113_v28 = vadd.f32 %v2047_v33, %v1839_v9  ;;  %v2728_v49 = vmax.f32 %v2696_v51, 0.0 }
 0x299   : > { %v2387_v56 = vadd.f32 %v2321_v54, %v2113_v28 }
 0x29a   : > { %v2598_v55 = vpop.f32.mrf.mxu0 }
 0x29b   : > { %v2661_v42 = vadd.f32 %v2595_v12, %v2387_v56  ;;  %v1843_v12 = vadd.f32 %v6001_v25, %v6016_v48 }
 0x29d   : > { %v2697_v29 = vadd.f32 %v6189_v30, %v2661_v42 }
 0x29e   : > { %v2050_v10 = vpop.f32.mrf.mxu2 }
 0x29f   : > { %v2324_v3 = vpop.f32.mrf.mxu3  ;;  %v2729_v36 = vmax.f32 %v2697_v29, 0.0  ;;  %v2114_v52 = vadd.f32 %v2050_v10, %v5988_v31 }
 0x2a1   : > { %v2753_v13 = vpack.c.bf16 %v2729_v36, %v2728_v49  ;;  %v2388_v57 = vadd.f32 %v2324_v3, %v2114_v52 }
 0x2a2   : > { %v2601_v45 = vpop.f32.mrf.mxu0 }
 0x2a3   : > { %2873 = vmatmul.bf16.gmra.mxu1 %v2753_v13  ;;  %v2662_v46 = vadd.f32 %v2598_v55, %v2388_v57 }
 0x2a5   : > { %v2698_v39 = vadd.f32 %v6189_v30, %v2662_v46 }
 0x2a6   : > { %v2053_v14 = vpop.f32.mrf.mxu2 }
 0x2a7   : > { %v2327_v50 = vpop.f32.mrf.mxu3  ;;  %v2115_v62 = vadd.f32 %v2053_v14, %v1841_v1  ;;  %v2730_v59 = vmax.f32 %v2698_v39, 0.0 }
 0x2a9   : > { %v2389_v40 = vadd.f32 %v2327_v50, %v2115_v62 }
 0x2aa   : > { %v2604_v21 = vpop.f32.mrf.mxu0 }
 0x2ab   : > { %v2663_v0 = vadd.f32 %v2601_v45, %v2389_v40  ;;  %v1845_v45 = vadd.f32 %v6024_v35, %v6037_v11  ;;  %v6355_v35 = vpop.permute.xlu0 %3344 }
 0x2ad   : > { %v2699_v31 = vadd.f32 %v6189_v30, %v2663_v0 }
 0x2ae   : > { %v2056_v24 = vpop.f32.mrf.mxu2 }
 0x2af   : > { %v2330_v19 = vpop.f32.mrf.mxu3  ;;  %v2731_v23 = vmax.f32 %v2699_v31, 0.0  ;;  %v2116_v53 = vadd.f32 %v2056_v24, %v6011_v34 }
 0x2b0   : > { %v2839_v22 = vpop.f32.mrf.mxu1 }
 0x2b1   : > { %v6329_v37 = vadd.f32 %v6325_v8, %v2839_v22  ;;  %v2754_v38 = vpack.c.bf16 %v2731_v23, %v2730_v59  ;;  %v2390_v60 = vadd.f32 %v2330_v19, %v2116_v53  ;;  %v6358_v22 = vpop.permute.xlu2 %3341 }
 0x2b2   : > { %v2607_v27 = vpop.f32.mrf.mxu0 }
 0x2b3   : > { %2878 = vmatmul.bf16.gmra.mxu1 %v2754_v38  ;;  %2919 = vmax.xlane.f32.xlu0 %v6329_v37  ;;  %v2664_v32 = vadd.f32 %v2604_v21, %v2390_v60  ;;  %v6350_v21 = vpop.permute.xlu1 %3338 }
 0x2b5   : > { %v2700_v56 = vadd.f32 %v6189_v30, %v2664_v32  ;;  %v1847_v32 = vadd.f32 %v6045_v20, %v6066_v43 }
 0x2b6   : > { %v2059_v15 = vpop.f32.mrf.mxu2 }
 0x2b7   : > { %v2117_v9 = vadd.f32 %v2059_v15, %v1843_v12  ;;  %v2333_v33 = vpop.f32.mrf.mxu3  ;;  %v2732_v29 = vmax.f32 %v2700_v56, 0.0 }
 0x2b8   : > { %v2841_v54 = vpop.f32.mrf.mxu1 }
 0x2b9   : > { %v2391_v7 = vadd.f32 %v2333_v33, %v2117_v9  ;;  %v6335_v34 = vadd.f32 %v6325_v8, %v2841_v54 }
 0x2ba   : > { %v2610_v28 = vpop.f32.mrf.mxu0 }
 0x2bb   : > { %v2665_v55 = vadd.f32 %v2607_v27, %v2391_v7  ;;  %2921 = vmax.xlane.f32.xlu0 %v6335_v34  ;;  %v6364_v15 = vpop.permute.xlu1 %3350  ;;  %v6368_v7 = vpop.permute.xlu0 %3365 }
 0x2bd   : > { %v2701_v51 = vadd.f32 %v6189_v30, %v2665_v55 }
 0x2be   : > { %v2062_v42 = vpop.f32.mrf.mxu2 }
 0x2bf   : > { %v2733_v25 = vmax.f32 %v2701_v51, 0.0  ;;  %v2118_v48 = vadd.f32 %v2062_v42, %v6031_v63  ;;  %v2336_v10 = vpop.f32.mrf.mxu3  ;;  %v6373_v42 = vpop.permute.xlu2 %3347 }
 0x2c0   : > { %v2844_v3 = vpop.f32.mrf.mxu1 }
 0x2c1   : > { %v6342_v49 = vadd.f32 %v6325_v8, %v2844_v3  ;;  %v2755_v36 = vpack.c.bf16 %v2733_v25, %v2732_v29  ;;  %v2392_v13 = vadd.f32 %v2336_v10, %v2118_v48 }
 0x2c2   : > { %v2613_v52 = vpop.f32.mrf.mxu0 }
 0x2c3   : > { %2883 = vmatmul.bf16.gmra.mxu1 %v2755_v36  ;;  %2923 = vmax.xlane.f32.xlu1 %v6342_v49  ;;  %v2666_v1 = vadd.f32 %v2610_v28, %v2392_v13  ;;  %v6378_v43 = vpop.permute.xlu1 %3356 }
 0x2c5   : > { %v2702_v39 = vadd.f32 %v6189_v30, %v2666_v1 }
 0x2c6   : > { %v2065_v57 = vpop.f32.mrf.mxu2 }
 0x2c7   : > { %v2119_v14 = vadd.f32 %v2065_v57, %v1845_v45  ;;  %v2339_v50 = vpop.f32.mrf.mxu3  ;;  %v2734_v24 = vmax.f32 %v2702_v39, 0.0 }
 0x2c8   : > { %v2846_v46 = vpop.f32.mrf.mxu1 }
 0x2c9   : > { %v2393_v63 = vadd.f32 %v2339_v50, %v2119_v14  ;;  %v6348_v62 = vadd.f32 %v6325_v8, %v2846_v46  ;;  %v6384_v14 = vpop.permute.xlu0 %3374  ;;  %v1849_v46 = vadd.f32 %v6074_v61, %v6091_v6 }
 0x2ca   : > { %v2616_v40 = vpop.f32.mrf.mxu0 }
 0x2cb   : > { %v2667_v0 = vadd.f32 %v2613_v52, %v2393_v63  ;;  %2925 = vmax.xlane.f32.xlu1 %v6348_v62  ;;  %v6389_v63 = vpop.permute.xlu2 %3353 }
 0x2cd   : > { %v2703_v31 = vadd.f32 %v6189_v30, %v2667_v0 }
 0x2ce   : > { %v2068_v11 = vpop.f32.mrf.mxu2 }
 0x2cf   : > { %v2735_v19 = vmax.f32 %v2703_v31, 0.0  ;;  %v2120_v59 = vadd.f32 %v2068_v11, %v6055_v2  ;;  %v2342_v23 = vpop.f32.mrf.mxu3  ;;  %v6391_v31 = vpop.permute.xlu1 %3362 }
 0x2d0   : > { %v2849_v53 = vpop.f32.mrf.mxu1 }
 0x2d1   : > { %v6361_v38 = vadd.f32 %v6325_v8, %v2849_v53  ;;  %v2756_v27 = vpack.c.bf16 %v2735_v19, %v2734_v24  ;;  %v2394_v12 = vadd.f32 %v2342_v23, %v2120_v59  ;;  %v6398_v61 = vpop.permute.xlu0 %3383 }
 0x2d2   : > { %v2619_v60 = vpop.f32.mrf.mxu0 }
 0x2d3   : > { %2888 = vmatmul.bf16.gmra.mxu1 %v2756_v27  ;;  %2927 = vmax.xlane.f32.xlu2 %v6361_v38  ;;  %v2668_v2 = vadd.f32 %v2616_v40, %v2394_v12 }
 0x2d5   : > { %v2704_v29 = vadd.f32 %v6189_v30, %v2668_v2 }
 0x2d6   : > { %v2071_v9 = vpop.f32.mrf.mxu2 }
 0x2d7   : > { %v2121_v33 = vadd.f32 %v2071_v9, %v1847_v32  ;;  %v2345_v54 = vpop.f32.mrf.mxu3  ;;  %v2736_v10 = vmax.f32 %v2704_v29, 0.0 }
 0x2d8   : > { %v2851_v28 = vpop.f32.mrf.mxu1 }
 0x2d9   : > { %v2395_v56 = vadd.f32 %v2345_v54, %v2121_v33  ;;  %v6371_v55 = vadd.f32 %v6325_v8, %v2851_v28 }
 0x2da   : > { %v2622_v51 = vpop.f32.mrf.mxu0 }
 0x2db   : > { %v2669_v25 = vadd.f32 %v2619_v60, %v2395_v56  ;;  %2929 = vmax.xlane.f32.xlu2 %v6371_v55  ;;  %v6401_v60 = vpop.permute.xlu2 %3359 }
 0x2dd   : > { %v2705_v20 = vadd.f32 %v6189_v30, %v2669_v25  ;;  %v1851_v25 = vadd.f32 %v6106_v44, %v6120_v4 }
 0x2de   : > { %v2074_v48 = vpop.f32.mrf.mxu2 }
 0x2df   : > { %v2737_v3 = vmax.f32 %v2705_v20, 0.0  ;;  %v2122_v36 = vadd.f32 %v2074_v48, %v6083_v26  ;;  %v2348_v52 = vpop.f32.mrf.mxu3  ;;  %v6412_v20 = vpop.permute.xlu0 %3392 }
 0x2e0   : > { %v2854_v13 = vpop.f32.mrf.mxu1 }
 0x2e1   : > { %v6382_v45 = vadd.f32 %v6325_v8, %v2854_v13  ;;  %v2757_v57 = vpack.c.bf16 %v2737_v3, %v2736_v10  ;;  %v2396_v50 = vadd.f32 %v2348_v52, %v2122_v36 }
 0x2e2   : > { %v2625_v1 = vpop.f32.mrf.mxu0 }
 0x2e3   : > { %2893 = vmatmul.bf16.gmra.mxu1 %v2757_v57  ;;  %2931 = vmax.xlane.f32.xlu0 %v6382_v45  ;;  %v2670_v26 = vadd.f32 %v2622_v51, %v2396_v50  ;;  %v6407_v51 = vpop.permute.xlu1 %3371  ;;  %v6414_v52 = vpop.permute.xlu2 %3368 }
 0x2e5   : > { %v2706_v23 = vadd.f32 %v6189_v30, %v2670_v26 }
 0x2e6   : > { %v2077_v40 = vpop.f32.mrf.mxu2 }
 0x2e7   : > { %v2123_v39 = vadd.f32 %v2077_v40, %v1849_v46  ;;  %v2351_v0 = vpop.f32.mrf.mxu3  ;;  %v2738_v12 = vmax.f32 %v2706_v23, 0.0 }
 0x2e8   : > { %v2856_v11 = vpop.f32.mrf.mxu1 }
 0x2e9   : > { %v2397_v24 = vadd.f32 %v2351_v0, %v2123_v39  ;;  %v6394_v19 = vadd.f32 %v6325_v8, %v2856_v11 }
 0x2ea   : > { %v2628_v59 = vpop.f32.mrf.mxu0 }
 0x2eb   : > { %v2671_v53 = vadd.f32 %v2625_v1, %v2397_v24  ;;  %2933 = vmax.xlane.f32.xlu1 %v6394_v19  ;;  %v6421_v44 = vpop.permute.xlu1 %3380  ;;  %v6425_v24 = vpop.permute.xlu0 %3401 }
 0x2ed   : > { %v2707_v6 = vadd.f32 %v6189_v30, %v2671_v53 }
 0x2ee   : > { %v2080_v27 = vpop.f32.mrf.mxu2 }
 0x2ef   : > { %v2739_v32 = vmax.f32 %v2707_v6, 0.0  ;;  %v2124_v9 = vadd.f32 %v2080_v27, %v6112_v58  ;;  %v2354_v2 = vpop.f32.mrf.mxu3  ;;  %v6430_v6 = vpop.permute.xlu2 %3377 }
 0x2f0   : > { %v2859_v33 = vpop.f32.mrf.mxu1 }
 0x2f1   : > { %v6405_v54 = vadd.f32 %v6325_v8, %v2859_v33  ;;  %v2758_v28 = vpack.c.bf16 %v2739_v32, %v2738_v12  ;;  %v2398_v29 = vadd.f32 %v2354_v2, %v2124_v9  ;;  %v1853_v32 = vadd.f32 %v6139_v18, %v6146_v41 }
 0x2f2   : > { %v2631_v56 = vpop.f32.mrf.mxu0 }
 0x2f3   : > { %2898 = vmatmul.bf16.gmra.mxu1 %v2758_v28  ;;  %2935 = vmax.xlane.f32.xlu2 %v6405_v54  ;;  %v2672_v58 = vadd.f32 %v2628_v59, %v2398_v29  ;;  %v6435_v9 = vpop.permute.xlu1 %3389 }
 0x2f5   : > { %v2708_v50 = vadd.f32 %v6189_v30, %v2672_v58 }
 0x2f6   : > { %v2083_v48 = vpop.f32.mrf.mxu2 }
 0x2f7   : > { %v2125_v10 = vadd.f32 %v2083_v48, %v1851_v25  ;;  %v2357_v3 = vpop.f32.mrf.mxu3  ;;  %v2740_v26 = vmax.f32 %v2708_v50, 0.0  ;;  %v6440_v48 = vpop.permute.xlu0 %3410 }
 0x2f8   : > { %v2861_v36 = vpop.f32.mrf.mxu1  ;;  %7812 = vst [vmem:[#allocation5_spill] sm:$0xff] %v6440_v48 }
 0x2f9   : > { %v2399_v13 = vadd.f32 %v2357_v3, %v2125_v10  ;;  %v6417_v57 = vadd.f32 %v6325_v8, %v2861_v36  ;;  %v6444_v3 = vpop.permute.xlu2 %3386 }
 0x2fa   : > { %v2634_v1 = vpop.f32.mrf.mxu0 }
 0x2fb   : > { %v2673_v46 = vadd.f32 %v2631_v56, %v2399_v13  ;;  %2937 = vmax.xlane.f32.xlu0 %v6417_v57 }
 0x2fd   : > { %v2709_v4 = vadd.f32 %v6189_v30, %v2673_v46 }
 0x2fe   : > { %v2086_v40 = vpop.f32.mrf.mxu2 }
 0x2ff   : > { %v2741_v39 = vmax.f32 %v2709_v4, 0.0  ;;  %v2126_v0 = vadd.f32 %v2086_v40, %v6136_v16  ;;  %v2360_v11 = vpop.f32.mrf.mxu3  ;;  %v6448_v4 = vpop.permute.xlu1 %3398 }
 0x300   : > { %v2864_v59 = vpop.f32.mrf.mxu1 }
 0x301   : > { %v6428_v23 = vadd.f32 %v6325_v8, %v2864_v59  ;;  %v2759_v53 = vpack.c.bf16 %v2741_v39, %v2740_v26  ;;  %v2400_v27 = vadd.f32 %v2360_v11, %v2126_v0  ;;  %v6454_v11 = vpop.permute.xlu0 %3419  ;;  %v1855_v59 = vadd.f32 %v6318_v5, %v6171_v17 }
 0x302   : > { %v2637_v12 = vpop.f32.mrf.mxu0  ;;  %7813 = vst [vmem:[#allocation8_spill] sm:$0xff] %v6454_v11 }
 0x303   : > { %2903 = vmatmul.bf16.gmra.mxu1 %v2759_v53  ;;  %2939 = vmax.xlane.f32.xlu1 %v6428_v23  ;;  %v2674_v2 = vadd.f32 %v2634_v1, %v2400_v27  ;;  %v6458_v27 = vpop.permute.xlu2 %3395 }
 0x305   : > { %v2710_v58 = vadd.f32 %v6189_v30, %v2674_v2 }
 0x306   : > { %v2089_v16 = vpop.f32.mrf.mxu2 }
 0x307   : > { %v2127_v33 = vadd.f32 %v2089_v16, %v1853_v32  ;;  %v2363_v28 = vpop.f32.mrf.mxu3  ;;  %v2742_v13 = vmax.f32 %v2710_v58, 0.0 }
 0x308   : > { %v2866_v56 = vpop.f32.mrf.mxu1 }
 0x309   : > { %v2401_v29 = vadd.f32 %v2363_v28, %v2127_v33  ;;  %v6438_v25 = vadd.f32 %v6325_v8, %v2866_v56  ;;  %v6463_v56 = vpop.permute.xlu1 %3407  ;;  %v6468_v5 = vpop.permute.xlu0 %3428 }
 0x30a   : > { %v2640_v36 = vpop.f32.mrf.mxu0  ;;  %7814 = vst [vmem:[#allocation6_spill] sm:$0xff] %v6463_v56 }
 0x30b   : > { %v2675_v10 = vadd.f32 %v2637_v12, %v2401_v29  ;;  %2941 = vmax.xlane.f32.xlu2 %v6438_v25  ;;  %7815 = vst [vmem:[#allocation10_spill] sm:$0xff] %v6468_v5 }
 0x30d   : > { %v2711_v18 = vadd.f32 %v6189_v30, %v2675_v10 }
 0x30e   : > { %v2092_v41 = vpop.f32.mrf.mxu2 }
 0x30f   : > { %v2743_v1 = vmax.f32 %v2711_v18, 0.0  ;;  %v2128_v50 = vadd.f32 %v2092_v41, %v6162_v47  ;;  %v2366_v46 = vpop.f32.mrf.mxu3 }
 0x310   : > { %v2869_v40 = vpop.f32.mrf.mxu1 }
 0x311   : > { %v6451_v26 = vadd.f32 %v6325_v8, %v2869_v40  ;;  %v2760_v39 = vpack.c.bf16 %v2743_v1, %v2742_v13  ;;  %v2402_v0 = vadd.f32 %v2366_v46, %v2128_v50  ;;  %v3335_v50 = vlaneseq  ;;  %v6476_v46 = vpop.permute.xlu1 %3416 }
 0x312   : > { %v2643_v2 = vpop.f32.mrf.mxu0  ;;  %7816 = vst [vmem:[#allocation7_spill] sm:$0xff] %v6476_v46 }
 0x313   : > { %2908 = vmatmul.bf16.gmra.mxu1 %v2760_v39  ;;  %2943 = vmax.xlane.f32.xlu0 %v6451_v26  ;;  %v2676_v47 = vadd.f32 %v2640_v36, %v2402_v0  ;;  %v6470_v36 = vpop.permute.xlu2 %3404  ;;  %v6478_v40 = vand.u32 127, %v3335_v50 }
 0x315   : > { %v2712_v29 = vadd.f32 %v6189_v30, %v2676_v47  ;;  %vm3433_vm1 = vcmp.eq.s32.totalorder %v6478_v40, %v6350_v21  ;;  %vm3435_vm4 = vcmp.eq.s32.totalorder %v6478_v40, %v6355_v35  ;;  %vm3434_vm5 = vcmp.eq.s32.totalorder %v6478_v40, %v6358_v22 }
 0x316   : > { %v2095_v53 = vpop.f32.mrf.mxu2  ;;  %vm3436_vm8 = vcmp.eq.s32.totalorder %v6478_v40, %v6373_v42  ;;  %vm3437_vm10 = vcmp.eq.s32.totalorder %v6478_v40, %v6364_v15  ;;  %vm3438_vm12 = vcmp.eq.s32.totalorder %v6478_v40, %v6389_v63  ;;  %vm3439_vm14 = vcmp.eq.s32.totalorder %v6478_v40, %v6378_v43 }
 0x317   : > { %v2129_v12 = vadd.f32 %v2095_v53, %v1855_v59  ;;  %v2369_v32 = vpop.f32.mrf.mxu3  ;;  %v2744_v10 = vmax.f32 %v2712_v29, 0.0  ;;  %vm3440_vm0 = vcmp.eq.s32.totalorder %v6478_v40, %v6401_v60 }
 0x318   : > { %v2871_v16 = vpop.f32.mrf.mxu1 }
 0x319   : > { %v2403_v33 = vadd.f32 %v2369_v32, %v2129_v12  ;;  %v6461_v28 = vadd.f32 %v6325_v8, %v2871_v16  ;;  %v6493_v16 = vpop.permute.xlu1 %3425 }
 0x31a   : > { %7818 = vst [vmem:[#allocation9_spill] sm:$0xff] %v6493_v16 }
 0x31b   : > { %v2677_v58 = vadd.f32 %v2643_v2, %v2403_v33  ;;  %2945 = vmax.xlane.f32.xlu1 %v6461_v28  ;;  %v6489_v32 = vpop.permute.xlu2 %3413 }
 0x31c   : > { %7817 = vst [vmem:[#allocation12_spill] sm:$0xff] %v6489_v32 }
 0x31d   : > { %v2713_v17 = vadd.f32 %v6189_v30, %v2677_v58 }
 0x31f   : > { %v2745_v18 = vmax.f32 %v2713_v17, 0.0 }
 0x320   : > { %v2874_v41 = vpop.f32.mrf.mxu1 }
 0x321   : > { %v6473_v13 = vadd.f32 %v6325_v8, %v2874_v41  ;;  %v2761_v1 = vpack.c.bf16 %v2745_v18, %v2744_v10 }
 0x323   : > { %2913 = vmatmul.bf16.gmra.mxu1 %v2761_v1  ;;  %2947 = vmax.xlane.f32.xlu2 %v6473_v13  ;;  %v6506_v18 = vpop.permute.xlu2 %3422 }
 0x324   : > { %7819 = vst [vmem:[#allocation14_spill] sm:$0xff] %v6506_v18 }
 0x326   : > { %v2920_v30 = vpop.xlane.xlu0 %2919 }
 0x327   : > { %v2983_v39 = vsub.f32 %v6329_v37, %v2920_v30 }
 0x328   : > { %v2876_v0 = vpop.f32.mrf.mxu1 }
 0x329   : > { %v3015_v59 = vmul.f32 1.442695, %v2983_v39  ;;  %v6484_v53 = vadd.f32 %v6325_v8, %v2876_v0  ;;  %v3465_v47 = vsel %vm3433_vm1, %v2983_v39, 0.0  ;;  %vm3698_vm2 = vcmp.ge.f32.partialorder %v2983_v39, 0.0 }
 0x32a   : > { %3497 = vadd.xlane.f32.xlu1 %v3465_v47  ;;  %v6487_v12 = vsel %vm3698_vm2, %v6478_v40, 128  ;;  %vm3441_vm2 = vcmp.eq.s32.totalorder %v6478_v40, %v6391_v31 }
 0x32b   : > { %2949 = vmax.xlane.f32.xlu0 %v6484_v53  ;;  %5038 = vpow2.f32 %v3015_v59  ;;  %v3763_v37 = vshra.s32 %v6487_v12, 16 }
 0x32d   : > { %v6499_v17 = vcvt.s32.f32 %v3763_v37 }
 0x32e   : > { %v2922_v21 = vpop.xlane.xlu0 %2921 }
 0x32f   : > { %v2984_v2 = vsub.f32 %v6335_v34, %v2922_v21 }
 0x330   : > { %v2879_v33 = vpop.f32.mrf.mxu1 }
 0x331   : > { %v5039_v29 = vpop.eup %5038  ;;  %v6497_v58 = vadd.f32 %v6325_v8, %v2879_v33  ;;  %vm3699_vm3 = vcmp.ge.f32.partialorder %v2984_v2, 0.0  ;;  %v3017_v50 = vmul.f32 1.442695, %v2984_v2  ;;  %v3466_v47 = vsel %vm3434_vm5, %v2984_v2, 0.0 }
 0x332   : > { %3079 = vadd.xlane.f32.xlu2 %v5039_v29  ;;  %v6502_v10 = vsel %vm3699_vm3, %v6478_v40, 128 }
 0x333   : > { %3766 = vmin.xlane.f32.xlu0 %v6499_v17  ;;  %2951 = vmax.xlane.f32.xlu1 %v6497_v58  ;;  %v3777_v34 = vshra.s32 %v6502_v10, 16 }
 0x335   : > { %v6512_v0 = vcvt.s32.f32 %v3777_v34 }
 0x336   : > { %v2924_v41 = vpop.xlane.xlu1 %2923 }
 0x337   : > { %v2985_v1 = vsub.f32 %v6342_v49, %v2924_v41  ;;  %v6517_v49 = vpop.permute.xlu2 %3431 }
 0x338   : > { %v2881_v59 = vpop.f32.mrf.mxu1  ;;  %7820 = vst [vmem:[#allocation11_spill] sm:$0xff] %v6517_v49 }
 0x339   : > { %v3019_v30 = vmul.f32 1.442695, %v2985_v1  ;;  %v3467_v39 = vsel %vm3435_vm4, %v2985_v1, 0.0  ;;  %vm3700_vm6 = vcmp.ge.f32.partialorder %v2985_v1, 0.0  ;;  %v6520_v35 = vadd.f32 %v6325_v8, %v2881_v59 }
 0x33a   : > { %3501 = vadd.xlane.f32.xlu2 %v3467_v39  ;;  %v6523_v33 = vsel %vm3700_vm6, %v6478_v40, 128  ;;  %vm3442_vm4 = vcmp.eq.s32.totalorder %v6478_v40, %v6368_v7  ;;  %vm3443_vm6 = vcmp.eq.s32.totalorder %v6478_v40, %v6414_v52 }
 0x33b   : > { %3780 = vmin.xlane.f32.xlu1 %v6512_v0  ;;  %3499 = vadd.xlane.f32.xlu0 %v3466_v47  ;;  %5040 = vpow2.f32 %v3019_v30  ;;  %v3791_v34 = vshra.s32 %v6523_v33, 16 }
 0x33c   : > { %5042 = vpow2.f32 %v3017_v50 }
 0x33d   : > { %v6528_v50 = vcvt.s32.f32 %v3791_v34 }
 0x33e   : > { %v2926_v37 = vpop.xlane.xlu1 %2925 }
 0x33f   : > { %v2986_v2 = vsub.f32 %v6348_v62, %v2926_v37 }
 0x340   : > { %v2884_v29 = vpop.f32.mrf.mxu1 }
 0x341   : > { %v5041_v21 = vpop.eup %5040  ;;  %v3021_v41 = vmul.f32 1.442695, %v2986_v2  ;;  %vm3701_vm7 = vcmp.ge.f32.partialorder %v2986_v2, 0.0  ;;  %v6531_v30 = vadd.f32 %v6325_v8, %v2884_v29  ;;  %v3468_v39 = vsel %vm3436_vm8, %v2986_v2, 0.0 }
 0x342   : > { %v5043_v22 = vpop.eup %5042  ;;  %2953 = vmax.xlane.f32.xlu2 %v6520_v35  ;;  %v6537_v62 = vsel %vm3701_vm7, %v6478_v40, 128  ;;  %vm3444_vm8 = vcmp.eq.s32.totalorder %v6478_v40, %v6407_v51 }
 0x343   : > { %3083 = vadd.xlane.f32.xlu1 %v5041_v21  ;;  %3081 = vadd.xlane.f32.xlu0 %v5043_v22  ;;  %5044 = vpow2.f32 %v3021_v41  ;;  %v3805_v47 = vshra.s32 %v6537_v62, 16 }
 0x345   : > { %v6545_v2 = vcvt.s32.f32 %v3805_v47 }
 0x346   : > { %v2928_v1 = vpop.xlane.xlu2 %2927 }
 0x347   : > { %v2987_v59 = vsub.f32 %v6361_v38, %v2928_v1 }
 0x348   : > { %v2886_v37 = vpop.f32.mrf.mxu1 }
 0x349   : > { %vm3702_vm9 = vcmp.ge.f32.partialorder %v2987_v59, 0.0  ;;  %v3023_v21 = vmul.f32 1.442695, %v2987_v59  ;;  %v5045_v22 = vpop.eup %5044  ;;  %v6543_v42 = vadd.f32 %v6325_v8, %v2886_v37 }
 0x34a   : > { %3794 = vmin.xlane.f32.xlu2 %v6528_v50  ;;  %v6548_v34 = vsel %vm3702_vm9, %v6478_v40, 128 }
 0x34b   : > { %3503 = vadd.xlane.f32.xlu1 %v3468_v39  ;;  %2955 = vmax.xlane.f32.xlu0 %v6531_v30  ;;  %5046 = vpow2.f32 %v3023_v21  ;;  %v3819_v41 = vshra.s32 %v6548_v34, 16  ;;  %v3469_v39 = vsel %vm3437_vm10, %v2987_v59, 0.0  ;;  %vm3445_vm10 = vcmp.eq.s32.totalorder %v6478_v40, %v6384_v14 }
 0x34d   : > { %v6556_v47 = vcvt.s32.f32 %v3819_v41 }
 0x34e   : > { %v2930_v29 = vpop.xlane.xlu2 %2929 }
 0x34f   : > { %v2988_v38 = vsub.f32 %v6371_v55, %v2930_v29 }
 0x351   : > { %v3025_v1 = vmul.f32 1.442695, %v2988_v38  ;;  %v5047_v37 = vpop.eup %5046  ;;  %vm3703_vm11 = vcmp.ge.f32.partialorder %v2988_v38, 0.0  ;;  %v3470_v29 = vsel %vm3438_vm12, %v2988_v38, 0.0  ;;  %vm3446_vm12 = vcmp.eq.s32.totalorder %v6478_v40, %v6430_v6  ;;  %v6707_v6 = vld [vmem:[%s6060_s26 + $0x10] sm:$0xff] }
 0x352   : > { %3085 = vadd.xlane.f32.xlu2 %v5045_v22  ;;  %v2889_v22 = vpop.f32.mrf.mxu1  ;;  %v6565_v15 = vsel %vm3703_vm11, %v6478_v40, 128  ;;  %7838 = vst [vmem:[#allocation31_spill] sm:$0xff] %v6707_v6 }
 0x353   : > { %2957 = vmax.xlane.f32.xlu1 %v6543_v42  ;;  %3808 = vmin.xlane.f32.xlu0 %v6545_v2  ;;  %5048 = vpow2.f32 %v3025_v1  ;;  %v6560_v55 = vadd.f32 %v6325_v8, %v2889_v22 }
 0x356   : > { %v2932_v21 = vpop.xlane.xlu0 %2931 }
 0x357   : > { %v2989_v41 = vsub.f32 %v6382_v45, %v2932_v21 }
 0x359   : > { %v5049_v59 = vpop.eup %5048  ;;  %vm3704_vm13 = vcmp.ge.f32.partialorder %v2989_v41, 0.0  ;;  %v3471_v38 = vsel %vm3439_vm14, %v2989_v41, 0.0 }
 0x35a   : > { %3505 = vadd.xlane.f32.xlu2 %v3469_v39  ;;  %v2891_v1 = vpop.f32.mrf.mxu1  ;;  %v3833_v39 = vshra.s32 %v6565_v15, 16  ;;  %v6579_v45 = vsel %vm3704_vm13, %v6478_v40, 128 }
 0x35b   : > { %3822 = vmin.xlane.f32.xlu1 %v6556_v47  ;;  %3087 = vadd.xlane.f32.xlu0 %v5047_v37  ;;  %v3027_v37 = vmul.f32 1.442695, %v2989_v41  ;;  %v6573_v63 = vadd.f32 %v6325_v8, %v2891_v1 }
 0x35c   : > { %v6570_v5 = vcvt.s32.f32 %v3833_v39 }
 0x35d   : > { %5050 = vpow2.f32 %v3027_v37 }
 0x35e   : > { %v2934_v22 = vpop.xlane.xlu1 %2933 }
 0x35f   : > { %v2990_v21 = vsub.f32 %v6394_v19, %v2934_v22 }
 0x361   : > { %vm3705_vm15 = vcmp.ge.f32.partialorder %v2990_v21, 0.0  ;;  %v3029_v1 = vmul.f32 1.442695, %v2990_v21 }
 0x362   : > { %2959 = vmax.xlane.f32.xlu2 %v6560_v55  ;;  %v6590_v16 = vsel %vm3705_vm15, %v6478_v40, 128  ;;  %vm3241_vm15 = vcmp.ge.s32.totalorder %v6707_v6, 0 }
 0x363   : > { %3089 = vadd.xlane.f32.xlu1 %v5049_v59  ;;  %3507 = vadd.xlane.f32.xlu0 %v3470_v29  ;;  %v3847_v59 = vshra.s32 %v6579_v45, 16  ;;  %v2894_v29 = vpop.f32.mrf.mxu1  ;;  %v5051_v39 = vpop.eup %5050  ;;  %5052 = vpow2.f32 %v3029_v1  ;;  %v3861_v37 = vshra.s32 %v6590_v16, 16 }
 0x364   : > { %v6585_v43 = vadd.f32 %v6325_v8, %v2894_v29 }
 0x365   : > { %v6587_v41 = vcvt.s32.f32 %v3847_v59  ;;  %v6598_v59 = vcvt.s32.f32 %v3861_v37 }
 0x366   : > { %v2936_v49 = vpop.xlane.xlu2 %2935 }
 0x367   : > { %v2991_v19 = vsub.f32 %v6405_v54, %v2936_v49 }
 0x369   : > { %v3031_v22 = vmul.f32 1.442695, %v2991_v19  ;;  %v5053_v29 = vpop.eup %5052  ;;  %vm3706_vm1 = vcmp.ge.f32.partialorder %v2991_v19, 0.0  ;;  %v3473_v1 = vsel %vm3441_vm2, %v2991_v19, 0.0  ;;  %vm3625_vm2 = vcmask 7168  }
 0x36a   : > { %3836 = vmin.xlane.f32.xlu2 %v6570_v5  ;;  %v6607_v60 = vsel %vm3706_vm1, %v6478_v40, 128  ;;  %vm3447_vm1 = vcmp.eq.s32.totalorder %v6478_v40, %v6421_v44  ;;  %v3762_v44 = vand.u32 65535, %v6487_v12 }
 0x36b   : > { %2961 = vmax.xlane.f32.xlu0 %v6573_v63  ;;  %3509 = vadd.xlane.f32.xlu1 %v3471_v38  ;;  %v3472_v38 = vsel %vm3440_vm0, %v2990_v21, 0.0  ;;  %5054 = vpow2.f32 %v3031_v22 }
 0x36e   : > { %v2938_v49 = vpop.xlane.xlu0 %2937 }
 0x36f   : > { %v2992_v37 = vsub.f32 %v6417_v57, %v2938_v49 }
 0x371   : > { %v5055_v21 = vpop.eup %5054  ;;  %vm3707_vm3 = vcmp.ge.f32.partialorder %v2992_v37, 0.0  ;;  %v3474_v19 = vsel %vm3442_vm4, %v2992_v37, 0.0 }
 0x372   : > { %3091 = vadd.xlane.f32.xlu2 %v5051_v39  ;;  %v2896_v39 = vpop.f32.mrf.mxu1  ;;  %v6621_v57 = vsel %vm3707_vm3, %v6478_v40, 128 }
 0x373   : > { %3850 = vmin.xlane.f32.xlu0 %v6587_v41  ;;  %2963 = vmax.xlane.f32.xlu1 %v6585_v43  ;;  %v6602_v54 = vadd.f32 %v6325_v8, %v2896_v39  ;;  %7822 = vst [vmem:[#allocation13_spill] sm:$0xff] %v6621_v57 }
 0x376   : > { %v2940_v39 = vpop.xlane.xlu1 %2939 }
 0x377   : > { %v2993_v49 = vsub.f32 %v6428_v23, %v2940_v39 }
 0x379   : > { %vm3708_vm5 = vcmp.ge.f32.partialorder %v2993_v49, 0.0 }
 0x37a   : > { %3511 = vadd.xlane.f32.xlu2 %v3472_v38  ;;  %v2899_v22 = vpop.f32.mrf.mxu1  ;;  %v3875_v38 = vshra.s32 %v6607_v60, 16  ;;  %v6632_v46 = vsel %vm3708_vm5, %v6478_v40, 128 }
 0x37b   : > { %3093 = vadd.xlane.f32.xlu0 %v5053_v29  ;;  %3864 = vmin.xlane.f32.xlu1 %v6598_v59  ;;  %v3033_v29 = vmul.f32 1.442695, %v2992_v37  ;;  %v6615_v31 = vadd.f32 %v6325_v8, %v2899_v22  ;;  %v3035_v22 = vmul.f32 1.442695, %v2993_v49  ;;  %7825 = vst [vmem:[#allocation20_spill] sm:$0xff] %v6632_v46  ;;  %v3903_v39 = vshra.s32 %v6632_v46, 16 }
 0x37c   : > { %v6612_v18 = vcvt.s32.f32 %v3875_v38 }
 0x37d   : > { %7821 = vst [vmem:[#allocation16_spill] sm:$0xff] %v6615_v31  ;;  %5056 = vpow2.f32 %v3033_v29  ;;  %v6640_v32 = vcvt.s32.f32 %v3903_v39 }
 0x37e   : > { %v2942_v11 = vpop.xlane.xlu2 %2941  ;;  %5058 = vpow2.f32 %v3035_v22 }
 0x37f   : > { %v2994_v23 = vsub.f32 %v6438_v25, %v2942_v11  ;;  %7826 = vst [vmem:[#allocation17_spill] sm:$0xff] %v6640_v32 }
 0x381   : > { %vm3709_vm7 = vcmp.ge.f32.partialorder %v2994_v23, 0.0 }
 0x382   : > { %2965 = vmax.xlane.f32.xlu2 %v6602_v54  ;;  %v6653_v52 = vsel %vm3709_vm7, %v6478_v40, 128  ;;  %vm3449_vm7 = vcmp.eq.s32.totalorder %v6478_v40, %v6444_v3 }
 0x383   : > { %3513 = vadd.xlane.f32.xlu0 %v3473_v1  ;;  %3095 = vadd.xlane.f32.xlu1 %v5055_v21  ;;  %v3889_v21 = vshra.s32 %v6621_v57, 16  ;;  %v2901_v1 = vpop.f32.mrf.mxu1  ;;  %v5057_v38 = vpop.eup %5056  ;;  %7828 = vst [vmem:[#allocation21_spill] sm:$0xff] %v6653_v52 }
 0x384   : > { %v6627_v7 = vadd.f32 %v6325_v8, %v2901_v1  ;;  %v3037_v1 = vmul.f32 1.442695, %v2994_v23  ;;  %v5059_v48 = vpop.eup %5058 }
 0x385   : > { %v6629_v37 = vcvt.s32.f32 %v3889_v21 }
 0x386   : > { %7823 = vst [vmem:[#allocation18_spill] sm:$0xff] %v6627_v7  ;;  %5060 = vpow2.f32 %v3037_v1 }
 0x387   : > { %7824 = vst [vmem:[#allocation15_spill] sm:$0xff] %v6629_v37 }
 0x38a   : > { %3878 = vmin.xlane.f32.xlu2 %v6612_v18 }
 0x38b   : > { %2967 = vmax.xlane.f32.xlu0 %v6615_v31  ;;  %3515 = vadd.xlane.f32.xlu1 %v3474_v19  ;;  %v2944_v19 = vpop.xlane.xlu0 %2943  ;;  %v2904_v21 = vpop.f32.mrf.mxu1 }
 0x38c   : > { %v6648_v46 = vadd.f32 %v6325_v8, %v2904_v21  ;;  %v2995_v39 = vsub.f32 %v6451_v26, %v2944_v19 }
 0x38e   : > { %v2946_v29 = vpop.xlane.xlu1 %2945  ;;  %7827 = vst [vmem:[#allocation19_spill] sm:$0xff] %v6648_v46  ;;  %v3039_v51 = vmul.f32 1.442695, %v2995_v39  ;;  %vm3710_vm9 = vcmp.ge.f32.partialorder %v2995_v39, 0.0  ;;  %v3477_v26 = vsel %vm3445_vm10, %v2995_v39, 0.0 }
 0x392   : > { %3097 = vadd.xlane.f32.xlu2 %v5057_v38  ;;  %v3475_v38 = vsel %vm3443_vm6, %v2993_v49, 0.0  ;;  %v5061_v49 = vpop.eup %5060  ;;  %vm3448_vm6 = vcmp.eq.s32.totalorder %v6478_v40, %v6398_v61 }
 0x393   : > { %3892 = vmin.xlane.f32.xlu0 %v6629_v37  ;;  %2969 = vmax.xlane.f32.xlu1 %v6627_v7  ;;  %v2906_v1 = vpop.f32.mrf.mxu1 }
 0x396   : > { %v2948_v25 = vpop.xlane.xlu2 %2947 }
 0x39a   : > { %3517 = vadd.xlane.f32.xlu2 %v3475_v38  ;;  %v3917_v38 = vshra.s32 %v6653_v52, 16 }
 0x39b   : > { %3099 = vadd.xlane.f32.xlu0 %v5059_v48  ;;  %3906 = vmin.xlane.f32.xlu1 %v6640_v32  ;;  %v3476_v48 = vsel %vm3444_vm8, %v2994_v23, 0.0  ;;  %v6671_v23 = vsel %vm3710_vm9, %v6478_v40, 128 }
 0x39c   : > { %v6662_v57 = vcvt.s32.f32 %v3917_v38  ;;  %7831 = vst [vmem:[#allocation24_spill] sm:$0xff] %v6671_v23  ;;  %v3931_v38 = vshra.s32 %v6671_v23, 16 }
 0x39d   : > { %v6643_v11 = vpop.xlane.xlu1 %3497 }
 0x39e   : > { %v6645_v22 = vpop.xlane.xlu0 %2949  ;;  %7829 = vst [vmem:[#allocation22_spill] sm:$0xff] %v6662_v57 }
 0x3a2   : > { %2971 = vmax.xlane.f32.xlu2 %v6648_v46  ;;  %v6665_v46 = vadd.f32 %v6325_v8, %v2906_v1 }
 0x3a3   : > { %3519 = vadd.xlane.f32.xlu0 %v3476_v48  ;;  %3101 = vadd.xlane.f32.xlu1 %v5061_v49  ;;  %v2909_v49 = vpop.f32.mrf.mxu1 }
 0x3a4   : > { %7830 = vst [vmem:[#allocation23_spill] sm:$0xff] %v6665_v46 }
 0x3a5   : > { %v3080_v32 = vpop.xlane.xlu2 %3079 }
 0x3a6   : > { %5062 = vlog2.f32 %v3080_v32  ;;  %v6658_v21 = vpop.xlane.xlu1 %2951  ;;  %v6660_v37 = vpop.xlane.xlu0 %3766  ;;  %v2996_v32 = vsub.f32 %v6461_v28, %v2946_v29  ;;  %v6680_v28 = vadd.f32 %v6325_v8, %v2909_v49  ;;  %v6682_v29 = vcvt.s32.f32 %v3931_v38 }
 0x3a7   : > { %5064 = vpow2.f32 %v3039_v51  ;;  %vm3768_vm3 = vcmp.eq.f32.partialorder %v6499_v17, %v6660_v37 }
 0x3a8   : > { %vm3711_vm11 = vcmp.ge.f32.partialorder %v2996_v32, 0.0  ;;  %7832 = vst [vmem:[#allocation25_spill] sm:$0xff] %v6680_v28  ;;  %v3478_v38 = vsel %vm3446_vm12, %v2996_v32, 0.0 }
 0x3a9   : > { %7833 = vst [vmem:[#allocation26_spill] sm:$0xff] %v6682_v29  ;;  %v6685_v51 = vsel %vm3711_vm11, %v6478_v40, 128 }
 0x3aa   : > { %3920 = vmin.xlane.f32.xlu2 %v6662_v57  ;;  %v3041_v57 = vmul.f32 1.442695, %v2996_v32  ;;  %7834 = vst [vmem:[#allocation27_spill] sm:$0xff] %v6685_v51 }
 0x3ab   : > { %2973 = vmax.xlane.f32.xlu0 %v6665_v46  ;;  %3521 = vadd.xlane.f32.xlu1 %v3477_v26  ;;  %v2997_v26 = vsub.f32 %v6473_v13, %v2948_v25  ;;  %v6698_v13 = vld [vmem:[%s6060_s26] sm:$0xff] }
 0x3ac   : > { %v5063_v19 = vpop.eup %5062  ;;  %5066 = vpow2.f32 %v3041_v57  ;;  %7836 = vst [vmem:[#allocation29_spill] sm:$0xff] %v6698_v13  ;;  %vm3239_vm13 = vcmp.ge.s32.totalorder %v6698_v13, 0  ;;  %v2911_v57 = vpop.f32.mrf.mxu1 }
 0x3ad   : > { %v3144_v48 = vmul.f32 0.6931472, %v5063_v19  ;;  %v3502_v1 = vpop.xlane.xlu2 %3501  ;;  %v5065_v7 = vpop.eup %5064  ;;  %v3945_v19 = vshra.s32 %v6685_v51, 16  ;;  %vm3712_vm0 = vcmp.ge.f32.partialorder %v2997_v26, 0.0  ;;  %v6724_v6 = vadd.f32 %v6325_v8, %v2911_v57 }
 0x3ae   : > { %v6676_v52 = vpop.xlane.xlu1 %3780  ;;  %v3500_v14 = vpop.xlane.xlu0 %3499  ;;  %v3479_v31 = vsel %vm3447_vm1, %v2997_v26, 0.0 }
 0x3af   : > { %v3561_v39 = vsub.f32 %v3144_v48, %v6643_v11  ;;  %vm3782_vm11 = vcmp.eq.f32.partialorder %v6512_v0, %v6676_v52 }
 0x3b2   : > { %3103 = vadd.xlane.f32.xlu2 %v5065_v7  ;;  %v3043_v7 = vmul.f32 1.442695, %v2997_v26  ;;  %v5067_v23 = vpop.eup %5066 }
 0x3b3   : > { %3934 = vmin.xlane.f32.xlu0 %v6682_v29  ;;  %2975 = vmax.xlane.f32.xlu1 %v6680_v28  ;;  %v6695_v29 = vcvt.s32.f32 %v3945_v19 }
 0x3b5   : > { %v6690_v11 = vpop.xlane.xlu2 %2953  ;;  %7835 = vst [vmem:[#allocation28_spill] sm:$0xff] %v6695_v29 }
 0x3b6   : > { %v3084_v49 = vpop.xlane.xlu1 %3083  ;;  %v3082_v48 = vpop.xlane.xlu0 %3081 }
 0x3b7   : > { %5068 = vlog2.f32 %v3084_v49  ;;  %v6703_v49 = vld [vmem:[%s6060_s26 + $0x8] sm:$0xff] }
 0x3b8   : > { %5070 = vlog2.f32 %v3082_v48  ;;  %7837 = vst [vmem:[#allocation30_spill] sm:$0xff] %v6703_v49  ;;  %vm3240_vm14 = vcmp.ge.s32.totalorder %v6703_v49, 0  ;;  %v7704_v48 = vmov 0.0  }
 0x3b9   : > { %5072 = vpow2.f32 %v3043_v7  ;;  %v6718_v51 = vsel %vm3240_vm14, 1.0, %v7704_v48  ;;  %v6721_v49 = vsel %vm3241_vm15, 1.0, %v7704_v48 }
 0x3ba   : > { %3523 = vadd.xlane.f32.xlu2 %v3478_v38  ;;  %v6713_v38 = vsel %vm3239_vm13, 1.0, %v7704_v48  ;;  %7839 = vst [vmem:[#allocation32_spill] sm:$0xff] %v6721_v49  ;;  %v2998_v48 = vsub.f32 %v6484_v53, %v6645_v22  ;;  %vm3450_vm13 = vcmp.eq.s32.totalorder %v6478_v40, %v6435_v9  ;;  %v3790_v9 = vand.u32 65535, %v6523_v33 }
 0x3bb   : > { %3105 = vadd.xlane.f32.xlu0 %v5067_v23  ;;  %3948 = vmin.xlane.f32.xlu1 %v6695_v29  ;;  %v3593_v46 = vmul.f32 %v6713_v38, %v3561_v39  ;;  %v2914_v39 = vpop.f32.mrf.mxu1 }
 0x3bc   : > { %vm3713_vm4 = vcmp.ge.f32.partialorder %v2998_v48, 0.0  ;;  %v3792_v33 = vcvt.s32.f32 %v3790_v9 }
 0x3bd   : > { %v5069_v25 = vpop.eup %5068  ;;  %v6710_v32 = vpop.xlane.xlu2 %3794  ;;  %v3626_v57 = vsel %vm3625_vm2, %v3593_v46, 0.0  ;;  %v3764_v46 = vcvt.s32.f32 %v3762_v44 }
 0x3be   : > { %v5071_v19 = vpop.eup %5070  ;;  %v3148_v23 = vmul.f32 0.6931472, %v5069_v25  ;;  %v3504_v13 = vpop.xlane.xlu1 %3503  ;;  %v6730_v25 = vsel %vm3712_vm0, %v6478_v40, 128  ;;  %vm3796_vm14 = vcmp.eq.f32.partialorder %v6528_v50, %v6710_v32 }
 0x3bf   : > { %v6715_v29 = vpop.xlane.xlu0 %2955  ;;  %v3146_v7 = vmul.f32 0.6931472, %v5071_v19  ;;  %v5073_v19 = vpop.eup %5072 }
 0x3c0   : > { %v3563_v28 = vsub.f32 %v3148_v23, %v3502_v1  ;;  %v3001_v0 = vsub.f32 %v6531_v30, %v6715_v29 }
 0x3c1   : > { %v3562_v56 = vsub.f32 %v3146_v7, %v3500_v14  ;;  %v3959_v14 = vshra.s32 %v6730_v25, 16 }
 0x3c2   : > { %2977 = vmax.xlane.f32.xlu2 %v6724_v6  ;;  %v3595_v8 = vmul.f32 %v6721_v49, %v3563_v28  ;;  %v5169_v28 = vld [vmem:[%s7676_s5] ss:$0 sm:$0xff]  ;;  %v3045_v49 = vmul.f32 1.442695, %v2998_v48  ;;  %vm3716_vm0 = vcmp.ge.f32.partialorder %v3001_v0, 0.0 }
 0x3c3   : > { %v3594_v1 = vmul.f32 %v6718_v51, %v3562_v56  ;;  %3525 = vadd.xlane.f32.xlu0 %v3479_v31  ;;  %3107 = vadd.xlane.f32.xlu1 %v5073_v19  ;;  %v6748_v31 = vcvt.s32.f32 %v3959_v14  ;;  %v6753_v19 = vadd.f32 %v5169_v28, %v2914_v39  ;;  %v2999_v14 = vsub.f32 %v6497_v58, %v6658_v21 }
 0x3c4   : > { %v3629_v56 = vsel %vm3625_vm2, %v3595_v8, 0.0  ;;  %v6760_v8 = vld [vmem:[%s6060_s26 + $0x18] sm:$0xff]  ;;  %v3480_v21 = vsel %vm3448_vm6, %v2998_v48, 0.0  ;;  %vm3452_vm6 = vcmp.eq.s32.totalorder %v6478_v40, %v6458_v27 }
 0x3c5   : > { %v3627_v23 = vsel %vm3625_vm2, %v3594_v1, 0.0  ;;  %v3086_v7 = vpop.xlane.xlu2 %3085  ;;  %7840 = vst [vmem:[#allocation33_spill] sm:$0xff] %v6753_v19  ;;  %v3769_v1 = vsel %vm3768_vm3, %v3764_v46, inf  ;;  %vm3242_vm5 = vcmp.ge.s32.totalorder %v6760_v8, 0  ;;  %vm3714_vm9 = vcmp.ge.f32.partialorder %v2999_v14, 0.0 }
 0x3c6   : > { %v3628_v26 = vadd.f32 %v3627_v23, %v3626_v57  ;;  %5074 = vlog2.f32 %v3086_v7  ;;  %v6741_v53 = vpop.xlane.xlu1 %2957  ;;  %v6757_v57 = vsel %vm3713_vm4, %v6478_v40, 128  ;;  %7842 = vst [vmem:[#allocation35_spill] sm:$0xff] %v6760_v8  ;;  %v7843_v7 = vmov 0.0  }
 0x3c7   : > { %v6743_v22 = vpop.xlane.xlu0 %3808  ;;  %7841 = vst [vmem:[#allocation34_spill] sm:$0xff] %v6757_v57  ;;  %v3973_v23 = vshra.s32 %v6757_v57, 16  ;;  %vm3451_vm3 = vcmp.eq.s32.totalorder %v6478_v40, %v6412_v20 }
 0x3c8   : > { %v3630_v12 = vadd.f32 %v3629_v56, %v3628_v26  ;;  %v6768_v26 = vsel %vm3242_vm5, 1.0, %v7843_v7  ;;  %vm3810_vm15 = vcmp.eq.f32.partialorder %v6545_v2, %v6743_v22  ;;  %v3002_v2 = vsub.f32 %v6543_v42, %v6741_v53 }
 0x3c9   : > { %v3483_v53 = vsel %vm3451_vm3, %v3001_v0, 0.0  ;;  %vm3455_vm3 = vcmp.eq.s32.totalorder %v6478_v40, %v6470_v36 }
 0x3ca   : > { %3962 = vmin.xlane.f32.xlu2 %v6748_v31  ;;  %vm3717_vm5 = vcmp.ge.f32.partialorder %v3002_v2, 0.0 }
 0x3cb   : > { %2979 = vmax.xlane.f32.xlu0 %v6753_v19  ;;  %3770 = vmin.xlane.f32.xlu1 %v3769_v1  ;;  %v3047_v19 = vmul.f32 1.442695, %v2999_v14  ;;  %v6775_v1 = vcvt.s32.f32 %v3973_v23 }
 0x3cc   : > { %v5075_v17 = vpop.eup %5074 }
 0x3cd   : > { %v3150_v44 = vmul.f32 0.6931472, %v5075_v17  ;;  %v3506_v39 = vpop.xlane.xlu2 %3505  ;;  %v3481_v17 = vsel %vm3449_vm7, %v2999_v14, 0.0  ;;  %v5172_v14 = vld [vmem:[%s6060_s26 + $0x28] sm:$0xff] }
 0x3ce   : > { %v6770_v56 = vpop.xlane.xlu1 %3822  ;;  %vm3244_vm10 = vcmp.ge.s32.totalorder %v5172_v14, 0 }
 0x3cf   : > { %v3088_v46 = vpop.xlane.xlu0 %3087  ;;  %v3564_v8 = vsub.f32 %v3150_v44, %v3504_v13  ;;  %v5171_v13 = vld [vmem:[%s6060_s26 + $0x20] sm:$0xff] }
 0x3d0   : > { %5076 = vlog2.f32 %v3088_v46  ;;  %vm3243_vm8 = vcmp.ge.s32.totalorder %v5171_v13, 0 }
 0x3d1   : > { %v3596_v58 = vmul.f32 %v6768_v26, %v3564_v8  ;;  %5078 = vpow2.f32 %v3045_v49  ;;  %v2916_v8 = vpop.f32.mrf.mxu1 }
 0x3d2   : > { %3527 = vadd.xlane.f32.xlu2 %v3480_v21  ;;  %5080 = vpow2.f32 %v3047_v19  ;;  %v6785_v21 = vsel %vm3243_vm8, 1.0, %v7843_v7  ;;  %v6787_v49 = vadd.f32 %v5169_v28, %v2916_v8  ;;  %vm3824_vm8 = vcmp.eq.f32.partialorder %v6556_v47, %v6770_v56 }
 0x3d3   : > { %v3631_v57 = vsel %vm3625_vm2, %v3596_v58, 0.0  ;;  %3976 = vmin.xlane.f32.xlu0 %v6775_v1  ;;  %3529 = vadd.xlane.f32.xlu1 %v3481_v17 }
 0x3d4   : > { %v3632_v61 = vadd.f32 %v3631_v57, %v3630_v12  ;;  %v3000_v12 = vsub.f32 %v6520_v35, %v6690_v11  ;;  %v6793_v57 = vsel %vm3714_vm9, %v6478_v40, 128 }
 0x3d5   : > { %v6782_v48 = vpop.xlane.xlu2 %2959  ;;  %v3987_v35 = vshra.s32 %v6793_v57, 16 }
 0x3d6   : > { %v5077_v44 = vpop.eup %5076  ;;  %v3090_v46 = vpop.xlane.xlu1 %3089  ;;  %vm3715_vm12 = vcmp.ge.f32.partialorder %v3000_v12, 0.0  ;;  %v3049_v30 = vmul.f32 1.442695, %v3000_v12 }
 0x3d7   : > { %v3152_v23 = vmul.f32 0.6931472, %v5077_v44  ;;  %v3508_v3 = vpop.xlane.xlu0 %3507  ;;  %5082 = vlog2.f32 %v3090_v46  ;;  %v5079_v17 = vpop.eup %5078  ;;  %v3776_v44 = vand.u32 65535, %v6502_v10  ;;  %v6807_v10 = vsel %vm3244_vm10, 1.0, %v7843_v7 }
 0x3d8   : > { %v5081_v13 = vpop.eup %5080  ;;  %7844 = vst [vmem:[#allocation36_spill] sm:$0xff] %v6807_v10  ;;  %v6814_v14 = vsel %vm3715_vm12, %v6478_v40, 128  ;;  %vm3453_vm10 = vcmp.eq.s32.totalorder %v6478_v40, %v6448_v4  ;;  %v3846_v4 = vand.u32 65535, %v6579_v45 }
 0x3d9   : > { %v3565_v58 = vsub.f32 %v3152_v23, %v3506_v39 }
 0x3da   : > { %3109 = vadd.xlane.f32.xlu2 %v5079_v17  ;;  %v3778_v17 = vcvt.s32.f32 %v3776_v44  ;;  %v4001_v44 = vshra.s32 %v6814_v14, 16  ;;  %v3848_v45 = vcvt.s32.f32 %v3846_v4 }
 0x3db   : > { %v3597_v19 = vmul.f32 %v6785_v21, %v3565_v58  ;;  %3111 = vadd.xlane.f32.xlu0 %v5081_v13  ;;  %2981 = vmax.xlane.f32.xlu1 %v6787_v49 }
 0x3dc   : > { %v6832_v29 = vcvt.s32.f32 %v4001_v44 }
 0x3dd   : > { %v3633_v28 = vsel %vm3625_vm2, %v3597_v19, 0.0  ;;  %v5083_v39 = vpop.eup %5082  ;;  %v6799_v23 = vpop.xlane.xlu2 %3836  ;;  %v3783_v19 = vsel %vm3782_vm11, %v3778_v17, inf }
 0x3de   : > { %v3634_v8 = vadd.f32 %v3633_v28, %v3632_v61  ;;  %v3154_v11 = vmul.f32 0.6931472, %v5083_v39  ;;  %v3510_v46 = vpop.xlane.xlu1 %3509  ;;  %v6811_v61 = vcvt.s32.f32 %v3987_v35  ;;  %v3482_v39 = vsel %vm3450_vm13, %v3000_v12, 0.0 }
 0x3df   : > { %v6802_v58 = vpop.xlane.xlu0 %2961  ;;  %v3804_v35 = vand.u32 65535, %v6537_v62  ;;  %vm3838_vm11 = vcmp.eq.f32.partialorder %v6570_v5, %v6799_v23 }
 0x3e0   : > { %v3566_v13 = vsub.f32 %v3154_v11, %v3508_v3  ;;  %v3004_v47 = vsub.f32 %v6573_v63, %v6802_v58 }
 0x3e1   : > { %v3806_v62 = vcvt.s32.f32 %v3804_v35 }
 0x3e2   : > { %v3598_v28 = vmul.f32 %v6807_v10, %v3566_v13  ;;  %3784 = vmin.xlane.f32.xlu2 %v3783_v19  ;;  %vm3719_vm13 = vcmp.ge.f32.partialorder %v3004_v47, 0.0 }
 0x3e3   : > { %3531 = vadd.xlane.f32.xlu0 %v3482_v39  ;;  %3990 = vmin.xlane.f32.xlu1 %v6811_v61  ;;  %v6836_v39 = vsel %vm3716_vm0, %v6478_v40, 128  ;;  %vm3454_vm0 = vcmp.eq.s32.totalorder %v6478_v40, %v6425_v24 }
 0x3e4   : > { %v3635_v3 = vsel %vm3625_vm2, %v3598_v28, 0.0  ;;  %v3811_v28 = vsel %vm3810_vm15, %v3806_v62, inf  ;;  %v4015_v9 = vshra.s32 %v6836_v39, 16  ;;  %v3051_v62 = vmul.f32 1.442695, %v3001_v0 }
 0x3e5   : > { %v3636_v11 = vadd.f32 %v3635_v3, %v3634_v8  ;;  %v3092_v17 = vpop.xlane.xlu2 %3091  ;;  %v3797_v8 = vsel %vm3796_vm14, %v3792_v33, inf  ;;  %v6839_v3 = vld [vmem:[%s6060_s26 + $0x30] sm:$0xff] }
 0x3e6   : > { %5084 = vlog2.f32 %v3092_v17  ;;  %v6824_v13 = vpop.xlane.xlu1 %2963  ;;  %7845 = vst [vmem:[#allocation37_spill] sm:$0xff] %v6839_v3  ;;  %vm3245_vm1 = vcmp.ge.s32.totalorder %v6839_v3, 0  ;;  %v5174_v3 = vld [vmem:[%s6060_s26 + $0x38] sm:$0xff] }
 0x3e7   : > { %v6826_v19 = vpop.xlane.xlu0 %3850  ;;  %5086 = vpow2.f32 %v3049_v30  ;;  %v6846_v35 = vsel %vm3245_vm1, 1.0, %v7843_v7  ;;  %v6853_v30 = vcvt.s32.f32 %v4015_v9  ;;  %vm3246_vm4 = vcmp.ge.s32.totalorder %v5174_v3, 0 }
 0x3e8   : > { %v6861_v9 = vsel %vm3246_vm4, 1.0, %v7843_v7  ;;  %vm3852_vm12 = vcmp.eq.f32.partialorder %v6587_v41, %v6826_v19  ;;  %v3005_v5 = vsub.f32 %v6585_v43, %v6824_v13  ;;  %v3486_v13 = vsel %vm3454_vm0, %v3004_v47, 0.0 }
 0x3e9   : > { %7847 = vst [vmem:[#allocation39_spill] sm:$0xff] %v6861_v9 }
 0x3ea   : > { %4004 = vmin.xlane.f32.xlu2 %v6832_v29  ;;  %vm3720_vm15 = vcmp.ge.f32.partialorder %v3005_v5, 0.0 }
 0x3eb   : > { %3798 = vmin.xlane.f32.xlu1 %v3797_v8  ;;  %3812 = vmin.xlane.f32.xlu0 %v3811_v28  ;;  %v3053_v8 = vmul.f32 1.442695, %v3002_v2 }
 0x3ec   : > { %v5085_v50 = vpop.eup %5084 }
 0x3ed   : > { %v3156_v12 = vmul.f32 0.6931472, %v5085_v50  ;;  %v3512_v44 = vpop.xlane.xlu2 %3511  ;;  %v5087_v28 = vpop.eup %5086 }
 0x3ee   : > { %v6848_v17 = vpop.xlane.xlu1 %3864 }
 0x3ef   : > { %7846 = vst [vmem:[#allocation38_spill] sm:$0xff] %v6848_v17  ;;  %v3094_v33 = vpop.xlane.xlu0 %3093  ;;  %v3567_v10 = vsub.f32 %v3156_v12, %v3510_v46 }
 0x3f0   : > { %5088 = vlog2.f32 %v3094_v33 }
 0x3f1   : > { %v3599_v42 = vmul.f32 %v6846_v35, %v3567_v10  ;;  %5090 = vpow2.f32 %v3051_v62 }
 0x3f2   : > { %3533 = vadd.xlane.f32.xlu2 %v3483_v53  ;;  %5092 = vpow2.f32 %v3053_v8  ;;  %v3484_v53 = vsel %vm3452_vm6, %v3002_v2, 0.0 }
 0x3f3   : > { %v3637_v50 = vsel %vm3625_vm2, %v3599_v42, 0.0  ;;  %3113 = vadd.xlane.f32.xlu1 %v5087_v28  ;;  %4018 = vmin.xlane.f32.xlu0 %v6853_v30  ;;  %v6869_v28 = vsel %vm3717_vm5, %v6478_v40, 128  ;;  %vm3866_vm5 = vcmp.eq.f32.partialorder %v6598_v59, %v6848_v17 }
 0x3f4   : > { %v3638_v46 = vadd.f32 %v3637_v50, %v3636_v11  ;;  %v3003_v11 = vsub.f32 %v6560_v55, %v6782_v48  ;;  %v3818_v50 = vand.u32 65535, %v6548_v34  ;;  %v4029_v48 = vshra.s32 %v6869_v28, 16 }
 0x3f5   : > { %v6858_v33 = vpop.xlane.xlu2 %2965 }
 0x3f6   : > { %v5089_v12 = vpop.eup %5088  ;;  %v3096_v10 = vpop.xlane.xlu1 %3095  ;;  %vm3718_vm9 = vcmp.ge.f32.partialorder %v3003_v11, 0.0  ;;  %v3055_v63 = vmul.f32 1.442695, %v3003_v11 }
 0x3f7   : > { %v3158_v20 = vmul.f32 0.6931472, %v5089_v12  ;;  %v3514_v0 = vpop.xlane.xlu0 %3513  ;;  %5094 = vlog2.f32 %v3096_v10  ;;  %v5091_v42 = vpop.eup %5090 }
 0x3f8   : > { %v5093_v3 = vpop.eup %5092 }
 0x3f9   : > { %v3568_v62 = vsub.f32 %v3158_v20, %v3512_v44  ;;  %v6873_v44 = vld [vmem:[%s6060_s26 + $0x40] sm:$0xff] }
 0x3fa   : > { %3115 = vadd.xlane.f32.xlu2 %v5091_v42  ;;  %7848 = vst [vmem:[#allocation40_spill] sm:$0xff] %v6873_v44  ;;  %vm3247_vm7 = vcmp.ge.s32.totalorder %v6873_v44, 0  ;;  %v3820_v42 = vcvt.s32.f32 %v3818_v50 }
 0x3fb   : > { %v3600_v8 = vmul.f32 %v6861_v9, %v3568_v62  ;;  %3535 = vadd.xlane.f32.xlu1 %v3484_v53  ;;  %3117 = vadd.xlane.f32.xlu0 %v5093_v3  ;;  %v6885_v34 = vsel %vm3247_vm7, 1.0, %v7843_v7  ;;  %v6887_v53 = vcvt.s32.f32 %v4029_v48  ;;  %v3832_v48 = vand.u32 65535, %v6565_v15 }
 0x3fc   : > { %7850 = vst [vmem:[#allocation42_spill] sm:$0xff] %v6885_v34 }
 0x3fd   : > { %v3639_v27 = vsel %vm3625_vm2, %v3600_v8, 0.0  ;;  %v5095_v12 = vpop.eup %5094  ;;  %v6877_v55 = vpop.xlane.xlu2 %3878  ;;  %v3825_v8 = vsel %vm3824_vm8, %v3820_v42, inf  ;;  %v3834_v15 = vcvt.s32.f32 %v3832_v48 }
 0x3fe   : > { %v3640_v20 = vadd.f32 %v3639_v27, %v3638_v46  ;;  %7849 = vst [vmem:[#allocation41_spill] sm:$0xff] %v6877_v55  ;;  %v3160_v2 = vmul.f32 0.6931472, %v5095_v12  ;;  %v3516_v10 = vpop.xlane.xlu1 %3515  ;;  %v6892_v46 = vsel %vm3718_vm9, %v6478_v40, 128  ;;  %v3485_v12 = vsel %vm3453_vm10, %v3003_v11, 0.0 }
 0x3ff   : > { %v6880_v62 = vpop.xlane.xlu0 %2967  ;;  %v4043_v50 = vshra.s32 %v6892_v46, 16  ;;  %vm3880_vm7 = vcmp.eq.f32.partialorder %v6612_v18, %v6877_v55 }
 0x400   : > { %v3569_v3 = vsub.f32 %v3160_v2, %v3514_v0 }
 0x401   : > { %v6910_v58 = vcvt.s32.f32 %v4043_v50 }
 0x402   : > { %v3601_v27 = vmul.f32 %v6885_v34, %v3569_v3  ;;  %3826 = vmin.xlane.f32.xlu2 %v3825_v8  ;;  %v6955_v34 = vld [vmem:[%s6060_s26 + $0x58] sm:$0xff] }
 0x403   : > { %4032 = vmin.xlane.f32.xlu1 %v6887_v53  ;;  %3537 = vadd.xlane.f32.xlu0 %v3485_v12  ;;  %v6914_v12 = vsel %vm3719_vm13, %v6478_v40, 128  ;;  %7856 = vst [vmem:[#allocation48_spill] sm:$0xff] %v6955_v34  ;;  %vm3250_vm4 = vcmp.ge.s32.totalorder %v6955_v34, 0 }
 0x404   : > { %v3641_v0 = vsel %vm3625_vm2, %v3601_v27, 0.0  ;;  %v3853_v27 = vsel %vm3852_vm12, %v3848_v45, inf  ;;  %v4057_v48 = vshra.s32 %v6914_v12, 16  ;;  %v3057_v45 = vmul.f32 1.442695, %v3004_v47 }
 0x405   : > { %v3642_v2 = vadd.f32 %v3641_v0, %v3640_v20  ;;  %v3098_v42 = vpop.xlane.xlu2 %3097  ;;  %v3839_v20 = vsel %vm3838_vm11, %v3834_v15, inf  ;;  %v6917_v0 = vld [vmem:[%s6060_s26 + $0x48] sm:$0xff] }
 0x406   : > { %5096 = vlog2.f32 %v3098_v42  ;;  %v6902_v3 = vpop.xlane.xlu1 %2969  ;;  %7852 = vst [vmem:[#allocation44_spill] sm:$0xff] %v6917_v0  ;;  %vm3248_vm14 = vcmp.ge.s32.totalorder %v6917_v0, 0 }
 0x407   : > { %v6904_v8 = vpop.xlane.xlu0 %3892  ;;  %5098 = vpow2.f32 %v3055_v63  ;;  %v6924_v4 = vsel %vm3248_vm14, 1.0, %v7843_v7  ;;  %v6931_v63 = vcvt.s32.f32 %v4057_v48 }
 0x408   : > { %7851 = vst [vmem:[#allocation43_spill] sm:$0xff] %v6904_v8 }
 0x409   : > { %7853 = vst [vmem:[#allocation45_spill] sm:$0xff] %v6924_v4 }
 0x40a   : > { %4046 = vmin.xlane.f32.xlu2 %v6910_v58 }
 0x40b   : > { %3840 = vmin.xlane.f32.xlu1 %v3839_v20  ;;  %3854 = vmin.xlane.f32.xlu0 %v3853_v27  ;;  %v6934_v27 = vsel %vm3720_vm15, %v6478_v40, 128 }
 0x40c   : > { %v5097_v41 = vpop.eup %5096  ;;  %v4071_v47 = vshra.s32 %v6934_v27, 16 }
 0x40d   : > { %v3162_v11 = vmul.f32 0.6931472, %v5097_v41  ;;  %v3518_v50 = vpop.xlane.xlu2 %3517  ;;  %v5099_v20 = vpop.eup %5098 }
 0x40e   : > { %v6926_v42 = vpop.xlane.xlu1 %3906 }
 0x40f   : > { %7854 = vst [vmem:[#allocation46_spill] sm:$0xff] %v6926_v42  ;;  %v3100_v15 = vpop.xlane.xlu0 %3099  ;;  %v3570_v0 = vsub.f32 %v3162_v11, %v3516_v10  ;;  %v5177_v10 = vld [vmem:[%s6060_s26 + $0x50] sm:$0xff] }
 0x410   : > { %5100 = vlog2.f32 %v3100_v15  ;;  %vm3249_vm1 = vcmp.ge.s32.totalorder %v5177_v10, 0 }
 0x411   : > { %v3602_v43 = vmul.f32 %v6924_v4, %v3570_v0  ;;  %5102 = vpow2.f32 %v3057_v45  ;;  %v6943_v4 = vsel %vm3249_vm1, 1.0, %v7843_v7  ;;  %v3059_v45 = vmul.f32 1.442695, %v3005_v5 }
 0x412   : > { %3539 = vadd.xlane.f32.xlu2 %v3486_v13  ;;  %7855 = vst [vmem:[#allocation47_spill] sm:$0xff] %v6943_v4 }
 0x413   : > { %v3643_v41 = vsel %vm3625_vm2, %v3602_v43, 0.0  ;;  %3119 = vadd.xlane.f32.xlu1 %v5099_v20  ;;  %4060 = vmin.xlane.f32.xlu0 %v6931_v63 }
 0x414   : > { %v3644_v11 = vadd.f32 %v3643_v41, %v3642_v2  ;;  %v6947_v2 = vcvt.s32.f32 %v4071_v47  ;;  %v3006_v41 = vsub.f32 %v6602_v54, %v6858_v33 }
 0x415   : > { %v6939_v15 = vpop.xlane.xlu2 %2971 }
 0x416   : > { %v5101_v24 = vpop.eup %5100  ;;  %v3102_v48 = vpop.xlane.xlu1 %3101  ;;  %vm3721_vm6 = vcmp.ge.f32.partialorder %v3006_v41, 0.0 }
 0x417   : > { %v3164_v0 = vmul.f32 0.6931472, %v5101_v24  ;;  %v3520_v13 = vpop.xlane.xlu0 %3519  ;;  %5104 = vlog2.f32 %v3102_v48  ;;  %v5103_v20 = vpop.eup %5102  ;;  %v3487_v24 = vsel %vm3455_vm3, %v3005_v5, 0.0  ;;  %v3860_v48 = vand.u32 65535, %v6590_v16 }
 0x418   : > { %5106 = vpow2.f32 %v3059_v45  ;;  %v6967_v16 = vsel %vm3250_vm4, 1.0, %v7843_v7 }
 0x419   : > { %v3571_v43 = vsub.f32 %v3164_v0, %v3518_v50  ;;  %v3874_v50 = vand.u32 65535, %v6607_v60  ;;  %7858 = vst [vmem:[#allocation50_spill] sm:$0xff] %v6967_v16  ;;  %v3862_v45 = vcvt.s32.f32 %v3860_v48  ;;  %v3061_v60 = vmul.f32 1.442695, %v3006_v41 }
 0x41a   : > { %3121 = vadd.xlane.f32.xlu2 %v5103_v20 }
 0x41b   : > { %v3603_v10 = vmul.f32 %v6943_v4, %v3571_v43  ;;  %3541 = vadd.xlane.f32.xlu1 %v3487_v24  ;;  %4074 = vmin.xlane.f32.xlu0 %v6947_v2  ;;  %v6972_v24 = vsel %vm3721_vm6, %v6478_v40, 128  ;;  %v7860_v4 = vld [vmem:[#allocation16_spill] sm:$0xff]  ;;  %5108 = vpow2.f32 %v3061_v60 }
 0x41c   : > { %7859 = vst [vmem:[#allocation51_spill] sm:$0xff] %v6972_v24  ;;  %v3007_v34 = vsub.f32 %v7860_v4, %v6880_v62 }
 0x41d   : > { %v3645_v36 = vsel %vm3625_vm2, %v3603_v10, 0.0  ;;  %v5105_v47 = vpop.eup %5104  ;;  %v6960_v33 = vpop.xlane.xlu2 %3920  ;;  %v3867_v10 = vsel %vm3866_vm5, %v3862_v45, inf }
 0x41e   : > { %v3646_v54 = vadd.f32 %v3645_v36, %v3644_v11  ;;  %7857 = vst [vmem:[#allocation49_spill] sm:$0xff] %v6960_v33  ;;  %v3166_v0 = vmul.f32 0.6931472, %v5105_v47  ;;  %v3522_v5 = vpop.xlane.xlu1 %3521  ;;  %v3876_v11 = vcvt.s32.f32 %v3874_v50  ;;  %v5107_v36 = vpop.eup %5106  ;;  %vm3722_vm8 = vcmp.ge.f32.partialorder %v3007_v34, 0.0 }
 0x41f   : > { %v6962_v43 = vpop.xlane.xlu0 %2973  ;;  %v6989_v60 = vsel %vm3722_vm8, %v6478_v40, 128 }
 0x420   : > { %v3572_v20 = vsub.f32 %v3166_v0, %v3520_v13  ;;  %v3881_v59 = vsel %vm3880_vm7, %v3876_v11, inf  ;;  %v4085_v13 = vshra.s32 %v6972_v24, 16  ;;  %v7863_v11 = vld [vmem:[#allocation6_spill] sm:$0xff] }
 0x421   : > { %vm3456_vm9 = vcmp.eq.s32.totalorder %v6478_v40, %v7863_v11  ;;  %v5109_v62 = vpop.eup %5108  ;;  %7864 = vst [vmem:[#allocation6_spill] sm:$0xff] %v6989_v60  ;;  %v4099_v11 = vshra.s32 %v6989_v60, 16 }
 0x422   : > { %v3604_v47 = vmul.f32 %v6967_v16, %v3572_v20  ;;  %3868 = vmin.xlane.f32.xlu2 %v3867_v10  ;;  %v6983_v20 = vcvt.s32.f32 %v4085_v13  ;;  %v3488_v4 = vsel %vm3456_vm9, %v3006_v41, 0.0  ;;  %v7865_v10 = vld [vmem:[#allocation18_spill] sm:$0xff]  ;;  %v3063_v41 = vmul.f32 1.442695, %v3007_v34 }
 0x423   : > { %3882 = vmin.xlane.f32.xlu1 %v3881_v59  ;;  %3123 = vadd.xlane.f32.xlu0 %v5107_v36  ;;  %v3008_v36 = vsub.f32 %v7865_v10, %v6902_v3  ;;  %v7866_v59 = vld [vmem:[#allocation13_spill] sm:$0xff]  ;;  %v7869_v3 = vld [vmem:[#allocation15_spill] sm:$0xff] }
 0x424   : > { %v3647_v18 = vsel %vm3625_vm2, %v3604_v47, 0.0  ;;  %7862 = vst [vmem:[#allocation52_spill] sm:$0xff] %v6983_v20  ;;  %vm3894_vm11 = vcmp.eq.f32.partialorder %v7869_v3, %v6904_v8  ;;  %v3773_v8 = vcvt.f32.s32 %v6660_v37 }
 0x425   : > { %v3648_v48 = vadd.f32 %v3647_v18, %v3646_v54  ;;  %v3104_v50 = vpop.xlane.xlu2 %3103  ;;  %v5179_v54 = vld [vmem:[%s6060_s26 + $0x60] sm:$0xff]  ;;  %v3888_v18 = vand.u32 65535, %v7866_v59  ;;  %vm3723_vm12 = vcmp.ge.f32.partialorder %v3008_v36, 0.0  ;;  %v7006_v59 = vcvt.s32.f32 %v4099_v11 }
 0x426   : > { %5110 = vlog2.f32 %v3104_v50  ;;  %v6979_v0 = vpop.xlane.xlu1 %2975  ;;  %vm3251_vm10 = vcmp.ge.s32.totalorder %v5179_v54, 0  ;;  %v7009_v44 = vsel %vm3723_vm12, %v6478_v40, 128 }
 0x427   : > { %v6981_v45 = vpop.xlane.xlu0 %3934  ;;  %v6997_v16 = vsel %vm3251_vm10, 1.0, %v7843_v7  ;;  %7871 = vst [vmem:[#allocation15_spill] sm:$0xff] %v7006_v59  ;;  %v4113_v11 = vshra.s32 %v7009_v44, 16 }
 0x428   : > { %7861 = vst [vmem:[#allocation16_spill] sm:$0xff] %v6981_v45 }
 0x429   : > { %7867 = vst [vmem:[#allocation18_spill] sm:$0xff] %v6997_v16 }
 0x42a   : > { %4088 = vmin.xlane.f32.xlu2 %v6983_v20 }
 0x42b   : > { %3125 = vadd.xlane.f32.xlu1 %v5109_v62  ;;  %3543 = vadd.xlane.f32.xlu0 %v3488_v4  ;;  %v7870_v62 = vld [vmem:[#allocation5_spill] sm:$0xff]  ;;  %v3890_v4 = vcvt.s32.f32 %v3888_v18 }
 0x42c   : > { %v5111_v47 = vpop.eup %5110  ;;  %vm3457_vm13 = vcmp.eq.s32.totalorder %v6478_v40, %v7870_v62  ;;  %7872 = vst [vmem:[#allocation5_spill] sm:$0xff] %v7009_v44 }
 0x42d   : > { %v3168_v13 = vmul.f32 0.6931472, %v5111_v47  ;;  %v3524_v50 = vpop.xlane.xlu2 %3523  ;;  %v3489_v47 = vsel %vm3457_vm13, %v3007_v34, 0.0  ;;  %v3895_v60 = vsel %vm3894_vm11, %v3890_v4, inf  ;;  %v3065_v4 = vmul.f32 1.442695, %v3008_v36 }
 0x42e   : > { %v6999_v20 = vpop.xlane.xlu1 %3948 }
 0x42f   : > { %7868 = vst [vmem:[#allocation13_spill] sm:$0xff] %v6999_v20  ;;  %v3106_v9 = vpop.xlane.xlu0 %3105  ;;  %v3573_v54 = vsub.f32 %v3168_v13, %v3522_v5  ;;  %v7014_v5 = vld [vmem:[%s6060_s26 + $0x68] sm:$0xff] }
 0x430   : > { %5112 = vlog2.f32 %v3106_v9  ;;  %7873 = vst [vmem:[#allocation53_spill] sm:$0xff] %v7014_v5  ;;  %vm3252_vm14 = vcmp.ge.s32.totalorder %v7014_v5, 0  ;;  %v7878_v5 = vld [vmem:[#allocation19_spill] sm:$0xff] }
 0x431   : > { %v3605_v10 = vmul.f32 %v6997_v16, %v3573_v54  ;;  %5114 = vpow2.f32 %v3063_v41  ;;  %v7021_v41 = vsel %vm3252_vm14, 1.0, %v7843_v7 }
 0x432   : > { %3545 = vadd.xlane.f32.xlu2 %v3489_v47  ;;  %7874 = vst [vmem:[#allocation54_spill] sm:$0xff] %v7021_v41  ;;  %v7875_v47 = vld [vmem:[#allocation12_spill] sm:$0xff] }
 0x433   : > { %v3649_v9 = vsel %vm3625_vm2, %v3605_v10, 0.0  ;;  %4102 = vmin.xlane.f32.xlu1 %v7006_v59  ;;  %3896 = vmin.xlane.f32.xlu0 %v3895_v60  ;;  %vm3458_vm15 = vcmp.eq.s32.totalorder %v6478_v40, %v7875_v47 }
 0x434   : > { %v3650_v18 = vadd.f32 %v3649_v9, %v3648_v48  ;;  %v7025_v48 = vcvt.s32.f32 %v4113_v11  ;;  %v7877_v9 = vld [vmem:[#allocation20_spill] sm:$0xff]  ;;  %v3490_v59 = vsel %vm3458_vm15, %v3008_v36, 0.0  ;;  %v7880_v11 = vld [vmem:[#allocation21_spill] sm:$0xff] }
 0x435   : > { %v7017_v34 = vpop.xlane.xlu2 %2977  ;;  %v3902_v16 = vand.u32 65535, %v7877_v9  ;;  %v7881_v36 = vld [vmem:[#allocation17_spill] sm:$0xff]  ;;  %v3774_v9 = vshll.u32 %v3773_v8, 16 }
 0x436   : > { %v5113_v13 = vpop.eup %5112  ;;  %v3108_v3 = vpop.xlane.xlu1 %3107  ;;  %7876 = vst [vmem:[#allocation12_spill] sm:$0xff] %v7025_v48  ;;  %vm3908_vm1 = vcmp.eq.f32.partialorder %v7881_v36, %v6926_v42 }
 0x437   : > { %v3170_v54 = vmul.f32 0.6931472, %v5113_v13  ;;  %v3526_v62 = vpop.xlane.xlu0 %3525  ;;  %5116 = vlog2.f32 %v3108_v3  ;;  %v5115_v10 = vpop.eup %5114  ;;  %v3009_v13 = vsub.f32 %v7878_v5, %v6939_v15 }
 0x438   : > { %5118 = vpow2.f32 %v3065_v4 }
 0x439   : > { %v3574_v60 = vsub.f32 %v3170_v54, %v3524_v50  ;;  %v7034_v50 = vld [vmem:[%s6060_s26 + $0x70] sm:$0xff]  ;;  %v3916_v54 = vand.u32 65535, %v7880_v11  ;;  %vm3724_vm3 = vcmp.ge.f32.partialorder %v3009_v13, 0.0 }
 0x43a   : > { %3127 = vadd.xlane.f32.xlu2 %v5115_v10  ;;  %7879 = vst [vmem:[#allocation20_spill] sm:$0xff] %v7034_v50  ;;  %vm3253_vm0 = vcmp.ge.s32.totalorder %v7034_v50, 0  ;;  %v3904_v10 = vcvt.s32.f32 %v3902_v16  ;;  %v7882_v50 = vld [vmem:[#allocation22_spill] sm:$0xff] }
 0x43b   : > { %v3606_v44 = vmul.f32 %v7021_v41, %v3574_v60  ;;  %3547 = vadd.xlane.f32.xlu1 %v3490_v59  ;;  %4116 = vmin.xlane.f32.xlu0 %v7025_v48  ;;  %vm3922_vm4 = vcmp.eq.f32.partialorder %v7882_v50, %v6960_v33  ;;  %v7048_v4 = vsel %vm3253_vm0, 1.0, %v7843_v7  ;;  %v7885_v50 = vld [vmem:[#allocation23_spill] sm:$0xff] }
 0x43c   : > { %7883 = vst [vmem:[#allocation19_spill] sm:$0xff] %v7048_v4  ;;  %v3909_v36 = vsel %vm3908_vm1, %v3904_v10, inf  ;;  %v3010_v33 = vsub.f32 %v7885_v50, %v6962_v43 }
 0x43d   : > { %v3651_v3 = vsel %vm3625_vm2, %v3606_v44, 0.0  ;;  %v5117_v47 = vpop.eup %5116  ;;  %v7039_v5 = vpop.xlane.xlu2 %3962 }
 0x43e   : > { %v3652_v15 = vadd.f32 %v3651_v3, %v3650_v18  ;;  %v3172_v37 = vmul.f32 0.6931472, %v5117_v47  ;;  %v3771_v59 = vpop.xlane.xlu1 %3770  ;;  %v3067_v18 = vmul.f32 1.442695, %v3009_v13  ;;  %v3918_v3 = vcvt.s32.f32 %v3916_v54  ;;  %v5119_v42 = vpop.eup %5118 }
 0x43f   : > { %v7043_v60 = vpop.xlane.xlu0 %2979  ;;  %v3772_v44 = vcvt.f32.s32 %v3771_v59  ;;  %v7053_v47 = vsel %vm3724_vm3, %v6478_v40, 128  ;;  %vm3725_vm5 = vcmp.ge.f32.partialorder %v3010_v33, 0.0  ;;  %vm3964_vm1 = vcmp.eq.f32.partialorder %v6748_v31, %v7039_v5 }
 0x440   : > { %v3575_v11 = vsub.f32 %v3172_v37, %v3526_v62  ;;  %7884 = vst [vmem:[#allocation21_spill] sm:$0xff] %v7053_v47  ;;  %v3923_v8 = vsel %vm3922_vm4, %v3918_v3, inf  ;;  %5120 = vpow2.f32 %v3067_v18  ;;  %v4127_v54 = vshra.s32 %v7053_v47, 16 }
 0x441   : > { %v7050_v41 = vadd.s32 %v3774_v9, %v3772_v44  ;;  %v7072_v18 = vsel %vm3725_vm5, %v6478_v40, 128 }
 0x442   : > { %v3607_v16 = vmul.f32 %v7048_v4, %v3575_v11  ;;  %3910 = vmin.xlane.f32.xlu2 %v3909_v36  ;;  %v7066_v44 = vcvt.s32.f32 %v4127_v54  ;;  %v7887_v11 = vld [vmem:[#allocation7_spill] sm:$0xff]  ;;  %7888 = vst [vmem:[#allocation22_spill] sm:$0xff] %v7072_v18  ;;  %v4141_v50 = vshra.s32 %v7072_v18, 16  ;;  %v7900_v18 = vld [vmem:[#allocation26_spill] sm:$0xff] }
 0x443   : > { %3924 = vmin.xlane.f32.xlu1 %v3923_v8  ;;  %3129 = vadd.xlane.f32.xlu0 %v5119_v42  ;;  %vm3459_vm6 = vcmp.eq.s32.totalorder %v6478_v40, %v7887_v11  ;;  %v7890_v36 = vld [vmem:[#allocation27_spill] sm:$0xff]  ;;  %v7083_v11 = vld [vmem:[%s6060_s26 + $0x78] sm:$0xff]  ;;  %vm3936_vm14 = vcmp.eq.f32.partialorder %v7900_v18, %v6981_v45 }
 0x444   : > { %v3653_v62 = vsel %vm3625_vm2, %v3607_v16, 0.0  ;;  %7886 = vst [vmem:[#allocation17_spill] sm:$0xff] %v7066_v44  ;;  %v3491_v42 = vsel %vm3459_vm6, %v3009_v13, 0.0  ;;  %v3944_v16 = vand.u32 65535, %v7890_v36  ;;  %v7891_v13 = vld [vmem:[#allocation28_spill] sm:$0xff]  ;;  %vm3254_vm9 = vcmp.ge.s32.totalorder %v7083_v11, 0 }
 0x445   : > { %v7060_v37 = vadd.f32 %v3653_v62, %v3652_v15  ;;  %v3528_v59 = vpop.xlane.xlu2 %3527  ;;  %v7889_v15 = vld [vmem:[#allocation25_spill] sm:$0xff]  ;;  %vm3950_vm8 = vcmp.eq.f32.partialorder %v7891_v13, %v6999_v20  ;;  %7892 = vst [vmem:[#allocation23_spill] sm:$0xff] %v7083_v11  ;;  %v7093_v4 = vcvt.s32.f32 %v4141_v50  ;;  %v3787_v13 = vcvt.f32.s32 %v6676_v52  ;;  %v7899_v52 = vld [vmem:[#allocation14_spill] sm:$0xff] }
 0x446   : > { %v7062_v10 = vpop.xlane.xlu1 %3529  ;;  %v5121_v43 = vpop.eup %5120  ;;  %v3011_v3 = vsub.f32 %v7889_v15, %v6979_v0  ;;  %v7893_v0 = vld [vmem:[#allocation8_spill] sm:$0xff]  ;;  %vm3461_vm13 = vcmp.eq.s32.totalorder %v6478_v40, %v7899_v52 }
 0x447   : > { %v7064_v9 = vpop.xlane.xlu0 %3976  ;;  %vm3460_vm10 = vcmp.eq.s32.totalorder %v6478_v40, %v7893_v0  ;;  %v7895_v15 = vld [vmem:[#allocation24_spill] sm:$0xff]  ;;  %7896 = vst [vmem:[#allocation25_spill] sm:$0xff] %v7093_v4  ;;  %v7101_v0 = vsel %vm3254_vm9, 1.0, %v7843_v7 }
 0x448   : > { %vm3726_vm7 = vcmp.ge.f32.partialorder %v3011_v3, 0.0  ;;  %v3930_v36 = vand.u32 65535, %v7895_v15  ;;  %v7898_v15 = vld [vmem:[#allocation29_spill] sm:$0xff]  ;;  %v3071_v17 = vmul.f32 1.442695, %v3011_v3  ;;  %v3493_v45 = vsel %vm3461_vm13, %v3011_v3, 0.0 }
 0x449   : > { %v7097_v20 = vsel %vm3726_vm7, %v6478_v40, 128  ;;  %vm4210_vm12 = vcmp.eq.s32.totalorder %v7050_v41, %v7898_v15  ;;  %v3801_v41 = vcvt.f32.s32 %v6710_v32  ;;  %v3069_v15 = vmul.f32 1.442695, %v3010_v33 }
 0x44a   : > { %4130 = vmin.xlane.f32.xlu2 %v7066_v44  ;;  %7897 = vst [vmem:[#allocation27_spill] sm:$0xff] %v7097_v20  ;;  %v3932_v11 = vcvt.s32.f32 %v3930_v36  ;;  %v4937_v55 = vsel %vm4210_vm12, 1.0, %v7843_v7  ;;  %v3815_v36 = vcvt.f32.s32 %v6743_v22  ;;  %v7129_v32 = vsub.f32 %v6724_v6, %v7017_v34 }
 0x44b   : > { %3131 = vadd.xlane.f32.xlu1 %v5121_v43  ;;  %3549 = vadd.xlane.f32.xlu0 %v3491_v42  ;;  %v3946_v43 = vcvt.s32.f32 %v3944_v16  ;;  %v7089_v42 = vld [vmem:[%s6060_s26 + $0x80] sm:$0xff]  ;;  %vm3978_vm9 = vcmp.eq.f32.partialorder %v6775_v1, %v7064_v9 }
 0x44c   : > { %7894 = vst [vmem:[#allocation7_spill] sm:$0xff] %v7089_v42  ;;  %vm3255_vm11 = vcmp.ge.s32.totalorder %v7089_v42, 0  ;;  %vm3727_vm0 = vcmp.ge.f32.partialorder %v7129_v32, 0.0 }
 0x44d   : > { %v3110_v8 = vpop.xlane.xlu2 %3109  ;;  %v7104_v42 = vsel %vm3255_vm11, 1.0, %v7843_v7 }
 0x44e   : > { %5122 = vlog2.f32 %v3110_v8  ;;  %v7078_v62 = vpop.xlane.xlu1 %2981  ;;  %v3492_v8 = vsel %vm3460_vm10, %v3010_v33, 0.0  ;;  %v4306_v33 = vmul.f32 %v4937_v55, %v6713_v38 }
 0x44f   : > { %v3112_v54 = vpop.xlane.xlu0 %3111  ;;  %v7160_v31 = vsub.f32 %v6787_v49, %v7078_v62 }
 0x450   : > { %5124 = vlog2.f32 %v3112_v54  ;;  %v3951_v54 = vsel %vm3950_vm8, %v3946_v43, inf }
 0x451   : > { %5126 = vpow2.f32 %v3069_v15  ;;  %vm3729_vm6 = vcmp.ge.f32.partialorder %v7160_v31, 0.0 }
 0x452   : > { %3551 = vadd.xlane.f32.xlu2 %v3492_v8  ;;  %5128 = vpow2.f32 %v3071_v17 }
 0x453   : > { %3952 = vmin.xlane.f32.xlu0 %v3951_v54  ;;  %4144 = vmin.xlane.f32.xlu1 %v7093_v4  ;;  %v4155_v54 = vshra.s32 %v7097_v20, 16  ;;  %v3788_v4 = vshll.u32 %v3787_v13, 16 }
 0x454   : > { %v5123_v16 = vpop.eup %5122 }
 0x455   : > { %v3174_v43 = vmul.f32 0.6931472, %v5123_v16  ;;  %v3785_v8 = vpop.xlane.xlu2 %3784 }
 0x456   : > { %v5125_v50 = vpop.eup %5124  ;;  %v3786_v47 = vcvt.f32.s32 %v3785_v8  ;;  %v7113_v48 = vpop.xlane.xlu1 %3990  ;;  %v7122_v8 = vcvt.s32.f32 %v4155_v54 }
 0x457   : > { %v3176_v44 = vmul.f32 0.6931472, %v5125_v50  ;;  %v7115_v24 = vpop.xlane.xlu0 %3531  ;;  %v3576_v16 = vsub.f32 %v3174_v43, %v3528_v59  ;;  %v3937_v50 = vsel %vm3936_vm14, %v3932_v11, inf  ;;  %v7901_v59 = vld [vmem:[#allocation30_spill] sm:$0xff]  ;;  %vm3992_vm12 = vcmp.eq.f32.partialorder %v6811_v61, %v7113_v48 }
 0x458   : > { %v3789_v20 = vadd.s32 %v3788_v4, %v3786_v47  ;;  %v3958_v4 = vand.u32 65535, %v6730_v25  ;;  %v4338_v25 = vsel %vm3625_vm2, %v4306_v33, 0.0  ;;  %v7902_v33 = vld [vmem:[#allocation33_spill] sm:$0xff] }
 0x459   : > { %v3577_v13 = vsub.f32 %v3176_v44, %v7062_v10  ;;  %v3608_v18 = vmul.f32 %v7101_v0, %v3576_v16  ;;  %v3802_v44 = vshll.u32 %v3801_v41, 16  ;;  %v3073_v41 = vmul.f32 1.442695, %v7129_v32  ;;  %v5127_v16 = vpop.eup %5126 }
 0x45a   : > { %vm4211_vm15 = vcmp.eq.s32.totalorder %v3789_v20, %v7901_v59  ;;  %3938 = vmin.xlane.f32.xlu2 %v3937_v50  ;;  %v3816_v20 = vshll.u32 %v3815_v36, 16  ;;  %v3960_v15 = vcvt.s32.f32 %v3958_v4  ;;  %v5129_v50 = vpop.eup %5128  ;;  %v7904_v4 = vld [vmem:[#allocation35_spill] sm:$0xff] }
 0x45b   : > { %v3609_v22 = vmul.f32 %v7104_v42, %v3577_v13  ;;  %v3655_v47 = vsel %vm3625_vm2, %v3608_v18, 0.0  ;;  %v4938_v10 = vsel %vm4211_vm15, 1.0, %v7843_v7  ;;  %4158 = vmin.xlane.f32.xlu0 %v7122_v8  ;;  %3553 = vadd.xlane.f32.xlu1 %v3493_v45  ;;  %v7152_v18 = vsel %vm3727_vm0, %v6478_v40, 128 }
 0x45c   : > { %v3656_v6 = vadd.f32 %v3655_v47, %v7060_v37  ;;  %v4307_v34 = vmul.f32 %v4938_v10, %v6718_v51  ;;  %v3965_v59 = vsel %vm3964_vm1, %v3960_v15, inf  ;;  %v7903_v47 = vld [vmem:[#allocation31_spill] sm:$0xff]  ;;  %5130 = vpow2.f32 %v3073_v41 }
 0x45d   : > { %v3657_v55 = vsel %vm3625_vm2, %v3609_v22, 0.0  ;;  %v7141_v3 = vpop.xlane.xlu2 %4004  ;;  %v7156_v22 = vsub.f32 %v7902_v33, %v7043_v60  ;;  %v4169_v60 = vshra.s32 %v7152_v18, 16 }
 0x45e   : > { %v7145_v11 = vadd.f32 %v3657_v55, %v3656_v6  ;;  %v4339_v52 = vsel %vm3625_vm2, %v4307_v34, 0.0  ;;  %v3799_v45 = vpop.xlane.xlu1 %3798  ;;  %v7905_v55 = vld [vmem:[#allocation32_spill] sm:$0xff]  ;;  %vm4006_vm14 = vcmp.eq.f32.partialorder %v6832_v29, %v7141_v3 }
 0x45f   : > { %v3813_v17 = vpop.xlane.xlu0 %3812  ;;  %v4340_v37 = vadd.f32 %v4339_v52, %v4338_v25  ;;  %v3800_v43 = vcvt.f32.s32 %v3799_v45  ;;  %vm3728_vm5 = vcmp.ge.f32.partialorder %v7156_v22, 0.0  ;;  %v7176_v45 = vcvt.s32.f32 %v4169_v60 }
 0x460   : > { %v3814_v54 = vcvt.f32.s32 %v3813_v17  ;;  %v7906_v17 = vld [vmem:[#allocation9_spill] sm:$0xff] }
 0x461   : > { %v3803_v36 = vadd.s32 %v3802_v44, %v3800_v43  ;;  %vm3462_vm7 = vcmp.eq.s32.totalorder %v6478_v40, %v7906_v17 }
 0x462   : > { %v3817_v13 = vadd.s32 %v3816_v20, %v3814_v54  ;;  %3133 = vadd.xlane.f32.xlu2 %v5127_v16  ;;  %v5131_v54 = vpop.eup %5130  ;;  %v3494_v15 = vsel %vm3462_vm7, %v7129_v32, 0.0  ;;  %v7186_v16 = vsel %vm3729_vm6, %v6478_v40, 128 }
 0x463   : > { %vm4212_vm3 = vcmp.eq.s32.totalorder %v3803_v36, %v7903_v47  ;;  %3135 = vadd.xlane.f32.xlu0 %v5129_v50  ;;  %3966 = vmin.xlane.f32.xlu1 %v3965_v59  ;;  %v7189_v36 = vsel %vm3728_vm5, %v6478_v40, 128  ;;  %v7193_v50 = vld [vmem:[%s6060_s26 + $0x88] sm:$0xff]  ;;  %v4197_v47 = vshra.s32 %v7186_v16, 16 }
 0x464   : > { %vm4213_vm4 = vcmp.eq.s32.totalorder %v3817_v13, %v7904_v4  ;;  %v4939_v10 = vsel %vm4212_vm3, 1.0, %v7843_v7  ;;  %7908 = vst [vmem:[#allocation28_spill] sm:$0xff] %v7193_v50  ;;  %vm3256_vm8 = vcmp.ge.s32.totalorder %v7193_v50, 0  ;;  %v4183_v32 = vshra.s32 %v7189_v36, 16 }
 0x465   : > { %v4940_v6 = vsel %vm4213_vm4, 1.0, %v7843_v7  ;;  %v4308_v34 = vmul.f32 %v4939_v10, %v7905_v55  ;;  %v7169_v20 = vpop.xlane.xlu2 %3533  ;;  %v7201_v60 = vsel %vm3256_vm8, 1.0, %v7843_v7  ;;  %v7206_v17 = vcvt.s32.f32 %v4197_v47 }
 0x466   : > { %v4309_v44 = vmul.f32 %v4940_v6, %v6768_v26  ;;  %v3114_v49 = vpop.xlane.xlu1 %3113  ;;  %7909 = vst [vmem:[#allocation8_spill] sm:$0xff] %v7201_v60  ;;  %v7208_v1 = vcvt.s32.f32 %v4183_v32 }
 0x467   : > { %v7171_v62 = vpop.xlane.xlu0 %4018  ;;  %v4341_v25 = vsel %vm3625_vm2, %v4308_v34, 0.0  ;;  %5132 = vlog2.f32 %v3114_v49  ;;  %v3075_v34 = vmul.f32 1.442695, %v7156_v22  ;;  %v3077_v49 = vmul.f32 1.442695, %v7160_v31 }
 0x468   : > { %v4342_v52 = vadd.f32 %v4341_v25, %v4340_v37  ;;  %v4343_v43 = vsel %vm3625_vm2, %v4309_v44, 0.0  ;;  %v7907_v37 = vld [vmem:[#allocation34_spill] sm:$0xff]  ;;  %vm4020_vm15 = vcmp.eq.f32.partialorder %v6853_v30, %v7171_v62  ;;  %v4056_v30 = vand.u32 65535, %v6914_v12 }
 0x469   : > { %v3972_v13 = vand.u32 65535, %v7907_v37  ;;  %v7219_v37 = vld [vmem:[%s6060_s26 + $0x98] sm:$0xff] }
 0x46a   : > { %v7181_v41 = vadd.f32 %v4343_v43, %v4342_v52  ;;  %4172 = vmin.xlane.f32.xlu2 %v7176_v45  ;;  %v3829_v43 = vcvt.f32.s32 %v6770_v56  ;;  %7911 = vst [vmem:[#allocation29_spill] sm:$0xff] %v7219_v37  ;;  %vm3258_vm11 = vcmp.ge.s32.totalorder %v7219_v37, 0 }
 0x46b   : > { %3555 = vadd.xlane.f32.xlu0 %v3494_v15  ;;  %3137 = vadd.xlane.f32.xlu1 %v5131_v54  ;;  %v3974_v44 = vcvt.s32.f32 %v3972_v13  ;;  %v7213_v15 = vld [vmem:[%s6060_s26 + $0x90] sm:$0xff]  ;;  %v3986_v13 = vand.u32 65535, %v6793_v57  ;;  %v7233_v57 = vsel %vm3258_vm11, 1.0, %v7843_v7 }
 0x46c   : > { %7910 = vst [vmem:[#allocation24_spill] sm:$0xff] %v7213_v15  ;;  %vm3257_vm10 = vcmp.ge.s32.totalorder %v7213_v15, 0  ;;  %v5187_v15 = vld [vmem:[%s6060_s26 + $0x20] sm:$0xff] }
 0x46d   : > { %v5133_v33 = vpop.eup %5132  ;;  %v3116_v59 = vpop.xlane.xlu2 %3115  ;;  %v3979_v52 = vsel %vm3978_vm9, %v3974_v44, inf }
 0x46e   : > { %v3178_v4 = vmul.f32 0.6931472, %v5133_v33  ;;  %5134 = vlog2.f32 %v3116_v59  ;;  %v3536_v10 = vpop.xlane.xlu1 %3535 }
 0x46f   : > { %v3118_v6 = vpop.xlane.xlu0 %3117 }
 0x470   : > { %5136 = vlog2.f32 %v3118_v6  ;;  %v3578_v25 = vsub.f32 %v3178_v4, %v7115_v24  ;;  %v7226_v4 = vsel %vm3257_vm10, 1.0, %v7843_v7  ;;  %v3830_v6 = vshll.u32 %v3829_v43, 16 }
 0x471   : > { %5138 = vpow2.f32 %v3075_v34  ;;  %v3843_v43 = vcvt.f32.s32 %v6799_v23  ;;  %v4028_v23 = vand.u32 65535, %v6869_v28 }
 0x472   : > { %v3610_v54 = vmul.f32 %v7201_v60, %v3578_v25  ;;  %3980 = vmin.xlane.f32.xlu2 %v3979_v52  ;;  %5140 = vpow2.f32 %v3077_v49 }
 0x473   : > { %4200 = vmin.xlane.f32.xlu0 %v7206_v17  ;;  %4186 = vmin.xlane.f32.xlu1 %v7208_v1 }
 0x474   : > { %v5135_v24 = vpop.eup %5134  ;;  %v3659_v56 = vsel %vm3625_vm2, %v3610_v54, 0.0 }
 0x475   : > { %v3660_v59 = vadd.f32 %v3659_v56, %v7145_v11  ;;  %v3180_v47 = vmul.f32 0.6931472, %v5135_v24  ;;  %v3827_v32 = vpop.xlane.xlu2 %3826  ;;  %v3988_v24 = vcvt.s32.f32 %v3986_v13 }
 0x476   : > { %v5137_v33 = vpop.eup %5136  ;;  %v3828_v44 = vcvt.f32.s32 %v3827_v32  ;;  %v7228_v25 = vpop.xlane.xlu1 %4032  ;;  %v4014_v32 = vand.u32 65535, %v6836_v39 }
 0x477   : > { %v3182_v34 = vmul.f32 0.6931472, %v5137_v33  ;;  %v7230_v52 = vpop.xlane.xlu0 %3537  ;;  %v3579_v11 = vsub.f32 %v3180_v47, %v7169_v20  ;;  %v5139_v56 = vpop.eup %5138  ;;  %v3857_v33 = vcvt.f32.s32 %v6826_v19  ;;  %v3993_v61 = vsel %vm3992_vm12, %v3988_v24, inf }
 0x478   : > { %v3831_v54 = vadd.s32 %v3830_v6, %v3828_v44  ;;  %v5141_v50 = vpop.eup %5140  ;;  %v4000_v20 = vand.u32 65535, %v6814_v14  ;;  %v3844_v6 = vshll.u32 %v3843_v43, 16  ;;  %v4016_v44 = vcvt.s32.f32 %v4014_v32 }
 0x479   : > { %v3580_v49 = vsub.f32 %v3182_v34, %v3536_v10  ;;  %v3611_v60 = vmul.f32 %v7226_v4, %v3579_v11  ;;  %v3858_v34 = vshll.u32 %v3857_v33, 16  ;;  %vm4034_vm0 = vcmp.eq.f32.partialorder %v6887_v53, %v7228_v25 }
 0x47a   : > { %vm4214_vm13 = vcmp.eq.s32.totalorder %v3831_v54, %v5187_v15  ;;  %3139 = vadd.xlane.f32.xlu2 %v5139_v56  ;;  %v4030_v54 = vcvt.s32.f32 %v4028_v23  ;;  %v4021_v43 = vsel %vm4020_vm15, %v4016_v44, inf  ;;  %v4042_v53 = vand.u32 65535, %v6892_v46 }
 0x47b   : > { %v3612_v37 = vmul.f32 %v7233_v57, %v3580_v49  ;;  %v3661_v10 = vsel %vm3625_vm2, %v3611_v60, 0.0  ;;  %v4941_v13 = vsel %vm4214_vm13, 1.0, %v7843_v7  ;;  %3141 = vadd.xlane.f32.xlu0 %v5141_v50  ;;  %3994 = vmin.xlane.f32.xlu1 %v3993_v61  ;;  %v4002_v49 = vcvt.s32.f32 %v4000_v20  ;;  %v5188_v61 = vld [vmem:[%s6060_s26 + $0x28] sm:$0xff] }
 0x47c   : > { %v3662_v19 = vadd.f32 %v3661_v10, %v3660_v59  ;;  %v4310_v47 = vmul.f32 %v4941_v13, %v6785_v21  ;;  %v4035_v32 = vsel %vm4034_vm0, %v4030_v54, inf  ;;  %v7913_v13 = vld [vmem:[#allocation36_spill] sm:$0xff]  ;;  %v4044_v44 = vcvt.s32.f32 %v4042_v53 }
 0x47d   : > { %v3663_v39 = vsel %vm3625_vm2, %v3612_v37, 0.0  ;;  %v7250_v15 = vpop.xlane.xlu2 %4046  ;;  %v4007_v33 = vsel %vm4006_vm14, %v4002_v49, inf }
 0x47e   : > { %v7256_v14 = vadd.f32 %v3663_v39, %v3662_v19  ;;  %v4345_v28 = vsel %vm3625_vm2, %v4310_v47, 0.0  ;;  %v3841_v50 = vpop.xlane.xlu1 %3840  ;;  %v4058_v47 = vcvt.s32.f32 %v4056_v30  ;;  %vm4048_vm4 = vcmp.eq.f32.partialorder %v6910_v58, %v7250_v15  ;;  %v7914_v30 = vld [vmem:[#allocation38_spill] sm:$0xff] }
 0x47f   : > { %v3855_v60 = vpop.xlane.xlu0 %3854  ;;  %v4346_v37 = vadd.f32 %v4345_v28, %v7181_v41  ;;  %v3842_v59 = vcvt.f32.s32 %v3841_v50  ;;  %v7912_v41 = vld [vmem:[#allocation37_spill] sm:$0xff]  ;;  %v4070_v50 = vand.u32 65535, %v6934_v27 }
 0x480   : > { %v3856_v11 = vcvt.f32.s32 %v3855_v60 }
 0x481   : > { %v3845_v24 = vadd.s32 %v3844_v6, %v3842_v59  ;;  %v4049_v59 = vsel %vm4048_vm4, %v4044_v44, inf }
 0x482   : > { %v3859_v56 = vadd.s32 %v3858_v34, %v3856_v11  ;;  %4022 = vmin.xlane.f32.xlu2 %v4021_v43  ;;  %v7283_v11 = vld [vmem:[%s6060_s26 + $0xa0] sm:$0xff] }
 0x483   : > { %vm4215_vm1 = vcmp.eq.s32.totalorder %v3845_v24, %v5188_v61  ;;  %4008 = vmin.xlane.f32.xlu0 %v4007_v33  ;;  %4036 = vmin.xlane.f32.xlu1 %v4035_v32  ;;  %vm3259_vm6 = vcmp.ge.s32.totalorder %v7283_v11, 0  ;;  %v4072_v24 = vcvt.s32.f32 %v4070_v50  ;;  %v3871_v33 = vcvt.f32.s32 %v7914_v30  ;;  %v7297_v61 = vld [vmem:[%s6060_s26 + $0xa8] sm:$0xff] }
 0x484   : > { %vm4216_vm3 = vcmp.eq.s32.totalorder %v3859_v56, %v7912_v41  ;;  %v4942_v20 = vsel %vm4215_vm1, 1.0, %v7843_v7  ;;  %v7289_v56 = vsel %vm3259_vm6, 1.0, %v7843_v7  ;;  %vm3260_vm8 = vcmp.ge.s32.totalorder %v7297_v61, 0  ;;  %v7915_v41 = vld [vmem:[#allocation41_spill] sm:$0xff]  ;;  %v7917_v30 = vld [vmem:[#allocation40_spill] sm:$0xff] }
 0x485   : > { %v4943_v10 = vsel %vm4216_vm3, 1.0, %v7843_v7  ;;  %v4311_v12 = vmul.f32 %v4942_v20, %v7913_v13  ;;  %v3540_v19 = vpop.xlane.xlu2 %3539  ;;  %v3885_v53 = vcvt.f32.s32 %v7915_v41 }
 0x486   : > { %v4312_v23 = vmul.f32 %v4943_v10, %v6846_v35  ;;  %v3120_v29 = vpop.xlane.xlu1 %3119 }
 0x487   : > { %v7273_v39 = vpop.xlane.xlu0 %4060  ;;  %v4347_v6 = vsel %vm3625_vm2, %v4311_v12, 0.0  ;;  %5142 = vlog2.f32 %v3120_v29  ;;  %v3872_v29 = vshll.u32 %v3871_v33, 16  ;;  %v7918_v33 = vld [vmem:[#allocation39_spill] sm:$0xff] }
 0x488   : > { %vm4062_vm5 = vcmp.eq.f32.partialorder %v6931_v63, %v7273_v39  ;;  %v4348_v46 = vadd.f32 %v4347_v6, %v4346_v37  ;;  %v4349_v28 = vsel %vm3625_vm2, %v4312_v23, 0.0  ;;  %v7304_v23 = vsel %vm3260_vm8, 1.0, %v7843_v7 }
 0x489   : > { %v4063_v34 = vsel %vm4062_vm5, %v4058_v47, inf }
 0x48a   : > { %v4350_v60 = vadd.f32 %v4349_v28, %v4348_v46  ;;  %4064 = vmin.xlane.f32.xlu2 %v4063_v34  ;;  %v3886_v34 = vshll.u32 %v3885_v53, 16 }
 0x48b   : > { %4050 = vmin.xlane.f32.xlu0 %v4049_v59  ;;  %v7916_v59 = vld [vmem:[#allocation51_spill] sm:$0xff] }
 0x48d   : > { %v5143_v58 = vpop.eup %5142  ;;  %v3122_v49 = vpop.xlane.xlu2 %3121 }
 0x48e   : > { %v3184_v54 = vmul.f32 0.6931472, %v5143_v58  ;;  %5144 = vlog2.f32 %v3122_v49  ;;  %v3542_v63 = vpop.xlane.xlu1 %3541  ;;  %v4084_v58 = vand.u32 65535, %v7916_v59 }
 0x48f   : > { %v7286_v37 = vpop.xlane.xlu0 %4074 }
 0x490   : > { %vm4076_vm7 = vcmp.eq.f32.partialorder %v6947_v2, %v7286_v37  ;;  %v3581_v27 = vsub.f32 %v3184_v54, %v7230_v52  ;;  %v5191_v54 = vld [vmem:[%s6060_s26 + $0x38] sm:$0xff] }
 0x491   : > { %v4077_v43 = vsel %vm4076_vm7, %v4072_v24, inf  ;;  %v7310_v24 = vld [vmem:[%s6060_s26 + $0xb0] sm:$0xff] }
 0x492   : > { %4078 = vmin.xlane.f32.xlu1 %v4077_v43  ;;  %v3613_v32 = vmul.f32 %v7289_v56, %v3581_v27  ;;  %vm3261_vm10 = vcmp.ge.s32.totalorder %v7310_v24, 0 }
 0x494   : > { %v5145_v20 = vpop.eup %5144  ;;  %v3665_v10 = vsel %vm3625_vm2, %v3613_v32, 0.0 }
 0x495   : > { %v3666_v12 = vadd.f32 %v3665_v10, %v7256_v14  ;;  %v3186_v2 = vmul.f32 0.6931472, %v5145_v20  ;;  %v3869_v52 = vpop.xlane.xlu2 %3868  ;;  %v7919_v20 = vld [vmem:[#allocation42_spill] sm:$0xff] }
 0x496   : > { %v3870_v47 = vcvt.f32.s32 %v3869_v52  ;;  %v3883_v6 = vpop.xlane.xlu1 %3882  ;;  %v4086_v52 = vcvt.s32.f32 %v4084_v58 }
 0x497   : > { %v3124_v46 = vpop.xlane.xlu0 %3123  ;;  %v3582_v44 = vsub.f32 %v3186_v2, %v3540_v19  ;;  %v3884_v28 = vcvt.f32.s32 %v3883_v6 }
 0x498   : > { %5146 = vlog2.f32 %v3124_v46  ;;  %v3873_v50 = vadd.s32 %v3872_v29, %v3870_v47  ;;  %v7322_v29 = vsel %vm3261_vm10, 1.0, %v7843_v7  ;;  %v7922_v46 = vld [vmem:[#allocation52_spill] sm:$0xff] }
 0x499   : > { %v3614_v14 = vmul.f32 %v7304_v23, %v3582_v44  ;;  %v3887_v49 = vadd.s32 %v3886_v34, %v3884_v28  ;;  %7921 = vst [vmem:[#allocation26_spill] sm:$0xff] %v7322_v29 }
 0x49a   : > { %vm4217_vm9 = vcmp.eq.s32.totalorder %v3873_v50, %v5191_v54 }
 0x49b   : > { %v3667_v27 = vsel %vm3625_vm2, %v3614_v14, 0.0  ;;  %v4944_v43 = vsel %vm4217_vm9, 1.0, %v7843_v7  ;;  %vm4218_vm11 = vcmp.eq.s32.totalorder %v3887_v49, %v7917_v30  ;;  %v7923_v49 = vld [vmem:[#allocation6_spill] sm:$0xff] }
 0x49c   : > { %v3668_v19 = vadd.f32 %v3667_v27, %v3666_v12  ;;  %v4313_v32 = vmul.f32 %v4944_v43, %v7918_v33  ;;  %v4945_v41 = vsel %vm4218_vm11, 1.0, %v7843_v7  ;;  %v4098_v54 = vand.u32 65535, %v7923_v49  ;;  %v7924_v27 = vld [vmem:[#allocation43_spill] sm:$0xff]  ;;  %v7332_v30 = vld [vmem:[%s6060_s26 + $0xb8] sm:$0xff] }
 0x49d   : > { %v4314_v10 = vmul.f32 %v4945_v41, %v7919_v20  ;;  %v7319_v2 = vpop.xlane.xlu2 %4088  ;;  %v3899_v43 = vcvt.f32.s32 %v7924_v27  ;;  %7925 = vst [vmem:[#allocation30_spill] sm:$0xff] %v7332_v30  ;;  %vm3262_vm13 = vcmp.ge.s32.totalorder %v7332_v30, 0  ;;  %v7930_v27 = vld [vmem:[#allocation44_spill] sm:$0xff] }
 0x49e   : > { %v5147_v53 = vpop.eup %5146  ;;  %7920 = vst [vmem:[#allocation14_spill] sm:$0xff] %v7319_v2  ;;  %v4351_v47 = vsel %vm3625_vm2, %v4313_v32, 0.0  ;;  %vm4090_vm12 = vcmp.eq.f32.partialorder %v7922_v46, %v7319_v2  ;;  %v3126_v12 = vpop.xlane.xlu1 %3125  ;;  %v7339_v46 = vsel %vm3262_vm13, 1.0, %v7843_v7 }
 0x49f   : > { %v3188_v6 = vmul.f32 0.6931472, %v5147_v53  ;;  %v3544_v34 = vpop.xlane.xlu0 %3543  ;;  %v4352_v44 = vadd.f32 %v4351_v47, %v4350_v60  ;;  %v4353_v28 = vsel %vm3625_vm2, %v4314_v10, 0.0  ;;  %5148 = vlog2.f32 %v3126_v12  ;;  %7927 = vst [vmem:[#allocation31_spill] sm:$0xff] %v7339_v46  ;;  %v7928_v12 = vld [vmem:[#allocation15_spill] sm:$0xff] }
 0x4a0   : > { %v4091_v50 = vsel %vm4090_vm12, %v4086_v52, inf  ;;  %v4100_v47 = vcvt.s32.f32 %v4098_v54 }
 0x4a1   : > { %v3583_v59 = vsub.f32 %v3188_v6, %v3542_v63  ;;  %4092 = vmin.xlane.f32.xlu0 %v4091_v50  ;;  %v4354_v58 = vadd.f32 %v4353_v28, %v4352_v44  ;;  %v3900_v6 = vshll.u32 %v3899_v43, 16 }
 0x4a3   : > { %v3615_v14 = vmul.f32 %v7322_v29, %v3583_v59  ;;  %v7947_v29 = vld [vmem:[#allocation13_spill] sm:$0xff] }
 0x4a5   : > { %v3669_v32 = vsel %vm3625_vm2, %v3615_v14, 0.0  ;;  %v5149_v60 = vpop.eup %5148  ;;  %v3546_v53 = vpop.xlane.xlu2 %3545  ;;  %v7929_v14 = vld [vmem:[#allocation5_spill] sm:$0xff] }
 0x4a6   : > { %v3670_v41 = vadd.f32 %v3669_v32, %v3668_v19  ;;  %v3190_v10 = vmul.f32 0.6931472, %v5149_v60  ;;  %v7336_v52 = vpop.xlane.xlu1 %4102  ;;  %v4112_v19 = vand.u32 65535, %v7929_v14  ;;  %v7931_v60 = vld [vmem:[#allocation45_spill] sm:$0xff]  ;;  %v7356_v14 = vld [vmem:[%s6060_s26 + $0xc0] sm:$0xff] }
 0x4a7   : > { %7926 = vst [vmem:[#allocation33_spill] sm:$0xff] %v7336_v52  ;;  %v3897_v63 = vpop.xlane.xlu0 %3896  ;;  %vm4104_vm14 = vcmp.eq.f32.partialorder %v7928_v12, %v7336_v52  ;;  %vm3263_vm1 = vcmp.ge.s32.totalorder %v7356_v14, 0  ;;  %v7367_v52 = vld [vmem:[%s6060_s26 + $0xc8] sm:$0xff] }
 0x4a8   : > { %v3898_v44 = vcvt.f32.s32 %v3897_v63  ;;  %v3584_v28 = vsub.f32 %v3190_v10, %v3544_v34  ;;  %v4105_v50 = vsel %vm4104_vm14, %v4100_v47, inf  ;;  %v4114_v63 = vcvt.s32.f32 %v4112_v19  ;;  %7935 = vst [vmem:[#allocation32_spill] sm:$0xff] %v7356_v14 }
 0x4a9   : > { %4106 = vmin.xlane.f32.xlu2 %v4105_v50  ;;  %v7934_v50 = vld [vmem:[#allocation46_spill] sm:$0xff]  ;;  %7939 = vst [vmem:[#allocation34_spill] sm:$0xff] %v7367_v52  ;;  %vm3264_vm4 = vcmp.ge.s32.totalorder %v7367_v52, 0 }
 0x4aa   : > { %v3901_v59 = vadd.s32 %v3900_v6, %v3898_v44  ;;  %v3616_v49 = vmul.f32 %v7339_v46, %v3584_v28  ;;  %v7933_v6 = vld [vmem:[#allocation12_spill] sm:$0xff] }
 0x4ac   : > { %vm4219_vm15 = vcmp.eq.s32.totalorder %v3901_v59, %v7930_v27  ;;  %v3671_v54 = vsel %vm3625_vm2, %v3616_v49, 0.0  ;;  %v3913_v59 = vcvt.f32.s32 %v7934_v50 }
 0x4ad   : > { %v4946_v43 = vsel %vm4219_vm15, 1.0, %v7843_v7  ;;  %v3672_v32 = vadd.f32 %v3671_v54, %v3670_v41  ;;  %v3128_v12 = vpop.xlane.xlu2 %3127  ;;  %v7936_v41 = vld [vmem:[#allocation49_spill] sm:$0xff] }
 0x4ae   : > { %v4315_v30 = vmul.f32 %v4946_v43, %v7931_v60  ;;  %5150 = vlog2.f32 %v3128_v12  ;;  %v3548_v34 = vpop.xlane.xlu1 %3547  ;;  %v3927_v49 = vcvt.f32.s32 %v7936_v41  ;;  %v3914_v43 = vshll.u32 %v3913_v59, 16 }
 0x4af   : > { %v7349_v10 = vpop.xlane.xlu0 %4116 }
 0x4b0   : > { %7932 = vst [vmem:[#allocation35_spill] sm:$0xff] %v7349_v10  ;;  %v4355_v47 = vsel %vm3625_vm2, %v4315_v30, 0.0  ;;  %vm4118_vm0 = vcmp.eq.f32.partialorder %v7933_v6, %v7349_v10  ;;  %v7361_v30 = vsel %vm3263_vm1, 1.0, %v7843_v7  ;;  %v7938_v10 = vld [vmem:[#allocation21_spill] sm:$0xff] }
 0x4b1   : > { %v4356_v44 = vadd.f32 %v4355_v47, %v4354_v58  ;;  %v4119_v28 = vsel %vm4118_vm0, %v4114_v63, inf  ;;  %7937 = vst [vmem:[#allocation9_spill] sm:$0xff] %v7361_v30  ;;  %v3928_v47 = vshll.u32 %v3927_v49, 16  ;;  %v4126_v46 = vand.u32 65535, %v7938_v10  ;;  %v7940_v49 = vld [vmem:[#allocation48_spill] sm:$0xff] }
 0x4b2   : > { %4120 = vmin.xlane.f32.xlu1 %v4119_v28 }
 0x4b4   : > { %v5151_v27 = vpop.eup %5150 }
 0x4b5   : > { %v3192_v54 = vmul.f32 0.6931472, %v5151_v27  ;;  %v3911_v19 = vpop.xlane.xlu2 %3910  ;;  %v5195_v27 = vld [vmem:[%s6060_s26 + $0x50] sm:$0xff] }
 0x4b6   : > { %v3912_v58 = vcvt.f32.s32 %v3911_v19  ;;  %v3925_v12 = vpop.xlane.xlu1 %3924 }
 0x4b7   : > { %v3130_v63 = vpop.xlane.xlu0 %3129  ;;  %v3585_v6 = vsub.f32 %v3192_v54, %v3546_v53  ;;  %v3926_v28 = vcvt.f32.s32 %v3925_v12  ;;  %v7941_v54 = vld [vmem:[#allocation47_spill] sm:$0xff] }
 0x4b8   : > { %5152 = vlog2.f32 %v3130_v63  ;;  %v3915_v50 = vadd.s32 %v3914_v43, %v3912_v58  ;;  %v7942_v63 = vld [vmem:[#allocation50_spill] sm:$0xff] }
 0x4b9   : > { %v3617_v14 = vmul.f32 %v7361_v30, %v3585_v6  ;;  %v3929_v41 = vadd.s32 %v3928_v47, %v3926_v28  ;;  %v4128_v6 = vcvt.s32.f32 %v4126_v46  ;;  %v7379_v28 = vsel %vm3264_vm4, 1.0, %v7843_v7  ;;  %v7946_v30 = vld [vmem:[#allocation22_spill] sm:$0xff] }
 0x4ba   : > { %vm4220_vm3 = vcmp.eq.s32.totalorder %v3915_v50, %v5195_v27  ;;  %7944 = vst [vmem:[#allocation36_spill] sm:$0xff] %v7379_v28  ;;  %v4140_v2 = vand.u32 65535, %v7946_v30 }
 0x4bb   : > { %v3673_v59 = vsel %vm3625_vm2, %v3617_v14, 0.0  ;;  %v4947_v19 = vsel %vm4220_vm3, 1.0, %v7843_v7  ;;  %vm4221_vm5 = vcmp.eq.s32.totalorder %v3929_v41, %v7940_v49  ;;  %v7945_v41 = vld [vmem:[#allocation17_spill] sm:$0xff] }
 0x4bc   : > { %v3674_v53 = vadd.f32 %v3673_v59, %v3672_v32  ;;  %v4316_v43 = vmul.f32 %v4947_v19, %v7941_v54  ;;  %v4948_v58 = vsel %vm4221_vm5, 1.0, %v7843_v7 }
 0x4bd   : > { %v4317_v10 = vmul.f32 %v4948_v58, %v7942_v63  ;;  %v7376_v47 = vpop.xlane.xlu2 %4130 }
 0x4be   : > { %v5153_v12 = vpop.eup %5152  ;;  %7943 = vst [vmem:[#allocation37_spill] sm:$0xff] %v7376_v47  ;;  %v4357_v14 = vsel %vm3625_vm2, %v4316_v43, 0.0  ;;  %vm4132_vm6 = vcmp.eq.f32.partialorder %v7945_v41, %v7376_v47  ;;  %v3132_v32 = vpop.xlane.xlu1 %3131  ;;  %v3955_v43 = vcvt.f32.s32 %v7947_v29  ;;  %v7949_v29 = vld [vmem:[#allocation25_spill] sm:$0xff] }
 0x4bf   : > { %v3194_v50 = vmul.f32 0.6931472, %v5153_v12  ;;  %v3550_v27 = vpop.xlane.xlu0 %3549  ;;  %v4358_v59 = vadd.f32 %v4357_v14, %v4356_v44  ;;  %v4359_v19 = vsel %vm3625_vm2, %v4317_v10, 0.0  ;;  %5154 = vlog2.f32 %v3132_v32  ;;  %v7389_v12 = vld [vmem:[%s6060_s26 + $0xd0] sm:$0xff] }
 0x4c0   : > { %v4133_v49 = vsel %vm4132_vm6, %v4128_v6, inf  ;;  %7948 = vst [vmem:[#allocation38_spill] sm:$0xff] %v7389_v12  ;;  %vm3265_vm7 = vcmp.ge.s32.totalorder %v7389_v12, 0  ;;  %v4142_v32 = vcvt.s32.f32 %v4140_v2  ;;  %v7951_v12 = vld [vmem:[#allocation27_spill] sm:$0xff] }
 0x4c1   : > { %v3586_v58 = vsub.f32 %v3194_v50, %v3548_v34  ;;  %4134 = vmin.xlane.f32.xlu0 %v4133_v49  ;;  %v4360_v46 = vadd.f32 %v4359_v19, %v4358_v59  ;;  %v3956_v59 = vshll.u32 %v3955_v43, 16  ;;  %v7398_v30 = vsel %vm3265_vm7, 1.0, %v7843_v7 }
 0x4c2   : > { %v4154_v47 = vand.u32 65535, %v7951_v12  ;;  %v4410_v43 = vsel %vm3625_vm2, %v6713_v38, 0.0 }
 0x4c3   : > { %v3618_v52 = vmul.f32 %v7379_v28, %v3586_v58  ;;  %v4411_v28 = vsel %vm3625_vm2, %v6718_v51, 0.0  ;;  %v4413_v51 = vsel %vm3625_vm2, %v7905_v55, 0.0 }
 0x4c4   : > { %v4156_v12 = vcvt.s32.f32 %v4154_v47  ;;  %v4412_v38 = vadd.f32 %v4411_v28, %v4410_v43  ;;  %v4415_v43 = vsel %vm3625_vm2, %v6768_v26, 0.0 }
 0x4c5   : > { %v3675_v41 = vsel %vm3625_vm2, %v3618_v52, 0.0  ;;  %v5155_v44 = vpop.eup %5154  ;;  %v7393_v10 = vpop.xlane.xlu2 %3551 }
 0x4c6   : > { %v3676_v14 = vadd.f32 %v3675_v41, %v3674_v53  ;;  %v3196_v6 = vmul.f32 0.6931472, %v5155_v44  ;;  %v7395_v34 = vpop.xlane.xlu1 %4144  ;;  %v7950_v53 = vld [vmem:[#allocation16_spill] sm:$0xff]  ;;  %v4414_v47 = vadd.f32 %v4413_v51, %v4412_v38 }
 0x4c7   : > { %v3953_v50 = vpop.xlane.xlu0 %3952  ;;  %vm4146_vm8 = vcmp.eq.f32.partialorder %v7949_v29, %v7395_v34  ;;  %v3941_v41 = vcvt.f32.s32 %v7950_v53  ;;  %v5198_v53 = vld [vmem:[%s6060_s26 + $0x60] sm:$0xff] }
 0x4c8   : > { %v3954_v19 = vcvt.f32.s32 %v3953_v50  ;;  %v3587_v49 = vsub.f32 %v3196_v6, %v3550_v27  ;;  %v4147_v58 = vsel %vm4146_vm8, %v4142_v32, inf  ;;  %v7952_v32 = vld [vmem:[#allocation53_spill] sm:$0xff] }
 0x4c9   : > { %4148 = vmin.xlane.f32.xlu2 %v4147_v58  ;;  %v3942_v6 = vshll.u32 %v3941_v41, 16 }
 0x4ca   : > { %v3957_v52 = vadd.s32 %v3956_v59, %v3954_v19  ;;  %v3619_v44 = vmul.f32 %v7398_v30, %v3587_v49 }
 0x4cc   : > { %v3677_v2 = vsel %vm3625_vm2, %v3619_v44, 0.0  ;;  %vm4223_vm9 = vcmp.eq.s32.totalorder %v3957_v52, %v7952_v32  ;;  %v3969_v52 = vcvt.f32.s32 %v7039_v5  ;;  %v7953_v44 = vld [vmem:[#allocation54_spill] sm:$0xff] }
 0x4cd   : > { %v7410_v50 = vadd.f32 %v3677_v2, %v3676_v14  ;;  %v3939_v27 = vpop.xlane.xlu2 %3938  ;;  %v4950_v14 = vsel %vm4223_vm9, 1.0, %v7843_v7 }
 0x4ce   : > { %v3940_v59 = vcvt.f32.s32 %v3939_v27  ;;  %v7413_v29 = vpop.xlane.xlu1 %3553  ;;  %v4319_v2 = vmul.f32 %v4950_v14, %v7953_v44  ;;  %v4168_v14 = vand.u32 65535, %v7152_v18 }
 0x4cf   : > { %v7415_v19 = vpop.xlane.xlu0 %4158 }
 0x4d0   : > { %vm4160_vm10 = vcmp.eq.f32.partialorder %v7122_v8, %v7415_v19  ;;  %v3943_v49 = vadd.s32 %v3942_v6, %v3940_v59  ;;  %v7954_v8 = vld [vmem:[#allocation18_spill] sm:$0xff]  ;;  %v3970_v59 = vshll.u32 %v3969_v52, 16  ;;  %v4363_v38 = vsel %vm3625_vm2, %v4319_v2, 0.0 }
 0x4d1   : > { %v4161_v58 = vsel %vm4160_vm10, %v4156_v12, inf }
 0x4d2   : > { %4162 = vmin.xlane.f32.xlu1 %v4161_v58  ;;  %vm4222_vm11 = vcmp.eq.s32.totalorder %v3943_v49, %v5198_v53  ;;  %v4416_v49 = vadd.f32 %v4415_v43, %v4414_v47  ;;  %v7432_v58 = vld [vmem:[%s6060_s26 + $0xd8] sm:$0xff]  ;;  %v4417_v53 = vsel %vm3625_vm2, %v6785_v21, 0.0  ;;  %v4170_v21 = vcvt.s32.f32 %v4168_v14 }
 0x4d3   : > { %v4949_v41 = vsel %vm4222_vm11, 1.0, %v7843_v7  ;;  %vm3266_vm12 = vcmp.ge.s32.totalorder %v7432_v58, 0 }
 0x4d4   : > { %v4318_v28 = vmul.f32 %v4949_v41, %v7954_v8  ;;  %v7439_v41 = vld [vmem:[%s6060_s26 + $0xe0] sm:$0xff]  ;;  %v7444_v47 = vsel %vm3266_vm12, 1.0, %v7843_v7  ;;  %v4418_v43 = vadd.f32 %v4417_v53, %v4416_v49 }
 0x4d5   : > { %v3134_v27 = vpop.xlane.xlu2 %3133  ;;  %vm3267_vm13 = vcmp.ge.s32.totalorder %v7439_v41, 0 }
 0x4d6   : > { %v4361_v55 = vsel %vm3625_vm2, %v4318_v28, 0.0  ;;  %5156 = vlog2.f32 %v3134_v27  ;;  %v3967_v6 = vpop.xlane.xlu1 %3966 }
 0x4d7   : > { %v3136_v32 = vpop.xlane.xlu0 %3135  ;;  %v4362_v5 = vadd.f32 %v4361_v55, %v4360_v46  ;;  %v3968_v12 = vcvt.f32.s32 %v3967_v6  ;;  %v7955_v46 = vld [vmem:[#allocation20_spill] sm:$0xff]  ;;  %v7956_v55 = vld [vmem:[#allocation19_spill] sm:$0xff] }
 0x4d8   : > { %5158 = vlog2.f32 %v3136_v32  ;;  %v7451_v32 = vsel %vm3267_vm13, 1.0, %v7843_v7 }
 0x4d9   : > { %v3971_v51 = vadd.s32 %v3970_v59, %v3968_v12  ;;  %v4364_v26 = vadd.f32 %v4363_v38, %v4362_v5  ;;  %v4419_v59 = vsel %vm3625_vm2, %v7913_v13, 0.0  ;;  %v3983_v13 = vcvt.f32.s32 %v7064_v9 }
 0x4db   : > { %vm4224_vm14 = vcmp.eq.s32.totalorder %v3971_v51, %v7955_v46 }
 0x4dc   : > { %v5157_v52 = vpop.eup %5156  ;;  %v4951_v2 = vsel %vm4224_vm14, 1.0, %v7843_v7 }
 0x4dd   : > { %v3198_v27 = vmul.f32 0.6931472, %v5157_v52  ;;  %v4320_v18 = vmul.f32 %v4951_v2, %v7956_v55  ;;  %v7448_v6 = vpop.xlane.xlu2 %4172  ;;  %v4420_v52 = vadd.f32 %v4419_v59, %v4418_v43 }
 0x4de   : > { %v5159_v28 = vpop.eup %5158  ;;  %vm4174_vm15 = vcmp.eq.f32.partialorder %v7176_v45, %v7448_v6  ;;  %v3138_v12 = vpop.xlane.xlu1 %3137  ;;  %v4182_v45 = vand.u32 65535, %v7189_v36 }
 0x4df   : > { %v3200_v5 = vmul.f32 0.6931472, %v5159_v28  ;;  %v3556_v38 = vpop.xlane.xlu0 %3555  ;;  %v3588_v49 = vsub.f32 %v3198_v27, %v7393_v10  ;;  %v4365_v51 = vsel %vm3625_vm2, %v4320_v18, 0.0  ;;  %5160 = vlog2.f32 %v3138_v12 }
 0x4e0   : > { %v4175_v53 = vsel %vm4174_vm15, %v4170_v21, inf  ;;  %v4366_v14 = vadd.f32 %v4365_v51, %v4364_v26  ;;  %v4421_v28 = vsel %vm3625_vm2, %v6846_v35, 0.0  ;;  %v4196_v27 = vand.u32 65535, %v7186_v16  ;;  %v7469_v26 = vld [vmem:[%s6060_s26 + $0xe8] sm:$0xff]  ;;  %v7957_v21 = vld [vmem:[#allocation11_spill] sm:$0xff] }
 0x4e1   : > { %v3589_v46 = vsub.f32 %v3200_v5, %v7413_v29  ;;  %4176 = vmin.xlane.f32.xlu0 %v4175_v53  ;;  %v3620_v2 = vmul.f32 %v7444_v47, %v3588_v49  ;;  %vm3268_vm0 = vcmp.ge.s32.totalorder %v7469_v26, 0  ;;  %vm3464_vm1 = vcmp.eq.s32.totalorder %v6478_v40, %v7957_v21 }
 0x4e2   : > { %v4422_v36 = vadd.f32 %v4421_v28, %v4420_v52  ;;  %v3984_v35 = vshll.u32 %v3983_v13, 16  ;;  %v4184_v5 = vcvt.s32.f32 %v4182_v45  ;;  %v3496_v52 = vsel %vm3464_vm1, %v7160_v31, 0.0 }
 0x4e3   : > { %v3621_v10 = vmul.f32 %v7451_v32, %v3589_v46  ;;  %v3679_v18 = vsel %vm3625_vm2, %v3620_v2, 0.0  ;;  %v4198_v46 = vcvt.s32.f32 %v4196_v27 }
 0x4e4   : > { %v3680_v29 = vadd.f32 %v3679_v18, %v7410_v50  ;;  %v7481_v50 = vsel %vm3268_vm0, 1.0, %v7843_v7  ;;  %v7958_v18 = vld [vmem:[#allocation23_spill] sm:$0xff] }
 0x4e5   : > { %v3681_v9 = vsel %vm3625_vm2, %v3621_v10, 0.0  ;;  %v5161_v43 = vpop.eup %5160  ;;  %v3981_v59 = vpop.xlane.xlu2 %3980  ;;  %v4423_v10 = vsel %vm3625_vm2, %v7918_v33, 0.0 }
 0x4e6   : > { %v3202_v12 = vmul.f32 0.6931472, %v5161_v43  ;;  %v3682_v16 = vadd.f32 %v3681_v9, %v3680_v29  ;;  %v3982_v49 = vcvt.f32.s32 %v3981_v59  ;;  %v7476_v51 = vpop.xlane.xlu1 %4186  ;;  %v4424_v29 = vadd.f32 %v4423_v10, %v4422_v36 }
 0x4e7   : > { %v7478_v53 = vpop.xlane.xlu0 %4200  ;;  %vm4188_vm3 = vcmp.eq.f32.partialorder %v7208_v1, %v7476_v51  ;;  %v3997_v1 = vcvt.f32.s32 %v7113_v48  ;;  %v4425_v9 = vsel %vm3625_vm2, %v7919_v20, 0.0  ;;  %v7959_v48 = vld [vmem:[#allocation10_spill] sm:$0xff]  ;;  %v4427_v20 = vsel %vm3625_vm2, %v7931_v60, 0.0 }
 0x4e8   : > { %vm4202_vm4 = vcmp.eq.f32.partialorder %v7206_v17, %v7478_v53  ;;  %v3590_v13 = vsub.f32 %v3202_v12, %v3556_v38  ;;  %v3985_v2 = vadd.s32 %v3984_v35, %v3982_v49  ;;  %v4189_v45 = vsel %vm4188_vm3, %v4184_v5, inf }
 0x4e9   : > { %3559 = vadd.xlane.f32.xlu0 %v3496_v52  ;;  %v4203_v28 = vsel %vm4202_vm4, %v4198_v46, inf  ;;  %4190 = vmin.xlane.f32.xlu2 %v4189_v45  ;;  %vm3463_vm6 = vcmp.eq.s32.totalorder %v6478_v40, %v7959_v48  ;;  %v3998_v36 = vshll.u32 %v3997_v1, 16  ;;  %v4426_v49 = vadd.f32 %v4425_v9, %v4424_v29  ;;  %v7960_v45 = vld [vmem:[#allocation7_spill] sm:$0xff] }
 0x4ea   : > { %4204 = vmin.xlane.f32.xlu1 %v4203_v28  ;;  %v3622_v27 = vmul.f32 %v7481_v50, %v3590_v13  ;;  %vm4225_vm5 = vcmp.eq.s32.totalorder %v3985_v2, %v7958_v18  ;;  %v3495_v46 = vsel %vm3463_vm6, %v7156_v22, 0.0  ;;  %v4011_v52 = vcvt.f32.s32 %v7141_v3 }
 0x4eb   : > { %v4952_v17 = vsel %vm4225_vm5, 1.0, %v7843_v7  ;;  %v4025_v13 = vcvt.f32.s32 %v7171_v62  ;;  %v4039_v2 = vcvt.f32.s32 %v7228_v25  ;;  %v4428_v40 = vadd.f32 %v4427_v20, %v4426_v49  ;;  %v7963_v20 = vld [vmem:[#allocation28_spill] sm:$0xff] }
 0x4ec   : > { %v3683_v31 = vsel %vm3625_vm2, %v3622_v27, 0.0  ;;  %v4321_v38 = vmul.f32 %v4952_v17, %v7101_v0  ;;  %v4429_v28 = vsel %vm3625_vm2, %v7941_v54, 0.0  ;;  %v4012_v60 = vshll.u32 %v4011_v52, 16 }
 0x4ed   : > { %v7498_v43 = vadd.f32 %v3683_v31, %v3682_v16  ;;  %v7500_v33 = vpop.xlane.xlu2 %3139  ;;  %v4026_v27 = vshll.u32 %v4025_v13, 16  ;;  %v4040_v17 = vshll.u32 %v4039_v2, 16  ;;  %v4430_v31 = vadd.f32 %v4429_v28, %v4428_v40  ;;  %v7964_v13 = vld [vmem:[#allocation8_spill] sm:$0xff] }
 0x4ee   : > { %v4367_v21 = vsel %vm3625_vm2, %v4321_v38, 0.0  ;;  %v3995_v35 = vpop.xlane.xlu1 %3994  ;;  %v4067_v48 = vcvt.f32.s32 %v7273_v39 }
 0x4ef   : > { %v7503_v59 = vpop.xlane.xlu0 %3141  ;;  %v4368_v5 = vadd.f32 %v4367_v21, %v4366_v14  ;;  %v3996_v12 = vcvt.f32.s32 %v3995_v35  ;;  %v4431_v21 = vsel %vm3625_vm2, %v7942_v63, 0.0  ;;  %v4433_v63 = vsel %vm3625_vm2, %v7954_v8, 0.0 }
 0x4f0   : > { %v4435_v8 = vsel %vm3625_vm2, %v7953_v44, 0.0  ;;  %5162 = vlog2.f32 %v7503_v59 }
 0x4f1   : > { %v3999_v16 = vadd.s32 %v3998_v36, %v3996_v12  ;;  %3557 = vadd.xlane.f32.xlu2 %v3495_v46  ;;  %v7961_v36 = vld [vmem:[#allocation24_spill] sm:$0xff]  ;;  %v4053_v12 = vcvt.f32.s32 %v7250_v15  ;;  %v7962_v46 = vld [vmem:[#allocation29_spill] sm:$0xff]  ;;  %v4068_v15 = vshll.u32 %v4067_v48, 16  ;;  %5164 = vlog2.f32 %v7500_v33 }
 0x4f3   : > { %vm4226_vm7 = vcmp.eq.s32.totalorder %v3999_v16, %v7960_v45  ;;  %v4432_v16 = vadd.f32 %v4431_v21, %v4430_v31  ;;  %v4054_v28 = vshll.u32 %v4053_v12, 16 }
 0x4f4   : > { %v4953_v14 = vsel %vm4226_vm7, 1.0, %v7843_v7 }
 0x4f5   : > { %v4322_v22 = vmul.f32 %v4953_v14, %v7104_v42  ;;  %v4023_v10 = vpop.xlane.xlu2 %4022 }
 0x4f6   : > { %v4024_v18 = vcvt.f32.s32 %v4023_v10  ;;  %v4037_v1 = vpop.xlane.xlu1 %4036  ;;  %v5163_v59 = vpop.eup %5162 }
 0x4f7   : > { %v4009_v3 = vpop.xlane.xlu0 %4008  ;;  %v4369_v62 = vsel %vm3625_vm2, %v4322_v22, 0.0  ;;  %v4038_v25 = vcvt.f32.s32 %v4037_v1 }
 0x4f8   : > { %v4010_v29 = vcvt.f32.s32 %v4009_v3  ;;  %v4370_v38 = vadd.f32 %v4369_v62, %v4368_v5  ;;  %v4027_v9 = vadd.s32 %v4026_v27, %v4024_v18  ;;  %v4434_v27 = vadd.f32 %v4433_v63, %v4432_v16 }
 0x4f9   : > { %v4041_v54 = vadd.s32 %v4040_v17, %v4038_v25  ;;  %v4081_v3 = vcvt.f32.s32 %v7286_v37 }
 0x4fa   : > { %v4013_v35 = vadd.s32 %v4012_v60, %v4010_v29  ;;  %vm4228_vm8 = vcmp.eq.s32.totalorder %v4027_v9, %v7961_v36  ;;  %v4436_v9 = vadd.f32 %v4435_v8, %v4434_v27  ;;  %v7968_v8 = vld [vmem:[#allocation33_spill] sm:$0xff] }
 0x4fb   : > { %v4955_v49 = vsel %vm4228_vm8, 1.0, %v7843_v7  ;;  %vm4229_vm9 = vcmp.eq.s32.totalorder %v4041_v54, %v7962_v46  ;;  %v4082_v44 = vshll.u32 %v4081_v3, 16 }
 0x4fc   : > { %vm4227_vm10 = vcmp.eq.s32.totalorder %v4013_v35, %v7963_v20  ;;  %v4956_v5 = vsel %vm4229_vm9, 1.0, %v7843_v7  ;;  %v4324_v39 = vmul.f32 %v4955_v49, %v7226_v4  ;;  %v4439_v20 = vsel %vm3625_vm2, %v7101_v0, 0.0 }
 0x4fd   : > { %v4954_v52 = vsel %vm4227_vm10, 1.0, %v7843_v7  ;;  %v4065_v45 = vpop.xlane.xlu2 %4064  ;;  %v4325_v22 = vmul.f32 %v4956_v5, %v7233_v57 }
 0x4fe   : > { %v4323_v2 = vmul.f32 %v4954_v52, %v7964_v13  ;;  %v4066_v40 = vcvt.f32.s32 %v4065_v45  ;;  %v4373_v17 = vsel %vm3625_vm2, %v4324_v39, 0.0  ;;  %v7965_v52 = vld [vmem:[#allocation26_spill] sm:$0xff] }
 0x4ff   : > { %v4051_v14 = vpop.xlane.xlu0 %4050  ;;  %v4375_v29 = vsel %vm3625_vm2, %v4325_v22, 0.0 }
 0x500   : > { %v4371_v10 = vsel %vm3625_vm2, %v4323_v2, 0.0  ;;  %v4052_v60 = vcvt.f32.s32 %v4051_v14  ;;  %v4069_v1 = vadd.s32 %v4068_v15, %v4066_v40  ;;  %v4441_v2 = vsel %vm3625_vm2, %v7104_v42, 0.0  ;;  %v7966_v15 = vld [vmem:[#allocation14_spill] sm:$0xff] }
 0x501   : > { %v4372_v18 = vadd.f32 %v4371_v10, %v4370_v38  ;;  %v4095_v40 = vcvt.f32.s32 %v7966_v15  ;;  %v4109_v42 = vcvt.f32.s32 %v7968_v8  ;;  %v4461_v8 = vsel %vm3625_vm2, %v7398_v30, 0.0 }
 0x502   : > { %v4055_v62 = vadd.s32 %v4054_v28, %v4052_v60  ;;  %vm4231_vm11 = vcmp.eq.s32.totalorder %v4069_v1, %v7297_v61  ;;  %v4437_v61 = vsel %vm3625_vm2, %v7956_v55, 0.0  ;;  %v4445_v60 = vsel %vm3625_vm2, %v7226_v4, 0.0 }
 0x503   : > { %v4374_v25 = vadd.f32 %v4373_v17, %v4372_v18  ;;  %v4958_v31 = vsel %vm4231_vm11, 1.0, %v7843_v7  ;;  %v4438_v46 = vadd.f32 %v4437_v61, %v4436_v9  ;;  %v4096_v0 = vshll.u32 %v4095_v40, 16  ;;  %v7967_v18 = vld [vmem:[#allocation30_spill] sm:$0xff] }
 0x504   : > { %vm4230_vm12 = vcmp.eq.s32.totalorder %v4055_v62, %v7283_v11  ;;  %v4327_v37 = vmul.f32 %v4958_v31, %v7304_v23  ;;  %v4447_v17 = vsel %vm3625_vm2, %v7233_v57, 0.0  ;;  %v7969_v62 = vld [vmem:[#allocation31_spill] sm:$0xff]  ;;  %v4110_v9 = vshll.u32 %v4109_v42, 16 }
 0x505   : > { %v4376_v38 = vadd.f32 %v4375_v29, %v4374_v25  ;;  %v4957_v21 = vsel %vm4230_vm12, 1.0, %v7843_v7  ;;  %v4079_v54 = vpop.xlane.xlu1 %4078  ;;  %v4440_v39 = vadd.f32 %v4439_v20, %v4438_v46  ;;  %v4451_v57 = vsel %vm3625_vm2, %v7304_v23, 0.0 }
 0x506   : > { %v4326_v35 = vmul.f32 %v4957_v21, %v7289_v56  ;;  %v4080_v48 = vcvt.f32.s32 %v4079_v54  ;;  %v4379_v11 = vsel %vm3625_vm2, %v4327_v37, 0.0  ;;  %v4449_v21 = vsel %vm3625_vm2, %v7289_v56, 0.0  ;;  %v7970_v37 = vld [vmem:[#allocation35_spill] sm:$0xff] }
 0x507   : > { %v4442_v14 = vadd.f32 %v4441_v2, %v4440_v39  ;;  %v4453_v56 = vsel %vm3625_vm2, %v7965_v52, 0.0  ;;  %v4455_v23 = vsel %vm3625_vm2, %v7969_v62, 0.0 }
 0x508   : > { %v4377_v36 = vsel %vm3625_vm2, %v4326_v35, 0.0  ;;  %v4083_v12 = vadd.s32 %v4082_v44, %v4080_v48  ;;  %v4123_v35 = vcvt.f32.s32 %v7970_v37  ;;  %v7971_v48 = vld [vmem:[#allocation32_spill] sm:$0xff] }
 0x509   : > { %v4378_v49 = vadd.f32 %v4377_v36, %v4376_v38  ;;  %v7972_v36 = vld [vmem:[#allocation9_spill] sm:$0xff] }
 0x50a   : > { %vm4232_vm13 = vcmp.eq.s32.totalorder %v4083_v12, %v7310_v24  ;;  %v4443_v24 = vsel %vm3625_vm2, %v7964_v13, 0.0 }
 0x50b   : > { %v4959_v16 = vsel %vm4232_vm13, 1.0, %v7843_v7  ;;  %v4380_v5 = vadd.f32 %v4379_v11, %v4378_v49  ;;  %v4444_v10 = vadd.f32 %v4443_v24, %v4442_v14  ;;  %v4124_v11 = vshll.u32 %v4123_v35, 16 }
 0x50c   : > { %v4328_v63 = vmul.f32 %v4959_v16, %v7965_v52  ;;  %v4457_v24 = vsel %vm3625_vm2, %v7972_v36, 0.0  ;;  %v7975_v52 = vld [vmem:[#allocation37_spill] sm:$0xff]  ;;  %v4165_v35 = vcvt.f32.s32 %v7415_v19 }
 0x50d   : > { %v4446_v1 = vadd.f32 %v4445_v60, %v4444_v10 }
 0x50e   : > { %v4381_v55 = vsel %vm3625_vm2, %v4328_v63, 0.0 }
 0x50f   : > { %v4382_v45 = vadd.f32 %v4381_v55, %v4380_v5  ;;  %v4448_v31 = vadd.f32 %v4447_v17, %v4446_v1  ;;  %v7973_v55 = vld [vmem:[#allocation34_spill] sm:$0xff] }
 0x511   : > { %v4450_v44 = vadd.f32 %v4449_v21, %v4448_v31 }
 0x513   : > { %v4452_v46 = vadd.f32 %v4451_v57, %v4450_v44  ;;  %v4465_v44 = vsel %vm3625_vm2, %v7451_v32, 0.0  ;;  %v5203_v57 = vld [vmem:[%s6060_s26 + $0xf8] sm:$0xff] }
 0x514   : > { %v4093_v28 = vpop.xlane.xlu0 %4092  ;;  %vm3270_vm5 = vcmp.ge.s32.totalorder %v5203_v57, 0 }
 0x515   : > { %v4094_v22 = vcvt.f32.s32 %v4093_v28  ;;  %v4454_v39 = vadd.f32 %v4453_v56, %v4452_v46  ;;  %v4166_v46 = vshll.u32 %v4165_v35, 16  ;;  %v4936_v56 = vsel %vm3270_vm5, 1.0, %v7843_v7 }
 0x517   : > { %v4097_v27 = vadd.s32 %v4096_v0, %v4094_v22  ;;  %v4456_v40 = vadd.f32 %v4455_v23, %v4454_v39  ;;  %v4137_v0 = vcvt.f32.s32 %v7975_v52  ;;  %v4193_v52 = vcvt.f32.s32 %v7476_v51 }
 0x519   : > { %vm4233_vm14 = vcmp.eq.s32.totalorder %v4097_v27, %v7967_v18  ;;  %v4458_v22 = vadd.f32 %v4457_v24, %v4456_v40  ;;  %v4138_v27 = vshll.u32 %v4137_v0, 16 }
 0x51a   : > { %v4960_v3 = vsel %vm4233_vm14, 1.0, %v7843_v7 }
 0x51b   : > { %v4329_v13 = vmul.f32 %v4960_v3, %v7969_v62  ;;  %v7976_v3 = vld [vmem:[#allocation38_spill] sm:$0xff]  ;;  %v4151_v62 = vcvt.f32.s32 %v7395_v34  ;;  %v5202_v34 = vld [vmem:[%s6060_s26 + $0xf0] sm:$0xff]  ;;  %s261_s26 = scalar_lea.vmem [#allocation2], %s4983_s16 }
 0x51c   : > { %v4107_v29 = vpop.xlane.xlu2 %4106  ;;  %vm3269_vm3 = vcmp.ge.s32.totalorder %v5202_v34, 0  ;;  %s4501_s28 = sshll.u32 %s261_s26, 4  ;;  %s7641_s28 = int_to_ptr.vmem [resolvable:$true] %s4501_s28 }
 0x51d   : > { %v4383_v25 = vsel %vm3625_vm2, %v4329_v13, 0.0  ;;  %v4108_v4 = vcvt.f32.s32 %v4107_v29 }
 0x51e   : > { %v4384_v38 = vadd.f32 %v4383_v25, %v4382_v45  ;;  %v7974_v45 = vld [vmem:[#allocation36_spill] sm:$0xff]  ;;  %v4463_v25 = vsel %vm3625_vm2, %v7444_v47, 0.0 }
 0x51f   : > { %v4111_v54 = vadd.s32 %v4110_v9, %v4108_v4  ;;  %v4459_v10 = vsel %vm3625_vm2, %v7974_v45, 0.0  ;;  %v4152_v4 = vshll.u32 %v4151_v62, 16 }
 0x520   : > { %v4460_v1 = vadd.f32 %v4459_v10, %v4458_v22  ;;  %v4194_v22 = vshll.u32 %v4193_v52, 16 }
 0x521   : > { %vm4234_vm15 = vcmp.eq.s32.totalorder %v4111_v54, %v7971_v48  ;;  %v4467_v48 = vsel %vm3625_vm2, %v7481_v50, 0.0 }
 0x522   : > { %v4961_v61 = vsel %vm4234_vm15, 1.0, %v7843_v7  ;;  %v4462_v17 = vadd.f32 %v4461_v8, %v4460_v1 }
 0x523   : > { %v4330_v12 = vmul.f32 %v4961_v61, %v7972_v36 }
 0x525   : > { %v4121_v49 = vpop.xlane.xlu1 %4120  ;;  %v4385_v20 = vsel %vm3625_vm2, %v4330_v12, 0.0  ;;  %v4935_v12 = vsel %vm3269_vm3, 1.0, %v7843_v7 }
 0x526   : > { %v4122_v16 = vcvt.f32.s32 %v4121_v49  ;;  %v4386_v5 = vadd.f32 %v4385_v20, %v4384_v38  ;;  %v4464_v38 = vadd.f32 %v4463_v25, %v4462_v17  ;;  %v4469_v20 = vsel %vm3625_vm2, %v4935_v12, 0.0 }
 0x528   : > { %v4125_v63 = vadd.s32 %v4124_v11, %v4122_v16 }
 0x52a   : > { %vm4235_vm0 = vcmp.eq.s32.totalorder %v4125_v63, %v7973_v55  ;;  %v4471_v63 = vsel %vm3625_vm2, %v4936_v56, 0.0 }
 0x52b   : > { %v4962_v2 = vsel %vm4235_vm0, 1.0, %v7843_v7 }
 0x52c   : > { %v4331_v15 = vmul.f32 %v4962_v2, %v7974_v45 }
 0x52e   : > { %v4387_v14 = vsel %vm3625_vm2, %v4331_v15, 0.0  ;;  %v4179_v15 = vcvt.f32.s32 %v7448_v6 }
 0x52f   : > { %v4388_v28 = vadd.f32 %v4387_v14, %v4386_v5 }
 0x530   : > { %v4180_v14 = vshll.u32 %v4179_v15, 16 }
 0x534   : > { %v4135_v60 = vpop.xlane.xlu0 %4134 }
 0x535   : > { %v4136_v18 = vcvt.f32.s32 %v4135_v60 }
 0x537   : > { %v4139_v42 = vadd.s32 %v4138_v27, %v4136_v18 }
 0x539   : > { %vm4236_vm1 = vcmp.eq.s32.totalorder %v4139_v42, %v7976_v3  ;;  %v5165_v42 = vpop.eup %5164  ;;  %v3206_v3 = vmul.f32 0.6931472, %v5163_v59 }
 0x53a   : > { %v4963_v13 = vsel %vm4236_vm1, 1.0, %v7843_v7  ;;  %v3204_v17 = vmul.f32 0.6931472, %v5165_v42 }
 0x53b   : > { %v4332_v29 = vmul.f32 %v4963_v13, %v7398_v30  ;;  %v4466_v30 = vadd.f32 %v4465_v44, %v4464_v38 }
 0x53c   : > { %v4149_v9 = vpop.xlane.xlu2 %4148 }
 0x53d   : > { %v4389_v31 = vsel %vm3625_vm2, %v4332_v29, 0.0  ;;  %v4150_v54 = vcvt.f32.s32 %v4149_v9  ;;  %v4468_v49 = vadd.f32 %v4467_v48, %v4466_v30 }
 0x53e   : > { %v4390_v21 = vadd.f32 %v4389_v31, %v4388_v28 }
 0x53f   : > { %v4153_v37 = vadd.s32 %v4152_v4, %v4150_v54 }
 0x541   : > { %vm4237_vm4 = vcmp.eq.s32.totalorder %v4153_v37, %v7432_v58  ;;  %v4470_v58 = vadd.f32 %v4469_v20, %v4468_v49 }
 0x542   : > { %v4964_v61 = vsel %vm4237_vm4, 1.0, %v7843_v7 }
 0x543   : > { %v4333_v36 = vmul.f32 %v4964_v61, %v7444_v47  ;;  %v4472_v55 = vadd.f32 %v4471_v63, %v4470_v58 }
 0x545   : > { %v4163_v11 = vpop.xlane.xlu1 %4162  ;;  %v4391_v19 = vsel %vm3625_vm2, %v4333_v36, 0.0  ;;  %4473 = vadd.xlane.f32.xlu0 %v4472_v55 }
 0x546   : > { %v4164_v16 = vcvt.f32.s32 %v4163_v11  ;;  %v4392_v5 = vadd.f32 %v4391_v19, %v4390_v21 }
 0x548   : > { %v4167_v39 = vadd.s32 %v4166_v46, %v4164_v16 }
 0x54a   : > { %vm4238_vm6 = vcmp.eq.s32.totalorder %v4167_v39, %v7439_v41  ;;  %v4207_v41 = vcvt.f32.s32 %v7478_v53 }
 0x54b   : > { %v4965_v47 = vsel %vm4238_vm6, 1.0, %v7843_v7 }
 0x54c   : > { %v4334_v23 = vmul.f32 %v4965_v47, %v7451_v32  ;;  %v4208_v27 = vshll.u32 %v4207_v41, 16 }
 0x54e   : > { %v4393_v2 = vsel %vm3625_vm2, %v4334_v23, 0.0 }
 0x54f   : > { %v4394_v45 = vadd.f32 %v4393_v2, %v4392_v5 }
 0x554   : > { %v4177_v40 = vpop.xlane.xlu0 %4176 }
 0x555   : > { %v4178_v24 = vcvt.f32.s32 %v4177_v40 }
 0x557   : > { %v4181_v28 = vadd.s32 %v4180_v14, %v4178_v24 }
 0x559   : > { %vm4239_vm7 = vcmp.eq.s32.totalorder %v4181_v28, %v7469_v26 }
 0x55a   : > { %v4966_v0 = vsel %vm4239_vm7, 1.0, %v7843_v7 }
 0x55b   : > { %v4335_v32 = vmul.f32 %v4966_v0, %v7481_v50 }
 0x55c   : > { %v4191_v10 = vpop.xlane.xlu2 %4190  ;;  %v3560_v53 = vpop.xlane.xlu0 %3559 }
 0x55d   : > { %v4395_v6 = vsel %vm3625_vm2, %v4335_v32, 0.0  ;;  %v4205_v60 = vpop.xlane.xlu1 %4204  ;;  %v4192_v18 = vcvt.f32.s32 %v4191_v10  ;;  %v3592_v62 = vsub.f32 %v3206_v3, %v3560_v53 }
 0x55e   : > { %v4206_v51 = vcvt.f32.s32 %v4205_v60  ;;  %v4396_v1 = vadd.f32 %v4395_v6, %v4394_v45 }
 0x55f   : > { %v4195_v8 = vadd.s32 %v4194_v22, %v4192_v18  ;;  %v3624_v4 = vmul.f32 %v4936_v56, %v3592_v62 }
 0x560   : > { %v4209_v26 = vadd.s32 %v4208_v27, %v4206_v51 }
 0x561   : > { %vm4240_vm8 = vcmp.eq.s32.totalorder %v4195_v8, %v5202_v34 }
 0x562   : > { %vm4241_vm9 = vcmp.eq.s32.totalorder %v4209_v26, %v5203_v57  ;;  %v4967_v33 = vsel %vm4240_vm8, 1.0, %v7843_v7 }
 0x563   : > { %v4968_v50 = vsel %vm4241_vm9, 1.0, %v7843_v7  ;;  %v4336_v25 = vmul.f32 %v4967_v33, %v4935_v12  ;;  %v3687_v7 = vsel %vm3625_vm2, %v3624_v4, 0.0 }
 0x564   : > { %v4337_v13 = vmul.f32 %v4968_v50, %v4936_v56  ;;  %v3558_v29 = vpop.xlane.xlu2 %3557 }
 0x565   : > { %v3591_v31 = vsub.f32 %v3204_v17, %v3558_v29  ;;  %v4397_v9 = vsel %vm3625_vm2, %v4336_v25, 0.0 }
 0x566   : > { %v4398_v38 = vadd.f32 %v4397_v9, %v4396_v1  ;;  %v4399_v54 = vsel %vm3625_vm2, %v4337_v13, 0.0 }
 0x567   : > { %v3623_v21 = vmul.f32 %v4935_v12, %v3591_v31 }
 0x568   : > { %v4400_v44 = vadd.f32 %v4399_v54, %v4398_v38 }
 0x569   : > { %v3685_v37 = vsel %vm3625_vm2, %v3623_v21, 0.0 }
 0x56a   : > { %v3686_v34 = vadd.f32 %v3685_v37, %v7498_v43  ;;  %4401 = vadd.xlane.f32.xlu2 %v4400_v44 }
 0x56c   : > { %v3688_v35 = vadd.f32 %v3687_v7, %v3686_v34 }
 0x56e   : > { %3689 = vadd.xlane.f32.xlu1 %v3688_v35 }
 0x5b8   : > { %v4474_v48 = vpop.xlane.xlu0 %4473 }
 0x5b9   : > { %v4475_v30 = vrot.slane %v4474_v48, 4 }
 0x5bb   : > { %v4476_v61 = vadd.f32 %v4475_v30, %v4474_v48 }
 0x5bd   : > { %v4477_v12 = vrot.slane %v4476_v61, 2 }
 0x5bf   : > { %v4478_v43 = vadd.f32 %v4477_v12, %v4476_v61 }
 0x5c1   : > { %v4479_v39 = vrot.slane %v4478_v43, 1 }
 0x5c3   : > { %v4480_v23 = vadd.f32 %v4479_v39, %v4478_v43 }
 0x5dd   : > { %v4402_v57 = vpop.xlane.xlu2 %4401 }
 0x5de   : > { %v4403_v36 = vrot.slane %v4402_v57, 4 }
 0x5e0   : > { %v4404_v49 = vadd.f32 %v4403_v36, %v4402_v57 }
 0x5e1   : > { %v3690_v46 = vpop.xlane.xlu1 %3689 }
 0x5e2   : > { %v4405_v11 = vrot.slane %v4404_v49, 2  ;;  %v3691_v20 = vrot.slane %v3690_v46, 4 }
 0x5e4   : > { %v3692_v19 = vadd.f32 %v3691_v20, %v3690_v46  ;;  %v4406_v16 = vadd.f32 %v4405_v11, %v4404_v49 }
 0x5e6   : > { %v3693_v56 = vrot.slane %v3692_v19, 2  ;;  %v4407_v5 = vrot.slane %v4406_v16, 1 }
 0x5e8   : > { %v3694_v58 = vadd.f32 %v3693_v56, %v3692_v19  ;;  %v4408_v47 = vadd.f32 %v4407_v5, %v4406_v16 }
 0x5ea   : > { %v3695_v63 = vrot.slane %v3694_v58, 1 }
 0x5ec   : > { %v3696_v55 = vadd.f32 %v3695_v63, %v3694_v58 }
 0x5ee   : > { %4984 = vpush %v3696_v55 }
 0x5ef   : > { %4986 = vpush %v4408_v47 }
 0x5f0   : > { %4988 = vpush %v4480_v23 }
 0x61f   : > { %s4985_s10 = spop %4984 }
 0x620   : > { %v4482_v2 = vstv %s4985_s10  ;;  %s4987_s11 = spop %4986 }
 0x621   : > { %4485 = vst [vmem:[%s261_s26] sm:$0xff] %v4482_v2  ;;  %v4483_v45 = vstv %s4987_s11  ;;  %s4989_s29 = spop %4988 }
 0x622   : > { %4486 = vst [vmem:[%s261_s26 + $0x8] sm:$0xff] %v4483_v45  ;;  %v4484_v15 = vstv %s4989_s29 }
 0x623   : > { %4487 = vst [vmem:[%s261_s26 + $0x10] sm:$0xff] %v4484_v15 }
 0x624   : > { %5231 = shalt.err (!%p5228_p4)
}
 0x625   : > { %s5270_s15 = smov 128   ;;  %s5271_s20 = smov 8  }
 0x626   : > { %4990 = dma.vmem_to_hbm [thread:$0]  (%p5345_p5), %s7641_s28, 384, %s4504_s9, %s4489_s25, %s5270_s15, %s5270_s15, %s5271_s20  }
 0x627 PF: > { %p4996_p7 = scmp.ge.s32.totalorder %s5266_s24, 2  ;;  %s4518_s26 = sand.u32 1, %s5254_s21  }
 0x628   : > { %s4519_s10 = scalar_lea.sflag [#allocation3], %s4518_s26 }
 0x629   : > { %p4993_p8 = pnand %p4996_p7, %p5349_p6 }
 0x62b   : > { %p4994_p9 = pneg %p4993_p8 }
 0x62d   : > { %5249 = dma.done.wait (%p4994_p9), %s4519_s10, 384  }
 0x62e   : > { %5251 = vsyncadd (%p4994_p9), %s4519_s10, 4294966912  ;;  %p16_p10 = scmp.ge.s32.totalorder %s5332_s27, 5   ;;  %s7977_s21 = smov %s5258_s22 }
 0x62f   : > { %s7978_s22 = smov %s5262_s23  ;;  %s7979_s23 = smov %s5343_s30 }
 0x630   : > { %s7980_s24 = smov %s5332_s27  ;;  %18 = sbr.rel (!%p16_p10) target bundleno = 3 (0x3), region = 82 }
 0x635   :  { %4525 = vsyncpa [#allocation3], 1 }
 0x636   :  { %4527 = vsyncpa [#allocation3 + $0x1], 1 }

</bundles_post_ra>
